<compile_context>
chip_gen: v7x
topology: tpu7x:2x2x1
jax: 0.10.0
libtpu: 0.0.40
codegen_flags: <defaults>
</compile_context>

<pallas_src>
import functools
import math

import jax
import jax.numpy as jnp
from jax import lax
from jax.experimental import pallas as pl
from jax.experimental.pallas import tpu as pltpu


# ------------------------------ fused kernel -------------------------------

def _dependency_kernel(x_ref, pad_ref,
                       wq_ref, wk_ref, wv_ref, bq_ref, bk_ref, bv_ref,
                       wo_ref, bo_ref, ln1g_ref, ln1b_ref,
                       w1_ref, b1_ref, w2_ref, b2_ref, ln2g_ref, ln2b_ref,
                       wp1_ref, bp1_ref, wih_ref, whh_ref, blstm_ref,
                       wp2_ref, bp2_ref, wp3_ref, bp3_ref,
                       o_ref, seq_scr,
                       *, n_head, bs, eps, export):
    """Whole DependencyModel forward (post-embedding) in one invocation.

    x_ref   : (M, E)  code embeddings, M = bs*vs*cs
    pad_ref : (B, cs) float key-padding values (0 = real, 1 = padded), B=bs*vs
    encoder weights are stacked over layers (and heads for q/k/v/out-proj)
    seq_scr : (B, H) VMEM scratch holding the LSTM inter-layer sequence
    o_ref   : (bs, vs, Vp) lane-padded head output
    """
    M, E = x_ref.shape
    B, cs = pad_ref.shape
    L_enc = wq_ref.shape[0]
    Dh = wq_ref.shape[3]
    Hd = wp1_ref.shape[1]
    L_rnn = wih_ref.shape[0]
    T = bs                      # nn.LSTM is seq-first: time axis = bs
    N = B // bs                 # LSTM batch axis = vs
    scale = 1.0 / math.sqrt(Dh)

    x = x_ref[...].astype(jnp.float32)                       # (M, E)
    # Float key_padding_mask is ADDED to the logits (PyTorch float-mask
    # semantics, as in the reference model).
    pad_bias = pad_ref[...][:, None, :]                      # (B, 1, cs)

    # ---- TransformerEncoder: 2 post-norm layers, relu FFN, eval mode -------
    for l in range(L_enc):                                   # static unroll
        ctx = jnp.zeros((M, E), jnp.float32)
        for h in range(n_head):                              # static unroll
            q = jnp.dot(x, wq_ref[l, h], preferred_element_type=jnp.float32) + bq_ref[l, h]
            k = jnp.dot(x, wk_ref[l, h], preferred_element_type=jnp.float32) + bk_ref[l, h]
            v = jnp.dot(x, wv_ref[l, h], preferred_element_type=jnp.float32) + bv_ref[l, h]
            q = q.reshape(B, cs, Dh)
            k = k.reshape(B, cs, Dh)
            v = v.reshape(B, cs, Dh)
            # Per-sequence (block-diagonal) attention: (B, cs, cs) scores.
            s = jnp.einsum('bqd,bkd->bqk', q, k,
                           preferred_element_type=jnp.float32) * scale
            s = s + pad_bias
            s = s - jnp.max(s, axis=-1, keepdims=True)
            p = jnp.exp(s)
            p = p / jnp.sum(p, axis=-1, keepdims=True)
            a = jnp.einsum('bqk,bkd->bqd', p, v,
                           preferred_element_type=jnp.float32)       # (B,cs,Dh)
            # Per-head output-projection accumulation (== concat(heads) @ Wo).
            ctx = ctx + jnp.dot(a.reshape(M, Dh), wo_ref[l, h],
                                preferred_element_type=jnp.float32)
        x1 = x + ctx + bo_ref[l]
        mu = jnp.mean(x1, axis=-1, keepdims=True)
        var = jnp.mean(jnp.square(x1 - mu), axis=-1, keepdims=True)
        x1 = (x1 - mu) * lax.rsqrt(var + eps) * ln1g_ref[l] + ln1b_ref[l]

        ff = jnp.dot(x1, w1_ref[l], preferred_element_type=jnp.float32) + b1_ref[l]
        ff = jnp.maximum(ff, 0.0)
        ff = jnp.dot(ff, w2_ref[l], preferred_element_type=jnp.float32) + b2_ref[l]
        x2 = x1 + ff
        mu = jnp.mean(x2, axis=-1, keepdims=True)
        var = jnp.mean(jnp.square(x2 - mu), axis=-1, keepdims=True)
        x = (x2 - mu) * lax.rsqrt(var + eps) * ln2g_ref[l] + ln2b_ref[l]

    # ---- visit representation: code position 0 of each sequence ------------
    vr = x.reshape(B, cs, E)[:, 0, :]                                 # (B, E)

    # ---- proj1 -> VMEM sequence buffer --------------------------------------
    seq_scr[...] = (jnp.dot(vr, wp1_ref[...],
                            preferred_element_type=jnp.float32) + bp1_ref[...])

    # ---- stacked LSTM (time axis = bs, batch axis = vs; gate order i,f,g,o) -
    for l in range(L_rnn):                                   # static unroll
        seq_in = seq_scr[...]                                # (T*N, Hd)
        # Hoisted input-to-hidden matmul for all T steps of this layer.
        xg = jnp.dot(seq_in, wih_ref[l],
                     preferred_element_type=jnp.float32) + blstm_ref[l]
        whh = whh_ref[l]
        hidden = jnp.zeros((N, Hd), jnp.float32)
        cell = jnp.zeros((N, Hd), jnp.float32)
        for t in range(T):                                   # static unroll
            gates = (lax.slice_in_dim(xg, t * N, (t + 1) * N, axis=0)
                     + jnp.dot(hidden, whh,
                               preferred_element_type=jnp.float32))  # (N, 4Hd)
            sg = jax.nn.sigmoid(gates)        # full-width nonlinearities
            tg = jnp.tanh(gates)
            i_g = lax.slice_in_dim(sg, 0, Hd, axis=1)
            f_g = lax.slice_in_dim(sg, Hd, 2 * Hd, axis=1)
            g_g = lax.slice_in_dim(tg, 2 * Hd, 3 * Hd, axis=1)
            o_g = lax.slice_in_dim(sg, 3 * Hd, 4 * Hd, axis=1)
            cell = f_g * cell + i_g * g_g
            hidden = o_g * jnp.tanh(cell)
            seq_scr[pl.ds(t * N, N), :] = hidden
        # inter-layer dropout = identity (eval mode)

    # ---- head: proj2 (+ relu + proj3 unless export) -------------------------
    seq = seq_scr[...]                                               # (T*N, Hd)
    cond = jnp.dot(seq, wp2_ref[...],
                   preferred_element_type=jnp.float32) + bp2_ref[...]
    if export:
        out = cond
    else:
        out = jnp.dot(jnp.maximum(cond, 0.0), wp3_ref[...],
                      preferred_element_type=jnp.float32) + bp3_ref[...]
    o_ref[...] = out.reshape(T, N, o_ref.shape[-1]).astype(o_ref.dtype)


# ------------------------------ model (glue) -------------------------------

def _pad_last(a, n):
    p = n - a.shape[-1]
    if p <= 0:
        return a
    return jnp.pad(a, [(0, 0)] * (a.ndim - 1) + [(0, p)])


def dependency_model_forward(params, inputs_word, visit_lengths, *,
                             n_head, export=False):
    bs, vs, cs = inputs_word.shape
    E = params["embed"].shape[1]
    Hd = params["w_p1"].shape[1]
    C = params["w_p2"].shape[1]
    V = params["w_p3"].shape[1]
    M = bs * vs * cs
    B = bs * vs

    # Embedding lookup (gather) kept as XLA glue.
    x = jnp.take(params["embed"], inputs_word, axis=0).reshape(M, E)

    # Float key-padding values per (sequence, code): 0 = real, 1 = padded.
    pos = jnp.arange(cs)
    pad = (pos[None, None, :] >= visit_lengths[:, :, None]).astype(jnp.float32)
    pad = pad.reshape(B, cs)

    # Lane-dense head output: pad the final projection to a multiple of 128.
    head_dim = C if export else V
    vp = pl.cdiv(head_dim, 128) * 128
    if export:
        wp2, bp2 = _pad_last(params["w_p2"], vp), _pad_last(params["b_p2"], vp)
        wp3, bp3 = params["w_p3"], params["b_p3"]          # unused in kernel
    else:
        wp2, bp2 = params["w_p2"], params["b_p2"]
        wp3, bp3 = _pad_last(params["w_p3"], vp), _pad_last(params["b_p3"], vp)

    out_padded = pl.pallas_call(
        functools.partial(_dependency_kernel, n_head=n_head, bs=bs,
                          eps=1e-8, export=export),
        out_shape=jax.ShapeDtypeStruct((bs, vs, vp), jnp.float32),
        scratch_shapes=[pltpu.VMEM((B, Hd), jnp.float32)],
    )(x, pad,
      params["wq"], params["wk"], params["wv"],
      params["bq"], params["bk"], params["bv"],
      params["wo"], params["bo"], params["ln1_g"], params["ln1_b"],
      params["w1"], params["b1"], params["w2"], params["b2"],
      params["ln2_g"], params["ln2_b"],
      params["w_p1"], params["b_p1"],
      params["w_ih"], params["w_hh"], params["b_lstm"],
      wp2, bp2, wp3, bp3)

    # Reference: output[:, :-1, :] on the (bs, vs, ...) head output.
    return out_padded[:, :-1, :head_dim]


# ------------------------------ params init --------------------------------

def init_params(key, emb_size, hidden_dim, condition_dim, total_vocab_size,
                n_head, n_rnn_layer, n_enc_layers=2):
    dh = emb_size // n_head
    L = n_enc_layers
    keys = iter(jax.random.split(key, 32))

    def u(shape, scale):
        return jax.random.uniform(next(keys), shape, jnp.float32, -scale, scale)

    s_e = 1.0 / math.sqrt(emb_size)
    s_h = 1.0 / math.sqrt(hidden_dim)
    s_c = 1.0 / math.sqrt(condition_dim)

    params = {
        "embed": jax.random.normal(
            next(keys), (total_vocab_size + 3, emb_size), jnp.float32),
        # Encoder, stacked over layers; q/k/v/out-proj pre-split per head
        # (x @ W layout, i.e. transposed relative to torch Linear.weight).
        "wq": u((L, n_head, emb_size, dh), s_e),
        "wk": u((L, n_head, emb_size, dh), s_e),
        "wv": u((L, n_head, emb_size, dh), s_e),
        "bq": u((L, n_head, 1, dh), s_e),
        "bk": u((L, n_head, 1, dh), s_e),
        "bv": u((L, n_head, 1, dh), s_e),
        "wo": u((L, n_head, dh, emb_size), s_e),
        "bo": u((L, 1, emb_size), s_e),
        "w1": u((L, emb_size, hidden_dim), s_e),
        "b1": u((L, 1, hidden_dim), s_e),
        "w2": u((L, hidden_dim, emb_size), s_h),
        "b2": u((L, 1, emb_size), s_h),
        "ln1_g": jnp.ones((L, 1, emb_size), jnp.float32),
        "ln1_b": jnp.zeros((L, 1, emb_size), jnp.float32),
        "ln2_g": jnp.ones((L, 1, emb_size), jnp.float32),
        "ln2_b": jnp.zeros((L, 1, emb_size), jnp.float32),
        # proj1 + stacked LSTM (gate order i,f,g,o; b_lstm = b_ih + b_hh).
        "w_p1": u((emb_size, hidden_dim), s_e),
        "b_p1": u((1, hidden_dim), s_e),
        "w_ih": u((n_rnn_layer, hidden_dim, 4 * hidden_dim), s_h),
        "w_hh": u((n_rnn_layer, hidden_dim, 4 * hidden_dim), s_h),
        "b_lstm": u((n_rnn_layer, 1, 4 * hidden_dim), s_h),
        # head
        "w_p2": u((hidden_dim, condition_dim), s_h),
        "b_p2": u((1, condition_dim), s_h),
        "w_p3": u((condition_dim, total_vocab_size), s_c),
        "b_p3": u((1, total_vocab_size), s_c),
    }
    return params


# ----------------------------------- main -----------------------------------

if __name__ == "__main__":
    emb_size, hidden_dim, condition_dim = 16, 32, 24
    total_vocab_size, n_head, n_rnn_layer = 20, 2, 2
    bs, vs, cs = 2, 4, 6

    key = jax.random.PRNGKey(0)
    kp, ki, kl = jax.random.split(key, 3)
    params = init_params(kp, emb_size, hidden_dim, condition_dim,
                         total_vocab_size, n_head, n_rnn_layer)

    inputs_word = jax.random.randint(
        ki, (bs, vs, cs), 0, total_vocab_size + 3, dtype=jnp.int32)
    visit_lengths = jax.random.randint(
        kl, (bs, vs), 1, cs + 1, dtype=jnp.int32)

    fwd = jax.jit(functools.partial(dependency_model_forward,
                                    n_head=n_head, export=False))
    out = fwd(params, inputs_word, visit_lengths)
    out = jax.block_until_ready(out)
    assert out.shape == (bs, vs - 1, total_vocab_size), out.shape
    assert bool(jnp.all(jnp.isfinite(out)))
    print("KERNEL_OK")
</pallas_src>

<mosaic_0001>
module attributes {stable_mosaic.version = 11 : i64} {
  func.func @_dependency_kernel(%arg0: memref<48x16xf32, #tpu.memory_space<vmem>>, %arg1: memref<8x6xf32, #tpu.memory_space<vmem>>, %arg2: memref<2x2x16x8xf32, #tpu.memory_space<vmem>>, %arg3: memref<2x2x16x8xf32, #tpu.memory_space<vmem>>, %arg4: memref<2x2x16x8xf32, #tpu.memory_space<vmem>>, %arg5: memref<2x2x1x8xf32, #tpu.memory_space<vmem>>, %arg6: memref<2x2x1x8xf32, #tpu.memory_space<vmem>>, %arg7: memref<2x2x1x8xf32, #tpu.memory_space<vmem>>, %arg8: memref<2x2x8x16xf32, #tpu.memory_space<vmem>>, %arg9: memref<2x1x16xf32, #tpu.memory_space<vmem>>, %arg10: memref<2x1x16xf32, #tpu.memory_space<vmem>>, %arg11: memref<2x1x16xf32, #tpu.memory_space<vmem>>, %arg12: memref<2x16x32xf32, #tpu.memory_space<vmem>>, %arg13: memref<2x1x32xf32, #tpu.memory_space<vmem>>, %arg14: memref<2x32x16xf32, #tpu.memory_space<vmem>>, %arg15: memref<2x1x16xf32, #tpu.memory_space<vmem>>, %arg16: memref<2x1x16xf32, #tpu.memory_space<vmem>>, %arg17: memref<2x1x16xf32, #tpu.memory_space<vmem>>, %arg18: memref<16x32xf32, #tpu.memory_space<vmem>>, %arg19: memref<1x32xf32, #tpu.memory_space<vmem>>, %arg20: memref<2x32x128xf32, #tpu.memory_space<vmem>>, %arg21: memref<2x32x128xf32, #tpu.memory_space<vmem>>, %arg22: memref<2x1x128xf32, #tpu.memory_space<vmem>>, %arg23: memref<32x24xf32, #tpu.memory_space<vmem>>, %arg24: memref<1x24xf32, #tpu.memory_space<vmem>>, %arg25: memref<24x128xf32, #tpu.memory_space<vmem>>, %arg26: memref<1x128xf32, #tpu.memory_space<vmem>>, %arg27: memref<2x4x128xf32, #tpu.memory_space<vmem>>, %arg28: memref<8x32xf32, #tpu.memory_space<vmem>>) attributes {dimension_semantics = [], scalar_prefetch = 0 : i64, scratch_operands = 1 : i64, tpu.core_type = #tpu.core_type<tc>} {
    %c0 = arith.constant 0 : index
    %c0_0 = arith.constant 0 : index
    %0 = vector.load %arg0[%c0, %c0_0] : memref<48x16xf32, #tpu.memory_space<vmem>>, vector<48x16xf32>
    %c0_1 = arith.constant 0 : index
    %c0_2 = arith.constant 0 : index
    %1 = vector.load %arg1[%c0_1, %c0_2] : memref<8x6xf32, #tpu.memory_space<vmem>>, vector<8x6xf32>
    %2 = vector.shape_cast %1 : vector<8x6xf32> to vector<8x1x6xf32>
    %cst = arith.constant 0.000000e+00 : f32
    %3 = vector.broadcast %cst : f32 to vector<48x16xf32>
    %c0_3 = arith.constant 0 : index
    %c0_4 = arith.constant 0 : index
    %c0_5 = arith.constant 0 : index
    %c0_6 = arith.constant 0 : index
    %4 = vector.load %arg2[%c0_3, %c0_4, %c0_5, %c0_6] : memref<2x2x16x8xf32, #tpu.memory_space<vmem>>, vector<1x1x16x8xf32>
    %5 = vector.shape_cast %4 : vector<1x1x16x8xf32> to vector<16x8xf32>
    %cst_7 = arith.constant dense<0.000000e+00> : vector<48x8xf32>
    %6 = tpu.matmul %0, %5, %cst_7 {dimension_numbers = #tpu.dot_dimension_numbers<[1], [0], [0], [1], [0, 0, 1, 1], [], []>} : vector<48x16xf32>, vector<16x8xf32>, vector<48x8xf32> -> vector<48x8xf32>
    %c0_8 = arith.constant 0 : index
    %c0_9 = arith.constant 0 : index
    %c0_10 = arith.constant 0 : index
    %c0_11 = arith.constant 0 : index
    %7 = vector.load %arg5[%c0_8, %c0_9, %c0_10, %c0_11] : memref<2x2x1x8xf32, #tpu.memory_space<vmem>>, vector<1x1x1x8xf32>
    %8 = vector.shape_cast %7 : vector<1x1x1x8xf32> to vector<1x8xf32>
    %9 = vector.broadcast %8 : vector<1x8xf32> to vector<48x8xf32>
    %10 = arith.addf %6, %9 : vector<48x8xf32>
    %c0_12 = arith.constant 0 : index
    %c0_13 = arith.constant 0 : index
    %c0_14 = arith.constant 0 : index
    %c0_15 = arith.constant 0 : index
    %11 = vector.load %arg3[%c0_12, %c0_13, %c0_14, %c0_15] : memref<2x2x16x8xf32, #tpu.memory_space<vmem>>, vector<1x1x16x8xf32>
    %12 = vector.shape_cast %11 : vector<1x1x16x8xf32> to vector<16x8xf32>
    %cst_16 = arith.constant dense<0.000000e+00> : vector<48x8xf32>
    %13 = tpu.matmul %0, %12, %cst_16 {dimension_numbers = #tpu.dot_dimension_numbers<[1], [0], [0], [1], [0, 0, 1, 1], [], []>} : vector<48x16xf32>, vector<16x8xf32>, vector<48x8xf32> -> vector<48x8xf32>
    %c0_17 = arith.constant 0 : index
    %c0_18 = arith.constant 0 : index
    %c0_19 = arith.constant 0 : index
    %c0_20 = arith.constant 0 : index
    %14 = vector.load %arg6[%c0_17, %c0_18, %c0_19, %c0_20] : memref<2x2x1x8xf32, #tpu.memory_space<vmem>>, vector<1x1x1x8xf32>
    %15 = vector.shape_cast %14 : vector<1x1x1x8xf32> to vector<1x8xf32>
    %16 = vector.broadcast %15 : vector<1x8xf32> to vector<48x8xf32>
    %17 = arith.addf %13, %16 : vector<48x8xf32>
    %c0_21 = arith.constant 0 : index
    %c0_22 = arith.constant 0 : index
    %c0_23 = arith.constant 0 : index
    %c0_24 = arith.constant 0 : index
    %18 = vector.load %arg4[%c0_21, %c0_22, %c0_23, %c0_24] : memref<2x2x16x8xf32, #tpu.memory_space<vmem>>, vector<1x1x16x8xf32>
    %19 = vector.shape_cast %18 : vector<1x1x16x8xf32> to vector<16x8xf32>
    %cst_25 = arith.constant dense<0.000000e+00> : vector<48x8xf32>
    %20 = tpu.matmul %0, %19, %cst_25 {dimension_numbers = #tpu.dot_dimension_numbers<[1], [0], [0], [1], [0, 0, 1, 1], [], []>} : vector<48x16xf32>, vector<16x8xf32>, vector<48x8xf32> -> vector<48x8xf32>
    %c0_26 = arith.constant 0 : index
    %c0_27 = arith.constant 0 : index
    %c0_28 = arith.constant 0 : index
    %c0_29 = arith.constant 0 : index
    %21 = vector.load %arg7[%c0_26, %c0_27, %c0_28, %c0_29] : memref<2x2x1x8xf32, #tpu.memory_space<vmem>>, vector<1x1x1x8xf32>
    %22 = vector.shape_cast %21 : vector<1x1x1x8xf32> to vector<1x8xf32>
    %23 = vector.broadcast %22 : vector<1x8xf32> to vector<48x8xf32>
    %24 = arith.addf %20, %23 : vector<48x8xf32>
    %25 = vector.shape_cast %10 : vector<48x8xf32> to vector<8x6x8xf32>
    %26 = vector.shape_cast %17 : vector<48x8xf32> to vector<8x6x8xf32>
    %27 = vector.shape_cast %24 : vector<48x8xf32> to vector<8x6x8xf32>
    "tpu.trace_start"() <{level = 10 : i32, message = "bqd,bkd->bqk"}> : () -> ()
    %cst_30 = arith.constant dense<0.000000e+00> : vector<8x6x6xf32>
    %28 = tpu.matmul %25, %26, %cst_30 {dimension_numbers = #tpu.dot_dimension_numbers<[2], [2], [1], [1], [0, 0, 0, 1, 1, 1], [0], [0]>} : vector<8x6x8xf32>, vector<8x6x8xf32>, vector<8x6x6xf32> -> vector<8x6x6xf32>
    "tpu.trace_stop"() : () -> ()
    %cst_31 = arith.constant 0.353553385 : f32
    %29 = vector.broadcast %cst_31 : f32 to vector<8x6x6xf32>
    %30 = arith.mulf %28, %29 : vector<8x6x6xf32>
    %31 = vector.broadcast %2 : vector<8x1x6xf32> to vector<8x6x6xf32>
    %32 = arith.addf %30, %31 : vector<8x6x6xf32>
    %cst_32 = arith.constant dense<0xFF800000> : vector<8x6xf32>
    %33 = vector.multi_reduction <maximumf>, %32, %cst_32 [2] : vector<8x6x6xf32> to vector<8x6xf32>
    %34 = vector.shape_cast %33 : vector<8x6xf32> to vector<8x6x1xf32>
    %35 = vector.broadcast %34 : vector<8x6x1xf32> to vector<8x6x6xf32>
    %36 = arith.subf %32, %35 : vector<8x6x6xf32>
    %37 = math.exp %36 : vector<8x6x6xf32>
    %cst_33 = arith.constant dense<0.000000e+00> : vector<8x6xf32>
    %38 = vector.multi_reduction <add>, %37, %cst_33 [2] : vector<8x6x6xf32> to vector<8x6xf32>
    %39 = vector.shape_cast %38 : vector<8x6xf32> to vector<8x6x1xf32>
    %40 = vector.broadcast %39 : vector<8x6x1xf32> to vector<8x6x6xf32>
    %41 = arith.divf %37, %40 : vector<8x6x6xf32>
    "tpu.trace_start"() <{level = 10 : i32, message = "bqk,bkd->bqd"}> : () -> ()
    %cst_34 = arith.constant dense<0.000000e+00> : vector<8x6x8xf32>
    %42 = tpu.matmul %41, %27, %cst_34 {dimension_numbers = #tpu.dot_dimension_numbers<[2], [1], [1], [2], [0, 0, 0, 1, 1, 2], [0], [0]>} : vector<8x6x6xf32>, vector<8x6x8xf32>, vector<8x6x8xf32> -> vector<8x6x8xf32>
    "tpu.trace_stop"() : () -> ()
    %43 = vector.shape_cast %42 : vector<8x6x8xf32> to vector<48x8xf32>
    %c0_35 = arith.constant 0 : index
    %c0_36 = arith.constant 0 : index
    %c0_37 = arith.constant 0 : index
    %c0_38 = arith.constant 0 : index
    %44 = vector.load %arg8[%c0_35, %c0_36, %c0_37, %c0_38] : memref<2x2x8x16xf32, #tpu.memory_space<vmem>>, vector<1x1x8x16xf32>
    %45 = vector.shape_cast %44 : vector<1x1x8x16xf32> to vector<8x16xf32>
    %cst_39 = arith.constant dense<0.000000e+00> : vector<48x16xf32>
    %46 = tpu.matmul %43, %45, %cst_39 {dimension_numbers = #tpu.dot_dimension_numbers<[1], [0], [0], [1], [0, 0, 1, 1], [], []>} : vector<48x8xf32>, vector<8x16xf32>, vector<48x16xf32> -> vector<48x16xf32>
    %47 = arith.addf %3, %46 : vector<48x16xf32>
    %c0_40 = arith.constant 0 : index
    %c1 = arith.constant 1 : index
    %c0_41 = arith.constant 0 : index
    %c0_42 = arith.constant 0 : index
    %48 = vector.load %arg2[%c0_40, %c1, %c0_41, %c0_42] : memref<2x2x16x8xf32, #tpu.memory_space<vmem>>, vector<1x1x16x8xf32>
    %49 = vector.shape_cast %48 : vector<1x1x16x8xf32> to vector<16x8xf32>
    %cst_43 = arith.constant dense<0.000000e+00> : vector<48x8xf32>
    %50 = tpu.matmul %0, %49, %cst_43 {dimension_numbers = #tpu.dot_dimension_numbers<[1], [0], [0], [1], [0, 0, 1, 1], [], []>} : vector<48x16xf32>, vector<16x8xf32>, vector<48x8xf32> -> vector<48x8xf32>
    %c0_44 = arith.constant 0 : index
    %c1_45 = arith.constant 1 : index
    %c0_46 = arith.constant 0 : index
    %c0_47 = arith.constant 0 : index
    %51 = vector.load %arg5[%c0_44, %c1_45, %c0_46, %c0_47] : memref<2x2x1x8xf32, #tpu.memory_space<vmem>>, vector<1x1x1x8xf32>
    %52 = vector.shape_cast %51 : vector<1x1x1x8xf32> to vector<1x8xf32>
    %53 = vector.broadcast %52 : vector<1x8xf32> to vector<48x8xf32>
    %54 = arith.addf %50, %53 : vector<48x8xf32>
    %c0_48 = arith.constant 0 : index
    %c1_49 = arith.constant 1 : index
    %c0_50 = arith.constant 0 : index
    %c0_51 = arith.constant 0 : index
    %55 = vector.load %arg3[%c0_48, %c1_49, %c0_50, %c0_51] : memref<2x2x16x8xf32, #tpu.memory_space<vmem>>, vector<1x1x16x8xf32>
    %56 = vector.shape_cast %55 : vector<1x1x16x8xf32> to vector<16x8xf32>
    %cst_52 = arith.constant dense<0.000000e+00> : vector<48x8xf32>
    %57 = tpu.matmul %0, %56, %cst_52 {dimension_numbers = #tpu.dot_dimension_numbers<[1], [0], [0], [1], [0, 0, 1, 1], [], []>} : vector<48x16xf32>, vector<16x8xf32>, vector<48x8xf32> -> vector<48x8xf32>
    %c0_53 = arith.constant 0 : index
    %c1_54 = arith.constant 1 : index
    %c0_55 = arith.constant 0 : index
    %c0_56 = arith.constant 0 : index
    %58 = vector.load %arg6[%c0_53, %c1_54, %c0_55, %c0_56] : memref<2x2x1x8xf32, #tpu.memory_space<vmem>>, vector<1x1x1x8xf32>
    %59 = vector.shape_cast %58 : vector<1x1x1x8xf32> to vector<1x8xf32>
    %60 = vector.broadcast %59 : vector<1x8xf32> to vector<48x8xf32>
    %61 = arith.addf %57, %60 : vector<48x8xf32>
    %c0_57 = arith.constant 0 : index
    %c1_58 = arith.constant 1 : index
    %c0_59 = arith.constant 0 : index
    %c0_60 = arith.constant 0 : index
    %62 = vector.load %arg4[%c0_57, %c1_58, %c0_59, %c0_60] : memref<2x2x16x8xf32, #tpu.memory_space<vmem>>, vector<1x1x16x8xf32>
    %63 = vector.shape_cast %62 : vector<1x1x16x8xf32> to vector<16x8xf32>
    %cst_61 = arith.constant dense<0.000000e+00> : vector<48x8xf32>
    %64 = tpu.matmul %0, %63, %cst_61 {dimension_numbers = #tpu.dot_dimension_numbers<[1], [0], [0], [1], [0, 0, 1, 1], [], []>} : vector<48x16xf32>, vector<16x8xf32>, vector<48x8xf32> -> vector<48x8xf32>
    %c0_62 = arith.constant 0 : index
    %c1_63 = arith.constant 1 : index
    %c0_64 = arith.constant 0 : index
    %c0_65 = arith.constant 0 : index
    %65 = vector.load %arg7[%c0_62, %c1_63, %c0_64, %c0_65] : memref<2x2x1x8xf32, #tpu.memory_space<vmem>>, vector<1x1x1x8xf32>
    %66 = vector.shape_cast %65 : vector<1x1x1x8xf32> to vector<1x8xf32>
    %67 = vector.broadcast %66 : vector<1x8xf32> to vector<48x8xf32>
    %68 = arith.addf %64, %67 : vector<48x8xf32>
    %69 = vector.shape_cast %54 : vector<48x8xf32> to vector<8x6x8xf32>
    %70 = vector.shape_cast %61 : vector<48x8xf32> to vector<8x6x8xf32>
    %71 = vector.shape_cast %68 : vector<48x8xf32> to vector<8x6x8xf32>
    "tpu.trace_start"() <{level = 10 : i32, message = "bqd,bkd->bqk"}> : () -> ()
    %cst_66 = arith.constant dense<0.000000e+00> : vector<8x6x6xf32>
    %72 = tpu.matmul %69, %70, %cst_66 {dimension_numbers = #tpu.dot_dimension_numbers<[2], [2], [1], [1], [0, 0, 0, 1, 1, 1], [0], [0]>} : vector<8x6x8xf32>, vector<8x6x8xf32>, vector<8x6x6xf32> -> vector<8x6x6xf32>
    "tpu.trace_stop"() : () -> ()
    %cst_67 = arith.constant 0.353553385 : f32
    %73 = vector.broadcast %cst_67 : f32 to vector<8x6x6xf32>
    %74 = arith.mulf %72, %73 : vector<8x6x6xf32>
    %75 = vector.broadcast %2 : vector<8x1x6xf32> to vector<8x6x6xf32>
    %76 = arith.addf %74, %75 : vector<8x6x6xf32>
    %cst_68 = arith.constant dense<0xFF800000> : vector<8x6xf32>
    %77 = vector.multi_reduction <maximumf>, %76, %cst_68 [2] : vector<8x6x6xf32> to vector<8x6xf32>
    %78 = vector.shape_cast %77 : vector<8x6xf32> to vector<8x6x1xf32>
    %79 = vector.broadcast %78 : vector<8x6x1xf32> to vector<8x6x6xf32>
    %80 = arith.subf %76, %79 : vector<8x6x6xf32>
    %81 = math.exp %80 : vector<8x6x6xf32>
    %cst_69 = arith.constant dense<0.000000e+00> : vector<8x6xf32>
    %82 = vector.multi_reduction <add>, %81, %cst_69 [2] : vector<8x6x6xf32> to vector<8x6xf32>
    %83 = vector.shape_cast %82 : vector<8x6xf32> to vector<8x6x1xf32>
    %84 = vector.broadcast %83 : vector<8x6x1xf32> to vector<8x6x6xf32>
    %85 = arith.divf %81, %84 : vector<8x6x6xf32>
    "tpu.trace_start"() <{level = 10 : i32, message = "bqk,bkd->bqd"}> : () -> ()
    %cst_70 = arith.constant dense<0.000000e+00> : vector<8x6x8xf32>
    %86 = tpu.matmul %85, %71, %cst_70 {dimension_numbers = #tpu.dot_dimension_numbers<[2], [1], [1], [2], [0, 0, 0, 1, 1, 2], [0], [0]>} : vector<8x6x6xf32>, vector<8x6x8xf32>, vector<8x6x8xf32> -> vector<8x6x8xf32>
    "tpu.trace_stop"() : () -> ()
    %87 = vector.shape_cast %86 : vector<8x6x8xf32> to vector<48x8xf32>
    %c0_71 = arith.constant 0 : index
    %c1_72 = arith.constant 1 : index
    %c0_73 = arith.constant 0 : index
    %c0_74 = arith.constant 0 : index
    %88 = vector.load %arg8[%c0_71, %c1_72, %c0_73, %c0_74] : memref<2x2x8x16xf32, #tpu.memory_space<vmem>>, vector<1x1x8x16xf32>
    %89 = vector.shape_cast %88 : vector<1x1x8x16xf32> to vector<8x16xf32>
    %cst_75 = arith.constant dense<0.000000e+00> : vector<48x16xf32>
    %90 = tpu.matmul %87, %89, %cst_75 {dimension_numbers = #tpu.dot_dimension_numbers<[1], [0], [0], [1], [0, 0, 1, 1], [], []>} : vector<48x8xf32>, vector<8x16xf32>, vector<48x16xf32> -> vector<48x16xf32>
    %91 = arith.addf %47, %90 : vector<48x16xf32>
    %92 = arith.addf %0, %91 : vector<48x16xf32>
    %c0_76 = arith.constant 0 : index
    %c0_77 = arith.constant 0 : index
    %c0_78 = arith.constant 0 : index
    %93 = vector.load %arg9[%c0_76, %c0_77, %c0_78] : memref<2x1x16xf32, #tpu.memory_space<vmem>>, vector<1x1x16xf32>
    %94 = vector.shape_cast %93 : vector<1x1x16xf32> to vector<1x16xf32>
    %95 = vector.broadcast %94 : vector<1x16xf32> to vector<48x16xf32>
    %96 = arith.addf %92, %95 : vector<48x16xf32>
    %cst_79 = arith.constant dense<0.000000e+00> : vector<48xf32>
    %97 = vector.multi_reduction <add>, %96, %cst_79 [1] : vector<48x16xf32> to vector<48xf32>
    %98 = vector.shape_cast %97 : vector<48xf32> to vector<48x1xf32>
    %cst_80 = arith.constant 1.600000e+01 : f32
    %99 = vector.broadcast %cst_80 : f32 to vector<48x1xf32>
    %100 = arith.divf %98, %99 : vector<48x1xf32>
    %101 = vector.broadcast %100 : vector<48x1xf32> to vector<48x16xf32>
    %102 = arith.subf %96, %101 : vector<48x16xf32>
    %103 = arith.mulf %102, %102 : vector<48x16xf32>
    %cst_81 = arith.constant dense<0.000000e+00> : vector<48xf32>
    %104 = vector.multi_reduction <add>, %103, %cst_81 [1] : vector<48x16xf32> to vector<48xf32>
    %105 = vector.shape_cast %104 : vector<48xf32> to vector<48x1xf32>
    %cst_82 = arith.constant 1.600000e+01 : f32
    %106 = vector.broadcast %cst_82 : f32 to vector<48x1xf32>
    %107 = arith.divf %105, %106 : vector<48x1xf32>
    %108 = vector.broadcast %100 : vector<48x1xf32> to vector<48x16xf32>
    %109 = arith.subf %96, %108 : vector<48x16xf32>
    %cst_83 = arith.constant 9.99999993E-9 : f32
    %110 = vector.broadcast %cst_83 : f32 to vector<48x1xf32>
    %111 = arith.addf %107, %110 : vector<48x1xf32>
    %112 = math.rsqrt %111 : vector<48x1xf32>
    %113 = vector.broadcast %112 : vector<48x1xf32> to vector<48x16xf32>
    %114 = arith.mulf %109, %113 : vector<48x16xf32>
    %c0_84 = arith.constant 0 : index
    %c0_85 = arith.constant 0 : index
    %c0_86 = arith.constant 0 : index
    %115 = vector.load %arg10[%c0_84, %c0_85, %c0_86] : memref<2x1x16xf32, #tpu.memory_space<vmem>>, vector<1x1x16xf32>
    %116 = vector.shape_cast %115 : vector<1x1x16xf32> to vector<1x16xf32>
    %117 = vector.broadcast %116 : vector<1x16xf32> to vector<48x16xf32>
    %118 = arith.mulf %114, %117 : vector<48x16xf32>
    %c0_87 = arith.constant 0 : index
    %c0_88 = arith.constant 0 : index
    %c0_89 = arith.constant 0 : index
    %119 = vector.load %arg11[%c0_87, %c0_88, %c0_89] : memref<2x1x16xf32, #tpu.memory_space<vmem>>, vector<1x1x16xf32>
    %120 = vector.shape_cast %119 : vector<1x1x16xf32> to vector<1x16xf32>
    %121 = vector.broadcast %120 : vector<1x16xf32> to vector<48x16xf32>
    %122 = arith.addf %118, %121 : vector<48x16xf32>
    %c0_90 = arith.constant 0 : index
    %c0_91 = arith.constant 0 : index
    %c0_92 = arith.constant 0 : index
    %123 = vector.load %arg12[%c0_90, %c0_91, %c0_92] : memref<2x16x32xf32, #tpu.memory_space<vmem>>, vector<1x16x32xf32>
    %124 = vector.shape_cast %123 : vector<1x16x32xf32> to vector<16x32xf32>
    %cst_93 = arith.constant dense<0.000000e+00> : vector<48x32xf32>
    %125 = tpu.matmul %122, %124, %cst_93 {dimension_numbers = #tpu.dot_dimension_numbers<[1], [0], [0], [1], [0, 0, 1, 1], [], []>} : vector<48x16xf32>, vector<16x32xf32>, vector<48x32xf32> -> vector<48x32xf32>
    %c0_94 = arith.constant 0 : index
    %c0_95 = arith.constant 0 : index
    %c0_96 = arith.constant 0 : index
    %126 = vector.load %arg13[%c0_94, %c0_95, %c0_96] : memref<2x1x32xf32, #tpu.memory_space<vmem>>, vector<1x1x32xf32>
    %127 = vector.shape_cast %126 : vector<1x1x32xf32> to vector<1x32xf32>
    %128 = vector.broadcast %127 : vector<1x32xf32> to vector<48x32xf32>
    %129 = arith.addf %125, %128 : vector<48x32xf32>
    %cst_97 = arith.constant 0.000000e+00 : f32
    %130 = vector.broadcast %cst_97 : f32 to vector<48x32xf32>
    %131 = arith.maximumf %129, %130 : vector<48x32xf32>
    %c0_98 = arith.constant 0 : index
    %c0_99 = arith.constant 0 : index
    %c0_100 = arith.constant 0 : index
    %132 = vector.load %arg14[%c0_98, %c0_99, %c0_100] : memref<2x32x16xf32, #tpu.memory_space<vmem>>, vector<1x32x16xf32>
    %133 = vector.shape_cast %132 : vector<1x32x16xf32> to vector<32x16xf32>
    %cst_101 = arith.constant dense<0.000000e+00> : vector<48x16xf32>
    %134 = tpu.matmul %131, %133, %cst_101 {dimension_numbers = #tpu.dot_dimension_numbers<[1], [0], [0], [1], [0, 0, 1, 1], [], []>} : vector<48x32xf32>, vector<32x16xf32>, vector<48x16xf32> -> vector<48x16xf32>
    %c0_102 = arith.constant 0 : index
    %c0_103 = arith.constant 0 : index
    %c0_104 = arith.constant 0 : index
    %135 = vector.load %arg15[%c0_102, %c0_103, %c0_104] : memref<2x1x16xf32, #tpu.memory_space<vmem>>, vector<1x1x16xf32>
    %136 = vector.shape_cast %135 : vector<1x1x16xf32> to vector<1x16xf32>
    %137 = vector.broadcast %136 : vector<1x16xf32> to vector<48x16xf32>
    %138 = arith.addf %134, %137 : vector<48x16xf32>
    %139 = arith.addf %122, %138 : vector<48x16xf32>
    %cst_105 = arith.constant dense<0.000000e+00> : vector<48xf32>
    %140 = vector.multi_reduction <add>, %139, %cst_105 [1] : vector<48x16xf32> to vector<48xf32>
    %141 = vector.shape_cast %140 : vector<48xf32> to vector<48x1xf32>
    %cst_106 = arith.constant 1.600000e+01 : f32
    %142 = vector.broadcast %cst_106 : f32 to vector<48x1xf32>
    %143 = arith.divf %141, %142 : vector<48x1xf32>
    %144 = vector.broadcast %143 : vector<48x1xf32> to vector<48x16xf32>
    %145 = arith.subf %139, %144 : vector<48x16xf32>
    %146 = arith.mulf %145, %145 : vector<48x16xf32>
    %cst_107 = arith.constant dense<0.000000e+00> : vector<48xf32>
    %147 = vector.multi_reduction <add>, %146, %cst_107 [1] : vector<48x16xf32> to vector<48xf32>
    %148 = vector.shape_cast %147 : vector<48xf32> to vector<48x1xf32>
    %cst_108 = arith.constant 1.600000e+01 : f32
    %149 = vector.broadcast %cst_108 : f32 to vector<48x1xf32>
    %150 = arith.divf %148, %149 : vector<48x1xf32>
    %151 = vector.broadcast %143 : vector<48x1xf32> to vector<48x16xf32>
    %152 = arith.subf %139, %151 : vector<48x16xf32>
    %cst_109 = arith.constant 9.99999993E-9 : f32
    %153 = vector.broadcast %cst_109 : f32 to vector<48x1xf32>
    %154 = arith.addf %150, %153 : vector<48x1xf32>
    %155 = math.rsqrt %154 : vector<48x1xf32>
    %156 = vector.broadcast %155 : vector<48x1xf32> to vector<48x16xf32>
    %157 = arith.mulf %152, %156 : vector<48x16xf32>
    %c0_110 = arith.constant 0 : index
    %c0_111 = arith.constant 0 : index
    %c0_112 = arith.constant 0 : index
    %158 = vector.load %arg16[%c0_110, %c0_111, %c0_112] : memref<2x1x16xf32, #tpu.memory_space<vmem>>, vector<1x1x16xf32>
    %159 = vector.shape_cast %158 : vector<1x1x16xf32> to vector<1x16xf32>
    %160 = vector.broadcast %159 : vector<1x16xf32> to vector<48x16xf32>
    %161 = arith.mulf %157, %160 : vector<48x16xf32>
    %c0_113 = arith.constant 0 : index
    %c0_114 = arith.constant 0 : index
    %c0_115 = arith.constant 0 : index
    %162 = vector.load %arg17[%c0_113, %c0_114, %c0_115] : memref<2x1x16xf32, #tpu.memory_space<vmem>>, vector<1x1x16xf32>
    %163 = vector.shape_cast %162 : vector<1x1x16xf32> to vector<1x16xf32>
    %164 = vector.broadcast %163 : vector<1x16xf32> to vector<48x16xf32>
    %165 = arith.addf %161, %164 : vector<48x16xf32>
    %cst_116 = arith.constant 0.000000e+00 : f32
    %166 = vector.broadcast %cst_116 : f32 to vector<48x16xf32>
    %c1_117 = arith.constant 1 : index
    %c0_118 = arith.constant 0 : index
    %c0_119 = arith.constant 0 : index
    %c0_120 = arith.constant 0 : index
    %167 = vector.load %arg2[%c1_117, %c0_118, %c0_119, %c0_120] : memref<2x2x16x8xf32, #tpu.memory_space<vmem>>, vector<1x1x16x8xf32>
    %168 = vector.shape_cast %167 : vector<1x1x16x8xf32> to vector<16x8xf32>
    %cst_121 = arith.constant dense<0.000000e+00> : vector<48x8xf32>
    %169 = tpu.matmul %165, %168, %cst_121 {dimension_numbers = #tpu.dot_dimension_numbers<[1], [0], [0], [1], [0, 0, 1, 1], [], []>} : vector<48x16xf32>, vector<16x8xf32>, vector<48x8xf32> -> vector<48x8xf32>
    %c1_122 = arith.constant 1 : index
    %c0_123 = arith.constant 0 : index
    %c0_124 = arith.constant 0 : index
    %c0_125 = arith.constant 0 : index
    %170 = vector.load %arg5[%c1_122, %c0_123, %c0_124, %c0_125] : memref<2x2x1x8xf32, #tpu.memory_space<vmem>>, vector<1x1x1x8xf32>
    %171 = vector.shape_cast %170 : vector<1x1x1x8xf32> to vector<1x8xf32>
    %172 = vector.broadcast %171 : vector<1x8xf32> to vector<48x8xf32>
    %173 = arith.addf %169, %172 : vector<48x8xf32>
    %c1_126 = arith.constant 1 : index
    %c0_127 = arith.constant 0 : index
    %c0_128 = arith.constant 0 : index
    %c0_129 = arith.constant 0 : index
    %174 = vector.load %arg3[%c1_126, %c0_127, %c0_128, %c0_129] : memref<2x2x16x8xf32, #tpu.memory_space<vmem>>, vector<1x1x16x8xf32>
    %175 = vector.shape_cast %174 : vector<1x1x16x8xf32> to vector<16x8xf32>
    %cst_130 = arith.constant dense<0.000000e+00> : vector<48x8xf32>
    %176 = tpu.matmul %165, %175, %cst_130 {dimension_numbers = #tpu.dot_dimension_numbers<[1], [0], [0], [1], [0, 0, 1, 1], [], []>} : vector<48x16xf32>, vector<16x8xf32>, vector<48x8xf32> -> vector<48x8xf32>
    %c1_131 = arith.constant 1 : index
    %c0_132 = arith.constant 0 : index
    %c0_133 = arith.constant 0 : index
    %c0_134 = arith.constant 0 : index
    %177 = vector.load %arg6[%c1_131, %c0_132, %c0_133, %c0_134] : memref<2x2x1x8xf32, #tpu.memory_space<vmem>>, vector<1x1x1x8xf32>
    %178 = vector.shape_cast %177 : vector<1x1x1x8xf32> to vector<1x8xf32>
    %179 = vector.broadcast %178 : vector<1x8xf32> to vector<48x8xf32>
    %180 = arith.addf %176, %179 : vector<48x8xf32>
    %c1_135 = arith.constant 1 : index
    %c0_136 = arith.constant 0 : index
    %c0_137 = arith.constant 0 : index
    %c0_138 = arith.constant 0 : index
    %181 = vector.load %arg4[%c1_135, %c0_136, %c0_137, %c0_138] : memref<2x2x16x8xf32, #tpu.memory_space<vmem>>, vector<1x1x16x8xf32>
    %182 = vector.shape_cast %181 : vector<1x1x16x8xf32> to vector<16x8xf32>
    %cst_139 = arith.constant dense<0.000000e+00> : vector<48x8xf32>
    %183 = tpu.matmul %165, %182, %cst_139 {dimension_numbers = #tpu.dot_dimension_numbers<[1], [0], [0], [1], [0, 0, 1, 1], [], []>} : vector<48x16xf32>, vector<16x8xf32>, vector<48x8xf32> -> vector<48x8xf32>
    %c1_140 = arith.constant 1 : index
    %c0_141 = arith.constant 0 : index
    %c0_142 = arith.constant 0 : index
    %c0_143 = arith.constant 0 : index
    %184 = vector.load %arg7[%c1_140, %c0_141, %c0_142, %c0_143] : memref<2x2x1x8xf32, #tpu.memory_space<vmem>>, vector<1x1x1x8xf32>
    %185 = vector.shape_cast %184 : vector<1x1x1x8xf32> to vector<1x8xf32>
    %186 = vector.broadcast %185 : vector<1x8xf32> to vector<48x8xf32>
    %187 = arith.addf %183, %186 : vector<48x8xf32>
    %188 = vector.shape_cast %173 : vector<48x8xf32> to vector<8x6x8xf32>
    %189 = vector.shape_cast %180 : vector<48x8xf32> to vector<8x6x8xf32>
    %190 = vector.shape_cast %187 : vector<48x8xf32> to vector<8x6x8xf32>
    "tpu.trace_start"() <{level = 10 : i32, message = "bqd,bkd->bqk"}> : () -> ()
    %cst_144 = arith.constant dense<0.000000e+00> : vector<8x6x6xf32>
    %191 = tpu.matmul %188, %189, %cst_144 {dimension_numbers = #tpu.dot_dimension_numbers<[2], [2], [1], [1], [0, 0, 0, 1, 1, 1], [0], [0]>} : vector<8x6x8xf32>, vector<8x6x8xf32>, vector<8x6x6xf32> -> vector<8x6x6xf32>
    "tpu.trace_stop"() : () -> ()
    %cst_145 = arith.constant 0.353553385 : f32
    %192 = vector.broadcast %cst_145 : f32 to vector<8x6x6xf32>
    %193 = arith.mulf %191, %192 : vector<8x6x6xf32>
    %194 = vector.broadcast %2 : vector<8x1x6xf32> to vector<8x6x6xf32>
    %195 = arith.addf %193, %194 : vector<8x6x6xf32>
    %cst_146 = arith.constant dense<0xFF800000> : vector<8x6xf32>
    %196 = vector.multi_reduction <maximumf>, %195, %cst_146 [2] : vector<8x6x6xf32> to vector<8x6xf32>
    %197 = vector.shape_cast %196 : vector<8x6xf32> to vector<8x6x1xf32>
    %198 = vector.broadcast %197 : vector<8x6x1xf32> to vector<8x6x6xf32>
    %199 = arith.subf %195, %198 : vector<8x6x6xf32>
    %200 = math.exp %199 : vector<8x6x6xf32>
    %cst_147 = arith.constant dense<0.000000e+00> : vector<8x6xf32>
    %201 = vector.multi_reduction <add>, %200, %cst_147 [2] : vector<8x6x6xf32> to vector<8x6xf32>
    %202 = vector.shape_cast %201 : vector<8x6xf32> to vector<8x6x1xf32>
    %203 = vector.broadcast %202 : vector<8x6x1xf32> to vector<8x6x6xf32>
    %204 = arith.divf %200, %203 : vector<8x6x6xf32>
    "tpu.trace_start"() <{level = 10 : i32, message = "bqk,bkd->bqd"}> : () -> ()
    %cst_148 = arith.constant dense<0.000000e+00> : vector<8x6x8xf32>
    %205 = tpu.matmul %204, %190, %cst_148 {dimension_numbers = #tpu.dot_dimension_numbers<[2], [1], [1], [2], [0, 0, 0, 1, 1, 2], [0], [0]>} : vector<8x6x6xf32>, vector<8x6x8xf32>, vector<8x6x8xf32> -> vector<8x6x8xf32>
    "tpu.trace_stop"() : () -> ()
    %206 = vector.shape_cast %205 : vector<8x6x8xf32> to vector<48x8xf32>
    %c1_149 = arith.constant 1 : index
    %c0_150 = arith.constant 0 : index
    %c0_151 = arith.constant 0 : index
    %c0_152 = arith.constant 0 : index
    %207 = vector.load %arg8[%c1_149, %c0_150, %c0_151, %c0_152] : memref<2x2x8x16xf32, #tpu.memory_space<vmem>>, vector<1x1x8x16xf32>
    %208 = vector.shape_cast %207 : vector<1x1x8x16xf32> to vector<8x16xf32>
    %cst_153 = arith.constant dense<0.000000e+00> : vector<48x16xf32>
    %209 = tpu.matmul %206, %208, %cst_153 {dimension_numbers = #tpu.dot_dimension_numbers<[1], [0], [0], [1], [0, 0, 1, 1], [], []>} : vector<48x8xf32>, vector<8x16xf32>, vector<48x16xf32> -> vector<48x16xf32>
    %210 = arith.addf %166, %209 : vector<48x16xf32>
    %c1_154 = arith.constant 1 : index
    %c1_155 = arith.constant 1 : index
    %c0_156 = arith.constant 0 : index
    %c0_157 = arith.constant 0 : index
    %211 = vector.load %arg2[%c1_154, %c1_155, %c0_156, %c0_157] : memref<2x2x16x8xf32, #tpu.memory_space<vmem>>, vector<1x1x16x8xf32>
    %212 = vector.shape_cast %211 : vector<1x1x16x8xf32> to vector<16x8xf32>
    %cst_158 = arith.constant dense<0.000000e+00> : vector<48x8xf32>
    %213 = tpu.matmul %165, %212, %cst_158 {dimension_numbers = #tpu.dot_dimension_numbers<[1], [0], [0], [1], [0, 0, 1, 1], [], []>} : vector<48x16xf32>, vector<16x8xf32>, vector<48x8xf32> -> vector<48x8xf32>
    %c1_159 = arith.constant 1 : index
    %c1_160 = arith.constant 1 : index
    %c0_161 = arith.constant 0 : index
    %c0_162 = arith.constant 0 : index
    %214 = vector.load %arg5[%c1_159, %c1_160, %c0_161, %c0_162] : memref<2x2x1x8xf32, #tpu.memory_space<vmem>>, vector<1x1x1x8xf32>
    %215 = vector.shape_cast %214 : vector<1x1x1x8xf32> to vector<1x8xf32>
    %216 = vector.broadcast %215 : vector<1x8xf32> to vector<48x8xf32>
    %217 = arith.addf %213, %216 : vector<48x8xf32>
    %c1_163 = arith.constant 1 : index
    %c1_164 = arith.constant 1 : index
    %c0_165 = arith.constant 0 : index
    %c0_166 = arith.constant 0 : index
    %218 = vector.load %arg3[%c1_163, %c1_164, %c0_165, %c0_166] : memref<2x2x16x8xf32, #tpu.memory_space<vmem>>, vector<1x1x16x8xf32>
    %219 = vector.shape_cast %218 : vector<1x1x16x8xf32> to vector<16x8xf32>
    %cst_167 = arith.constant dense<0.000000e+00> : vector<48x8xf32>
    %220 = tpu.matmul %165, %219, %cst_167 {dimension_numbers = #tpu.dot_dimension_numbers<[1], [0], [0], [1], [0, 0, 1, 1], [], []>} : vector<48x16xf32>, vector<16x8xf32>, vector<48x8xf32> -> vector<48x8xf32>
    %c1_168 = arith.constant 1 : index
    %c1_169 = arith.constant 1 : index
    %c0_170 = arith.constant 0 : index
    %c0_171 = arith.constant 0 : index
    %221 = vector.load %arg6[%c1_168, %c1_169, %c0_170, %c0_171] : memref<2x2x1x8xf32, #tpu.memory_space<vmem>>, vector<1x1x1x8xf32>
    %222 = vector.shape_cast %221 : vector<1x1x1x8xf32> to vector<1x8xf32>
    %223 = vector.broadcast %222 : vector<1x8xf32> to vector<48x8xf32>
    %224 = arith.addf %220, %223 : vector<48x8xf32>
    %c1_172 = arith.constant 1 : index
    %c1_173 = arith.constant 1 : index
    %c0_174 = arith.constant 0 : index
    %c0_175 = arith.constant 0 : index
    %225 = vector.load %arg4[%c1_172, %c1_173, %c0_174, %c0_175] : memref<2x2x16x8xf32, #tpu.memory_space<vmem>>, vector<1x1x16x8xf32>
    %226 = vector.shape_cast %225 : vector<1x1x16x8xf32> to vector<16x8xf32>
    %cst_176 = arith.constant dense<0.000000e+00> : vector<48x8xf32>
    %227 = tpu.matmul %165, %226, %cst_176 {dimension_numbers = #tpu.dot_dimension_numbers<[1], [0], [0], [1], [0, 0, 1, 1], [], []>} : vector<48x16xf32>, vector<16x8xf32>, vector<48x8xf32> -> vector<48x8xf32>
    %c1_177 = arith.constant 1 : index
    %c1_178 = arith.constant 1 : index
    %c0_179 = arith.constant 0 : index
    %c0_180 = arith.constant 0 : index
    %228 = vector.load %arg7[%c1_177, %c1_178, %c0_179, %c0_180] : memref<2x2x1x8xf32, #tpu.memory_space<vmem>>, vector<1x1x1x8xf32>
    %229 = vector.shape_cast %228 : vector<1x1x1x8xf32> to vector<1x8xf32>
    %230 = vector.broadcast %229 : vector<1x8xf32> to vector<48x8xf32>
    %231 = arith.addf %227, %230 : vector<48x8xf32>
    %232 = vector.shape_cast %217 : vector<48x8xf32> to vector<8x6x8xf32>
    %233 = vector.shape_cast %224 : vector<48x8xf32> to vector<8x6x8xf32>
    %234 = vector.shape_cast %231 : vector<48x8xf32> to vector<8x6x8xf32>
    "tpu.trace_start"() <{level = 10 : i32, message = "bqd,bkd->bqk"}> : () -> ()
    %cst_181 = arith.constant dense<0.000000e+00> : vector<8x6x6xf32>
    %235 = tpu.matmul %232, %233, %cst_181 {dimension_numbers = #tpu.dot_dimension_numbers<[2], [2], [1], [1], [0, 0, 0, 1, 1, 1], [0], [0]>} : vector<8x6x8xf32>, vector<8x6x8xf32>, vector<8x6x6xf32> -> vector<8x6x6xf32>
    "tpu.trace_stop"() : () -> ()
    %cst_182 = arith.constant 0.353553385 : f32
    %236 = vector.broadcast %cst_182 : f32 to vector<8x6x6xf32>
    %237 = arith.mulf %235, %236 : vector<8x6x6xf32>
    %238 = vector.broadcast %2 : vector<8x1x6xf32> to vector<8x6x6xf32>
    %239 = arith.addf %237, %238 : vector<8x6x6xf32>
    %cst_183 = arith.constant dense<0xFF800000> : vector<8x6xf32>
    %240 = vector.multi_reduction <maximumf>, %239, %cst_183 [2] : vector<8x6x6xf32> to vector<8x6xf32>
    %241 = vector.shape_cast %240 : vector<8x6xf32> to vector<8x6x1xf32>
    %242 = vector.broadcast %241 : vector<8x6x1xf32> to vector<8x6x6xf32>
    %243 = arith.subf %239, %242 : vector<8x6x6xf32>
    %244 = math.exp %243 : vector<8x6x6xf32>
    %cst_184 = arith.constant dense<0.000000e+00> : vector<8x6xf32>
    %245 = vector.multi_reduction <add>, %244, %cst_184 [2] : vector<8x6x6xf32> to vector<8x6xf32>
    %246 = vector.shape_cast %245 : vector<8x6xf32> to vector<8x6x1xf32>
    %247 = vector.broadcast %246 : vector<8x6x1xf32> to vector<8x6x6xf32>
    %248 = arith.divf %244, %247 : vector<8x6x6xf32>
    "tpu.trace_start"() <{level = 10 : i32, message = "bqk,bkd->bqd"}> : () -> ()
    %cst_185 = arith.constant dense<0.000000e+00> : vector<8x6x8xf32>
    %249 = tpu.matmul %248, %234, %cst_185 {dimension_numbers = #tpu.dot_dimension_numbers<[2], [1], [1], [2], [0, 0, 0, 1, 1, 2], [0], [0]>} : vector<8x6x6xf32>, vector<8x6x8xf32>, vector<8x6x8xf32> -> vector<8x6x8xf32>
    "tpu.trace_stop"() : () -> ()
    %250 = vector.shape_cast %249 : vector<8x6x8xf32> to vector<48x8xf32>
    %c1_186 = arith.constant 1 : index
    %c1_187 = arith.constant 1 : index
    %c0_188 = arith.constant 0 : index
    %c0_189 = arith.constant 0 : index
    %251 = vector.load %arg8[%c1_186, %c1_187, %c0_188, %c0_189] : memref<2x2x8x16xf32, #tpu.memory_space<vmem>>, vector<1x1x8x16xf32>
    %252 = vector.shape_cast %251 : vector<1x1x8x16xf32> to vector<8x16xf32>
    %cst_190 = arith.constant dense<0.000000e+00> : vector<48x16xf32>
    %253 = tpu.matmul %250, %252, %cst_190 {dimension_numbers = #tpu.dot_dimension_numbers<[1], [0], [0], [1], [0, 0, 1, 1], [], []>} : vector<48x8xf32>, vector<8x16xf32>, vector<48x16xf32> -> vector<48x16xf32>
    %254 = arith.addf %210, %253 : vector<48x16xf32>
    %255 = arith.addf %165, %254 : vector<48x16xf32>
    %c1_191 = arith.constant 1 : index
    %c0_192 = arith.constant 0 : index
    %c0_193 = arith.constant 0 : index
    %256 = vector.load %arg9[%c1_191, %c0_192, %c0_193] : memref<2x1x16xf32, #tpu.memory_space<vmem>>, vector<1x1x16xf32>
    %257 = vector.shape_cast %256 : vector<1x1x16xf32> to vector<1x16xf32>
    %258 = vector.broadcast %257 : vector<1x16xf32> to vector<48x16xf32>
    %259 = arith.addf %255, %258 : vector<48x16xf32>
    %cst_194 = arith.constant dense<0.000000e+00> : vector<48xf32>
    %260 = vector.multi_reduction <add>, %259, %cst_194 [1] : vector<48x16xf32> to vector<48xf32>
    %261 = vector.shape_cast %260 : vector<48xf32> to vector<48x1xf32>
    %cst_195 = arith.constant 1.600000e+01 : f32
    %262 = vector.broadcast %cst_195 : f32 to vector<48x1xf32>
    %263 = arith.divf %261, %262 : vector<48x1xf32>
    %264 = vector.broadcast %263 : vector<48x1xf32> to vector<48x16xf32>
    %265 = arith.subf %259, %264 : vector<48x16xf32>
    %266 = arith.mulf %265, %265 : vector<48x16xf32>
    %cst_196 = arith.constant dense<0.000000e+00> : vector<48xf32>
    %267 = vector.multi_reduction <add>, %266, %cst_196 [1] : vector<48x16xf32> to vector<48xf32>
    %268 = vector.shape_cast %267 : vector<48xf32> to vector<48x1xf32>
    %cst_197 = arith.constant 1.600000e+01 : f32
    %269 = vector.broadcast %cst_197 : f32 to vector<48x1xf32>
    %270 = arith.divf %268, %269 : vector<48x1xf32>
    %271 = vector.broadcast %263 : vector<48x1xf32> to vector<48x16xf32>
    %272 = arith.subf %259, %271 : vector<48x16xf32>
    %cst_198 = arith.constant 9.99999993E-9 : f32
    %273 = vector.broadcast %cst_198 : f32 to vector<48x1xf32>
    %274 = arith.addf %270, %273 : vector<48x1xf32>
    %275 = math.rsqrt %274 : vector<48x1xf32>
    %276 = vector.broadcast %275 : vector<48x1xf32> to vector<48x16xf32>
    %277 = arith.mulf %272, %276 : vector<48x16xf32>
    %c1_199 = arith.constant 1 : index
    %c0_200 = arith.constant 0 : index
    %c0_201 = arith.constant 0 : index
    %278 = vector.load %arg10[%c1_199, %c0_200, %c0_201] : memref<2x1x16xf32, #tpu.memory_space<vmem>>, vector<1x1x16xf32>
    %279 = vector.shape_cast %278 : vector<1x1x16xf32> to vector<1x16xf32>
    %280 = vector.broadcast %279 : vector<1x16xf32> to vector<48x16xf32>
    %281 = arith.mulf %277, %280 : vector<48x16xf32>
    %c1_202 = arith.constant 1 : index
    %c0_203 = arith.constant 0 : index
    %c0_204 = arith.constant 0 : index
    %282 = vector.load %arg11[%c1_202, %c0_203, %c0_204] : memref<2x1x16xf32, #tpu.memory_space<vmem>>, vector<1x1x16xf32>
    %283 = vector.shape_cast %282 : vector<1x1x16xf32> to vector<1x16xf32>
    %284 = vector.broadcast %283 : vector<1x16xf32> to vector<48x16xf32>
    %285 = arith.addf %281, %284 : vector<48x16xf32>
    %c1_205 = arith.constant 1 : index
    %c0_206 = arith.constant 0 : index
    %c0_207 = arith.constant 0 : index
    %286 = vector.load %arg12[%c1_205, %c0_206, %c0_207] : memref<2x16x32xf32, #tpu.memory_space<vmem>>, vector<1x16x32xf32>
    %287 = vector.shape_cast %286 : vector<1x16x32xf32> to vector<16x32xf32>
    %cst_208 = arith.constant dense<0.000000e+00> : vector<48x32xf32>
    %288 = tpu.matmul %285, %287, %cst_208 {dimension_numbers = #tpu.dot_dimension_numbers<[1], [0], [0], [1], [0, 0, 1, 1], [], []>} : vector<48x16xf32>, vector<16x32xf32>, vector<48x32xf32> -> vector<48x32xf32>
    %c1_209 = arith.constant 1 : index
    %c0_210 = arith.constant 0 : index
    %c0_211 = arith.constant 0 : index
    %289 = vector.load %arg13[%c1_209, %c0_210, %c0_211] : memref<2x1x32xf32, #tpu.memory_space<vmem>>, vector<1x1x32xf32>
    %290 = vector.shape_cast %289 : vector<1x1x32xf32> to vector<1x32xf32>
    %291 = vector.broadcast %290 : vector<1x32xf32> to vector<48x32xf32>
    %292 = arith.addf %288, %291 : vector<48x32xf32>
    %cst_212 = arith.constant 0.000000e+00 : f32
    %293 = vector.broadcast %cst_212 : f32 to vector<48x32xf32>
    %294 = arith.maximumf %292, %293 : vector<48x32xf32>
    %c1_213 = arith.constant 1 : index
    %c0_214 = arith.constant 0 : index
    %c0_215 = arith.constant 0 : index
    %295 = vector.load %arg14[%c1_213, %c0_214, %c0_215] : memref<2x32x16xf32, #tpu.memory_space<vmem>>, vector<1x32x16xf32>
    %296 = vector.shape_cast %295 : vector<1x32x16xf32> to vector<32x16xf32>
    %cst_216 = arith.constant dense<0.000000e+00> : vector<48x16xf32>
    %297 = tpu.matmul %294, %296, %cst_216 {dimension_numbers = #tpu.dot_dimension_numbers<[1], [0], [0], [1], [0, 0, 1, 1], [], []>} : vector<48x32xf32>, vector<32x16xf32>, vector<48x16xf32> -> vector<48x16xf32>
    %c1_217 = arith.constant 1 : index
    %c0_218 = arith.constant 0 : index
    %c0_219 = arith.constant 0 : index
    %298 = vector.load %arg15[%c1_217, %c0_218, %c0_219] : memref<2x1x16xf32, #tpu.memory_space<vmem>>, vector<1x1x16xf32>
    %299 = vector.shape_cast %298 : vector<1x1x16xf32> to vector<1x16xf32>
    %300 = vector.broadcast %299 : vector<1x16xf32> to vector<48x16xf32>
    %301 = arith.addf %297, %300 : vector<48x16xf32>
    %302 = arith.addf %285, %301 : vector<48x16xf32>
    %cst_220 = arith.constant dense<0.000000e+00> : vector<48xf32>
    %303 = vector.multi_reduction <add>, %302, %cst_220 [1] : vector<48x16xf32> to vector<48xf32>
    %304 = vector.shape_cast %303 : vector<48xf32> to vector<48x1xf32>
    %cst_221 = arith.constant 1.600000e+01 : f32
    %305 = vector.broadcast %cst_221 : f32 to vector<48x1xf32>
    %306 = arith.divf %304, %305 : vector<48x1xf32>
    %307 = vector.broadcast %306 : vector<48x1xf32> to vector<48x16xf32>
    %308 = arith.subf %302, %307 : vector<48x16xf32>
    %309 = arith.mulf %308, %308 : vector<48x16xf32>
    %cst_222 = arith.constant dense<0.000000e+00> : vector<48xf32>
    %310 = vector.multi_reduction <add>, %309, %cst_222 [1] : vector<48x16xf32> to vector<48xf32>
    %311 = vector.shape_cast %310 : vector<48xf32> to vector<48x1xf32>
    %cst_223 = arith.constant 1.600000e+01 : f32
    %312 = vector.broadcast %cst_223 : f32 to vector<48x1xf32>
    %313 = arith.divf %311, %312 : vector<48x1xf32>
    %314 = vector.broadcast %306 : vector<48x1xf32> to vector<48x16xf32>
    %315 = arith.subf %302, %314 : vector<48x16xf32>
    %cst_224 = arith.constant 9.99999993E-9 : f32
    %316 = vector.broadcast %cst_224 : f32 to vector<48x1xf32>
    %317 = arith.addf %313, %316 : vector<48x1xf32>
    %318 = math.rsqrt %317 : vector<48x1xf32>
    %319 = vector.broadcast %318 : vector<48x1xf32> to vector<48x16xf32>
    %320 = arith.mulf %315, %319 : vector<48x16xf32>
    %c1_225 = arith.constant 1 : index
    %c0_226 = arith.constant 0 : index
    %c0_227 = arith.constant 0 : index
    %321 = vector.load %arg16[%c1_225, %c0_226, %c0_227] : memref<2x1x16xf32, #tpu.memory_space<vmem>>, vector<1x1x16xf32>
    %322 = vector.shape_cast %321 : vector<1x1x16xf32> to vector<1x16xf32>
    %323 = vector.broadcast %322 : vector<1x16xf32> to vector<48x16xf32>
    %324 = arith.mulf %320, %323 : vector<48x16xf32>
    %c1_228 = arith.constant 1 : index
    %c0_229 = arith.constant 0 : index
    %c0_230 = arith.constant 0 : index
    %325 = vector.load %arg17[%c1_228, %c0_229, %c0_230] : memref<2x1x16xf32, #tpu.memory_space<vmem>>, vector<1x1x16xf32>
    %326 = vector.shape_cast %325 : vector<1x1x16xf32> to vector<1x16xf32>
    %327 = vector.broadcast %326 : vector<1x16xf32> to vector<48x16xf32>
    %328 = arith.addf %324, %327 : vector<48x16xf32>
    %329 = vector.shape_cast %328 : vector<48x16xf32> to vector<8x6x16xf32>
    %330 = vector.extract_strided_slice %329 {offsets = [0, 0, 0], sizes = [8, 1, 16], strides = [1, 1, 1]} : vector<8x6x16xf32> to vector<8x1x16xf32>
    %331 = vector.shape_cast %330 : vector<8x1x16xf32> to vector<8x16xf32>
    %c0_231 = arith.constant 0 : index
    %c0_232 = arith.constant 0 : index
    %332 = vector.load %arg18[%c0_231, %c0_232] : memref<16x32xf32, #tpu.memory_space<vmem>>, vector<16x32xf32>
    %cst_233 = arith.constant dense<0.000000e+00> : vector<8x32xf32>
    %333 = tpu.matmul %331, %332, %cst_233 {dimension_numbers = #tpu.dot_dimension_numbers<[1], [0], [0], [1], [0, 0, 1, 1], [], []>} : vector<8x16xf32>, vector<16x32xf32>, vector<8x32xf32> -> vector<8x32xf32>
    %c0_234 = arith.constant 0 : index
    %c0_235 = arith.constant 0 : index
    %334 = vector.load %arg19[%c0_234, %c0_235] : memref<1x32xf32, #tpu.memory_space<vmem>>, vector<1x32xf32>
    %335 = vector.broadcast %334 : vector<1x32xf32> to vector<8x32xf32>
    %336 = arith.addf %333, %335 : vector<8x32xf32>
    %c0_236 = arith.constant 0 : index
    %c0_237 = arith.constant 0 : index
    %337 = vector.load %arg28[%c0_236, %c0_237] : memref<8x32xf32, #tpu.memory_space<vmem>>, vector<8x32xf32>
    tpu.vector_store %arg28[%c0_236, %c0_237], %336 {strides = array<i32>} : memref<8x32xf32, #tpu.memory_space<vmem>>, vector<8x32xf32>,
    %c0_238 = arith.constant 0 : index
    %c0_239 = arith.constant 0 : index
    %338 = vector.load %arg28[%c0_238, %c0_239] : memref<8x32xf32, #tpu.memory_space<vmem>>, vector<8x32xf32>
    %c0_240 = arith.constant 0 : index
    %c0_241 = arith.constant 0 : index
    %c0_242 = arith.constant 0 : index
    %339 = vector.load %arg20[%c0_240, %c0_241, %c0_242] : memref<2x32x128xf32, #tpu.memory_space<vmem>>, vector<1x32x128xf32>
    %340 = vector.shape_cast %339 : vector<1x32x128xf32> to vector<32x128xf32>
    %cst_243 = arith.constant dense<0.000000e+00> : vector<8x128xf32>
    %341 = tpu.matmul %338, %340, %cst_243 {dimension_numbers = #tpu.dot_dimension_numbers<[1], [0], [0], [1], [0, 0, 1, 1], [], []>} : vector<8x32xf32>, vector<32x128xf32>, vector<8x128xf32> -> vector<8x128xf32>
    %c0_244 = arith.constant 0 : index
    %c0_245 = arith.constant 0 : index
    %c0_246 = arith.constant 0 : index
    %342 = vector.load %arg22[%c0_244, %c0_245, %c0_246] : memref<2x1x128xf32, #tpu.memory_space<vmem>>, vector<1x1x128xf32>
    %343 = vector.shape_cast %342 : vector<1x1x128xf32> to vector<1x128xf32>
    %344 = vector.broadcast %343 : vector<1x128xf32> to vector<8x128xf32>
    %345 = arith.addf %341, %344 : vector<8x128xf32>
    %c0_247 = arith.constant 0 : index
    %c0_248 = arith.constant 0 : index
    %c0_249 = arith.constant 0 : index
    %346 = vector.load %arg21[%c0_247, %c0_248, %c0_249] : memref<2x32x128xf32, #tpu.memory_space<vmem>>, vector<1x32x128xf32>
    %347 = vector.shape_cast %346 : vector<1x32x128xf32> to vector<32x128xf32>
    %cst_250 = arith.constant 0.000000e+00 : f32
    %348 = vector.broadcast %cst_250 : f32 to vector<4x32xf32>
    %cst_251 = arith.constant 0.000000e+00 : f32
    %349 = vector.broadcast %cst_251 : f32 to vector<4x32xf32>
    %350 = vector.extract_strided_slice %345 {offsets = [0, 0], sizes = [4, 128], strides = [1, 1]} : vector<8x128xf32> to vector<4x128xf32>
    %cst_252 = arith.constant dense<0.000000e+00> : vector<4x128xf32>
    %351 = tpu.matmul %348, %347, %cst_252 {dimension_numbers = #tpu.dot_dimension_numbers<[1], [0], [0], [1], [0, 0, 1, 1], [], []>} : vector<4x32xf32>, vector<32x128xf32>, vector<4x128xf32> -> vector<4x128xf32>
    %352 = arith.addf %350, %351 : vector<4x128xf32>
    %353 = arith.negf %352 : vector<4x128xf32>
    %354 = math.exp %353 : vector<4x128xf32>
    %cst_253 = arith.constant 1.000000e+00 : f32
    %355 = vector.broadcast %cst_253 : f32 to vector<4x128xf32>
    %356 = arith.addf %355, %354 : vector<4x128xf32>
    %357 = arith.divf %355, %356 : vector<4x128xf32>
    %358 = math.tanh %352 : vector<4x128xf32>
    %359 = vector.extract_strided_slice %357 {offsets = [0, 0], sizes = [4, 32], strides = [1, 1]} : vector<4x128xf32> to vector<4x32xf32>
    %360 = vector.extract_strided_slice %357 {offsets = [0, 32], sizes = [4, 32], strides = [1, 1]} : vector<4x128xf32> to vector<4x32xf32>
    %361 = vector.extract_strided_slice %358 {offsets = [0, 64], sizes = [4, 32], strides = [1, 1]} : vector<4x128xf32> to vector<4x32xf32>
    %362 = vector.extract_strided_slice %357 {offsets = [0, 96], sizes = [4, 32], strides = [1, 1]} : vector<4x128xf32> to vector<4x32xf32>
    %363 = arith.mulf %360, %349 : vector<4x32xf32>
    %364 = arith.mulf %359, %361 : vector<4x32xf32>
    %365 = arith.addf %363, %364 : vector<4x32xf32>
    %366 = math.tanh %365 : vector<4x32xf32>
    %367 = arith.mulf %362, %366 : vector<4x32xf32>
    %c0_254 = arith.constant 0 : index
    %c0_255 = arith.constant 0 : index
    %368 = vector.load %arg28[%c0_254, %c0_255] : memref<8x32xf32, #tpu.memory_space<vmem>>, vector<4x32xf32>
    tpu.vector_store %arg28[%c0_254, %c0_255], %367 {strides = array<i32>} : memref<8x32xf32, #tpu.memory_space<vmem>>, vector<4x32xf32>,
    %369 = vector.extract_strided_slice %345 {offsets = [4, 0], sizes = [4, 128], strides = [1, 1]} : vector<8x128xf32> to vector<4x128xf32>
    %cst_256 = arith.constant dense<0.000000e+00> : vector<4x128xf32>
    %370 = tpu.matmul %367, %347, %cst_256 {dimension_numbers = #tpu.dot_dimension_numbers<[1], [0], [0], [1], [0, 0, 1, 1], [], []>} : vector<4x32xf32>, vector<32x128xf32>, vector<4x128xf32> -> vector<4x128xf32>
    %371 = arith.addf %369, %370 : vector<4x128xf32>
    %372 = arith.negf %371 : vector<4x128xf32>
    %373 = math.exp %372 : vector<4x128xf32>
    %cst_257 = arith.constant 1.000000e+00 : f32
    %374 = vector.broadcast %cst_257 : f32 to vector<4x128xf32>
    %375 = arith.addf %374, %373 : vector<4x128xf32>
    %376 = arith.divf %374, %375 : vector<4x128xf32>
    %377 = math.tanh %371 : vector<4x128xf32>
    %378 = vector.extract_strided_slice %376 {offsets = [0, 0], sizes = [4, 32], strides = [1, 1]} : vector<4x128xf32> to vector<4x32xf32>
    %379 = vector.extract_strided_slice %376 {offsets = [0, 32], sizes = [4, 32], strides = [1, 1]} : vector<4x128xf32> to vector<4x32xf32>
    %380 = vector.extract_strided_slice %377 {offsets = [0, 64], sizes = [4, 32], strides = [1, 1]} : vector<4x128xf32> to vector<4x32xf32>
    %381 = vector.extract_strided_slice %376 {offsets = [0, 96], sizes = [4, 32], strides = [1, 1]} : vector<4x128xf32> to vector<4x32xf32>
    %382 = arith.mulf %379, %365 : vector<4x32xf32>
    %383 = arith.mulf %378, %380 : vector<4x32xf32>
    %384 = arith.addf %382, %383 : vector<4x32xf32>
    %385 = math.tanh %384 : vector<4x32xf32>
    %386 = arith.mulf %381, %385 : vector<4x32xf32>
    %c4 = arith.constant 4 : index
    %c0_258 = arith.constant 0 : index
    %387 = vector.load %arg28[%c4, %c0_258] : memref<8x32xf32, #tpu.memory_space<vmem>>, vector<4x32xf32>
    tpu.vector_store %arg28[%c4, %c0_258], %386 {strides = array<i32>} : memref<8x32xf32, #tpu.memory_space<vmem>>, vector<4x32xf32>,
    %c0_259 = arith.constant 0 : index
    %c0_260 = arith.constant 0 : index
    %388 = vector.load %arg28[%c0_259, %c0_260] : memref<8x32xf32, #tpu.memory_space<vmem>>, vector<8x32xf32>
    %c1_261 = arith.constant 1 : index
    %c0_262 = arith.constant 0 : index
    %c0_263 = arith.constant 0 : index
    %389 = vector.load %arg20[%c1_261, %c0_262, %c0_263] : memref<2x32x128xf32, #tpu.memory_space<vmem>>, vector<1x32x128xf32>
    %390 = vector.shape_cast %389 : vector<1x32x128xf32> to vector<32x128xf32>
    %cst_264 = arith.constant dense<0.000000e+00> : vector<8x128xf32>
    %391 = tpu.matmul %388, %390, %cst_264 {dimension_numbers = #tpu.dot_dimension_numbers<[1], [0], [0], [1], [0, 0, 1, 1], [], []>} : vector<8x32xf32>, vector<32x128xf32>, vector<8x128xf32> -> vector<8x128xf32>
    %c1_265 = arith.constant 1 : index
    %c0_266 = arith.constant 0 : index
    %c0_267 = arith.constant 0 : index
    %392 = vector.load %arg22[%c1_265, %c0_266, %c0_267] : memref<2x1x128xf32, #tpu.memory_space<vmem>>, vector<1x1x128xf32>
    %393 = vector.shape_cast %392 : vector<1x1x128xf32> to vector<1x128xf32>
    %394 = vector.broadcast %393 : vector<1x128xf32> to vector<8x128xf32>
    %395 = arith.addf %391, %394 : vector<8x128xf32>
    %c1_268 = arith.constant 1 : index
    %c0_269 = arith.constant 0 : index
    %c0_270 = arith.constant 0 : index
    %396 = vector.load %arg21[%c1_268, %c0_269, %c0_270] : memref<2x32x128xf32, #tpu.memory_space<vmem>>, vector<1x32x128xf32>
    %397 = vector.shape_cast %396 : vector<1x32x128xf32> to vector<32x128xf32>
    %cst_271 = arith.constant 0.000000e+00 : f32
    %398 = vector.broadcast %cst_271 : f32 to vector<4x32xf32>
    %cst_272 = arith.constant 0.000000e+00 : f32
    %399 = vector.broadcast %cst_272 : f32 to vector<4x32xf32>
    %400 = vector.extract_strided_slice %395 {offsets = [0, 0], sizes = [4, 128], strides = [1, 1]} : vector<8x128xf32> to vector<4x128xf32>
    %cst_273 = arith.constant dense<0.000000e+00> : vector<4x128xf32>
    %401 = tpu.matmul %398, %397, %cst_273 {dimension_numbers = #tpu.dot_dimension_numbers<[1], [0], [0], [1], [0, 0, 1, 1], [], []>} : vector<4x32xf32>, vector<32x128xf32>, vector<4x128xf32> -> vector<4x128xf32>
    %402 = arith.addf %400, %401 : vector<4x128xf32>
    %403 = arith.negf %402 : vector<4x128xf32>
    %404 = math.exp %403 : vector<4x128xf32>
    %cst_274 = arith.constant 1.000000e+00 : f32
    %405 = vector.broadcast %cst_274 : f32 to vector<4x128xf32>
    %406 = arith.addf %405, %404 : vector<4x128xf32>
    %407 = arith.divf %405, %406 : vector<4x128xf32>
    %408 = math.tanh %402 : vector<4x128xf32>
    %409 = vector.extract_strided_slice %407 {offsets = [0, 0], sizes = [4, 32], strides = [1, 1]} : vector<4x128xf32> to vector<4x32xf32>
    %410 = vector.extract_strided_slice %407 {offsets = [0, 32], sizes = [4, 32], strides = [1, 1]} : vector<4x128xf32> to vector<4x32xf32>
    %411 = vector.extract_strided_slice %408 {offsets = [0, 64], sizes = [4, 32], strides = [1, 1]} : vector<4x128xf32> to vector<4x32xf32>
    %412 = vector.extract_strided_slice %407 {offsets = [0, 96], sizes = [4, 32], strides = [1, 1]} : vector<4x128xf32> to vector<4x32xf32>
    %413 = arith.mulf %410, %399 : vector<4x32xf32>
    %414 = arith.mulf %409, %411 : vector<4x32xf32>
    %415 = arith.addf %413, %414 : vector<4x32xf32>
    %416 = math.tanh %415 : vector<4x32xf32>
    %417 = arith.mulf %412, %416 : vector<4x32xf32>
    %c0_275 = arith.constant 0 : index
    %c0_276 = arith.constant 0 : index
    %418 = vector.load %arg28[%c0_275, %c0_276] : memref<8x32xf32, #tpu.memory_space<vmem>>, vector<4x32xf32>
    tpu.vector_store %arg28[%c0_275, %c0_276], %417 {strides = array<i32>} : memref<8x32xf32, #tpu.memory_space<vmem>>, vector<4x32xf32>,
    %419 = vector.extract_strided_slice %395 {offsets = [4, 0], sizes = [4, 128], strides = [1, 1]} : vector<8x128xf32> to vector<4x128xf32>
    %cst_277 = arith.constant dense<0.000000e+00> : vector<4x128xf32>
    %420 = tpu.matmul %417, %397, %cst_277 {dimension_numbers = #tpu.dot_dimension_numbers<[1], [0], [0], [1], [0, 0, 1, 1], [], []>} : vector<4x32xf32>, vector<32x128xf32>, vector<4x128xf32> -> vector<4x128xf32>
    %421 = arith.addf %419, %420 : vector<4x128xf32>
    %422 = arith.negf %421 : vector<4x128xf32>
    %423 = math.exp %422 : vector<4x128xf32>
    %cst_278 = arith.constant 1.000000e+00 : f32
    %424 = vector.broadcast %cst_278 : f32 to vector<4x128xf32>
    %425 = arith.addf %424, %423 : vector<4x128xf32>
    %426 = arith.divf %424, %425 : vector<4x128xf32>
    %427 = math.tanh %421 : vector<4x128xf32>
    %428 = vector.extract_strided_slice %426 {offsets = [0, 0], sizes = [4, 32], strides = [1, 1]} : vector<4x128xf32> to vector<4x32xf32>
    %429 = vector.extract_strided_slice %426 {offsets = [0, 32], sizes = [4, 32], strides = [1, 1]} : vector<4x128xf32> to vector<4x32xf32>
    %430 = vector.extract_strided_slice %427 {offsets = [0, 64], sizes = [4, 32], strides = [1, 1]} : vector<4x128xf32> to vector<4x32xf32>
    %431 = vector.extract_strided_slice %426 {offsets = [0, 96], sizes = [4, 32], strides = [1, 1]} : vector<4x128xf32> to vector<4x32xf32>
    %432 = arith.mulf %429, %415 : vector<4x32xf32>
    %433 = arith.mulf %428, %430 : vector<4x32xf32>
    %434 = arith.addf %432, %433 : vector<4x32xf32>
    %435 = math.tanh %434 : vector<4x32xf32>
    %436 = arith.mulf %431, %435 : vector<4x32xf32>
    %c4_279 = arith.constant 4 : index
    %c0_280 = arith.constant 0 : index
    %437 = vector.load %arg28[%c4_279, %c0_280] : memref<8x32xf32, #tpu.memory_space<vmem>>, vector<4x32xf32>
    tpu.vector_store %arg28[%c4_279, %c0_280], %436 {strides = array<i32>} : memref<8x32xf32, #tpu.memory_space<vmem>>, vector<4x32xf32>,
    %c0_281 = arith.constant 0 : index
    %c0_282 = arith.constant 0 : index
    %438 = vector.load %arg28[%c0_281, %c0_282] : memref<8x32xf32, #tpu.memory_space<vmem>>, vector<8x32xf32>
    %c0_283 = arith.constant 0 : index
    %c0_284 = arith.constant 0 : index
    %439 = vector.load %arg23[%c0_283, %c0_284] : memref<32x24xf32, #tpu.memory_space<vmem>>, vector<32x24xf32>
    %cst_285 = arith.constant dense<0.000000e+00> : vector<8x24xf32>
    %440 = tpu.matmul %438, %439, %cst_285 {dimension_numbers = #tpu.dot_dimension_numbers<[1], [0], [0], [1], [0, 0, 1, 1], [], []>} : vector<8x32xf32>, vector<32x24xf32>, vector<8x24xf32> -> vector<8x24xf32>
    %c0_286 = arith.constant 0 : index
    %c0_287 = arith.constant 0 : index
    %441 = vector.load %arg24[%c0_286, %c0_287] : memref<1x24xf32, #tpu.memory_space<vmem>>, vector<1x24xf32>
    %442 = vector.broadcast %441 : vector<1x24xf32> to vector<8x24xf32>
    %443 = arith.addf %440, %442 : vector<8x24xf32>
    %cst_288 = arith.constant 0.000000e+00 : f32
    %444 = vector.broadcast %cst_288 : f32 to vector<8x24xf32>
    %445 = arith.maximumf %443, %444 : vector<8x24xf32>
    %c0_289 = arith.constant 0 : index
    %c0_290 = arith.constant 0 : index
    %446 = vector.load %arg25[%c0_289, %c0_290] : memref<24x128xf32, #tpu.memory_space<vmem>>, vector<24x128xf32>
    %cst_291 = arith.constant dense<0.000000e+00> : vector<8x128xf32>
    %447 = tpu.matmul %445, %446, %cst_291 {dimension_numbers = #tpu.dot_dimension_numbers<[1], [0], [0], [1], [0, 0, 1, 1], [], []>} : vector<8x24xf32>, vector<24x128xf32>, vector<8x128xf32> -> vector<8x128xf32>
    %c0_292 = arith.constant 0 : index
    %c0_293 = arith.constant 0 : index
    %448 = vector.load %arg26[%c0_292, %c0_293] : memref<1x128xf32, #tpu.memory_space<vmem>>, vector<1x128xf32>
    %449 = vector.broadcast %448 : vector<1x128xf32> to vector<8x128xf32>
    %450 = arith.addf %447, %449 : vector<8x128xf32>
    %451 = vector.shape_cast %450 : vector<8x128xf32> to vector<2x4x128xf32>
    %c0_294 = arith.constant 0 : index
    %c0_295 = arith.constant 0 : index
    %c0_296 = arith.constant 0 : index
    %452 = vector.load %arg27[%c0_294, %c0_295, %c0_296] : memref<2x4x128xf32, #tpu.memory_space<vmem>>, vector<2x4x128xf32>
    tpu.vector_store %arg27[%c0_294, %c0_295, %c0_296], %451 {strides = array<i32>} : memref<2x4x128xf32, #tpu.memory_space<vmem>>, vector<2x4x128xf32>,
    return
  }
}

</mosaic_0001>

<bundles_post_ra>
// kernel: dependency_model_forward.1
= control target key start
LH: loop header
LB: loop body
LE: loop exit
PB: predicated region body
PF: predicated region fallthrough
CT: control target
= control target key end

     0   :  { %vm152_vm0 = vcmask 130048   ;;  %v17165_v15 = vmov 0.0   ;;  %vm14559_vm1 = vmmov 0   ;;  %v98_v16 = vlaneseq  ;;  %s17123_s2 = inlined_call_operand.vmem [shape: f32[2,2,16,8], index: 2, kind: input, shape index: {}]   ;;  %s17124_s3 = inlined_call_operand.vmem [shape: f32[2,2,16,8], index: 3, kind: input, shape index: {}]   ;;  %s17125_s0 = inlined_call_operand.vmem [shape: f32[48,16], index: 0, kind: input, shape index: {}]   ;;  %s17126_s4 = inlined_call_operand.vmem [shape: f32[2,2,16,8], index: 4, kind: input, shape index: {}]   ;;  %s17127_s5 = inlined_call_operand.vmem [shape: f32[2,2,1,8], index: 5, kind: input, shape index: {}]   ;;  %s17128_s6 = inlined_call_operand.vmem [shape: f32[2,2,1,8], index: 6, kind: input, shape index: {}]   ;;  %s17129_s7 = inlined_call_operand.vmem [shape: f32[2,2,1,8], index: 7, kind: input, shape index: {}]   ;;  %s17130_s1 = inlined_call_operand.vmem [shape: f32[8,6], index: 1, kind: input, shape index: {}]   ;;  %s17131_s8 = inlined_call_operand.vmem [shape: f32[2,2,8,16], index: 8, kind: input, shape index: {}]   ;;  %s17132_s9 = inlined_call_operand.vmem [shape: f32[2,1,16], index: 9, kind: input, shape index: {}]   ;;  %s17133_s12 = inlined_call_operand.vmem [shape: f32[2,16,32], index: 12, kind: input, shape index: {}]   ;;  %s17134_s14 = inlined_call_operand.vmem [shape: f32[2,32,16], index: 14, kind: input, shape index: {}]   ;;  %s17135_s10 = inlined_call_operand.vmem [shape: f32[2,1,16], index: 10, kind: input, shape index: {}]   ;;  %s17136_s11 = inlined_call_operand.vmem [shape: f32[2,1,16], index: 11, kind: input, shape index: {}]   ;;  %s17137_s13 = inlined_call_operand.vmem [shape: f32[2,1,32], index: 13, kind: input, shape index: {}]   ;;  %s17138_s15 = inlined_call_operand.vmem [shape: f32[2,1,16], index: 15, kind: input, shape index: {}]   ;;  %s17139_s16 = inlined_call_operand.vmem [shape: f32[2,1,16], index: 16, kind: input, shape index: {}]   ;;  %s17140_s17 = inlined_call_operand.vmem [shape: f32[2,1,16], index: 17, kind: input, shape index: {}]   ;;  %s17141_s18 = inlined_call_operand.vmem [shape: f32[16,32], index: 18, kind: input, shape index: {}]   ;;  %s17142_s20 = inlined_call_operand.vmem [shape: f32[2,32,128], index: 20, kind: input, shape index: {}]   ;;  %s17143_s21 = inlined_call_operand.vmem [shape: f32[2,32,128], index: 21, kind: input, shape index: {}]   ;;  %s17144_s19 = inlined_call_operand.vmem [shape: f32[1,32], index: 19, kind: input, shape index: {}]   ;;  %s17145_s22 = inlined_call_operand.vmem [shape: f32[2,1,128], index: 22, kind: input, shape index: {}]   ;;  %s17146_s23 = inlined_call_operand.vmem [shape: f32[32,24], index: 23, kind: input, shape index: {}]   ;;  %s17147_s25 = inlined_call_operand.vmem [shape: f32[24,128], index: 25, kind: input, shape index: {}]   ;;  %s17148_s24 = inlined_call_operand.vmem [shape: f32[1,24], index: 24, kind: input, shape index: {}]   ;;  %s17149_s26 = inlined_call_operand.vmem [shape: f32[1,128], index: 26, kind: input, shape index: {}]   ;;  %s17150_s27 = inlined_call_operand.vmem [shape: f32[2,4,128], index: 27, kind: output, shape index: {}]  }
   0x1   :  { %17173 = sst [smem:[#allocation8_spill]] %s17123_s2  ;;  %v14560_v17 = vmov 1983009808   ;;  %vm830_vm2 = vcmask 64512   ;;  %vm1812_vm3 = vcmask 1045504   ;;  %vm1703_vm4 = vcmask 46080  }
   0x2   :  { %17174 = sst [smem:[#allocation9_spill]] %s17124_s3  ;;  %v482_v18 = vunpack.c.l.s4 %v14560_v17  ;;  %v14795_v19 = vshrl.u32 %v98_v16, 7  ;;  %vm1808_vm5 = vcmask 48128   ;;  %vm5800_vm6 = vcmask 261120  }
   0x3   :  { %17175 = sst [smem:[#allocation10_spill]] %s17125_s0  ;;  %s17191_s2 = sld [smem:[#allocation9_spill]]  ;;  %vm11985_vm7 = vcmask 1041409   ;;  %vm11987_vm8 = vcmask 1042434   ;;  %vm11989_vm9 = vcmask 1043459   ;;  %vm11991_vm10 = vcmask 1044484  }
   0x4   :  { %17176 = sst [smem:[#allocation11_spill]] %s17126_s4  ;;  %v483_v20 = vunpack.c.0.s8 %v482_v18  ;;  %vm11993_vm11 = vcmask 1045509   ;;  %vm11995_vm12 = vcmask 1046534   ;;  %vm11997_vm13 = vcmask 1047559  }
   0x5   :  { %17177 = sst [smem:[#allocation12_spill]] %s17127_s5  ;;  %vm12263_vm14 = vcmask 257024   ;;  %vm12372_vm15 = vcmask 261124  }
   0x6   :  { %17178 = sst [smem:[#allocation13_spill]] %s17128_s6  ;;  %v14808_v24 = vsub.s32 %v483_v20, %v14795_v19 }
   0x7   :  { %17179 = sst [smem:[#allocation14_spill]] %s17129_s7 }
   0x8   :  { %17180 = sst [smem:[#allocation15_spill]] %s17130_s1  ;;  %s17193_s1 = sld [smem:[#allocation11_spill]] }
   0x9   :  { %17181 = sst [smem:[#allocation16_spill]] %s17131_s8  ;;  %v266_v2 = vld [vmem:[%s17191_s2] sm:$0xff]  ;;  %v267_v4 = vld [vmem:[%s17191_s2 + $0x8] sm:$0xff]  ;;  %s17196_s7 = sld [smem:[#allocation14_spill]] }
   0xa   :  { %17182 = sst [smem:[#allocation17_spill]] %s17132_s9  ;;  %s17190_s8 = sld [smem:[#allocation8_spill]]  ;;  %v14202_v6 = vpack.c.bf16 %v267_v4, %v266_v2 }
   0xb   :  { %17183 = sst [smem:[#allocation18_spill]] %s17133_s12  ;;  %s17194_s9 = sld [smem:[#allocation12_spill]] }
   0xc   :  { %17184 = sst [smem:[#allocation19_spill]] %s17134_s14  ;;  %s17192_s14 = sld [smem:[#allocation10_spill]]  ;;  %14203 = vmatprep.subr.bf16.mxu1 %v14202_v6 }
   0xd   :  { %17185 = sst [smem:[#allocation20_spill]] %s17146_s23  ;;  %14205 = vmatpush3.bf16.msra.mxu1 %v14202_v6  ;;  %s17195_s12 = sld [smem:[#allocation13_spill]] }
   0xe   :  { %17186 = sst [smem:[#allocation21_spill]] %s17147_s25  ;;  %v370_v12 = vld [vmem:[%s17193_s1] sm:$0xff]  ;;  %v371_v13 = vld [vmem:[%s17193_s1 + $0x8] sm:$0xff]  ;;  %13564 = vmatprep.subr.mxu1 %v17165_v15  ;;  %s17197_s5 = sld [smem:[#allocation15_spill]] }
   0xf   :  { %17187 = sst [smem:[#allocation22_spill]] %s17148_s24  ;;  %v14206_v14 = vpack.c.bf16 %v371_v13, %v370_v12  ;;  %s17199_s30 = sld [smem:[#allocation16_spill]] }
  0x10   :  { %17188 = sst [smem:[#allocation23_spill]] %s17149_s26  ;;  %v143_v0 = vld [vmem:[%s17190_s8] sm:$0xff]  ;;  %v144_v1 = vld [vmem:[%s17190_s8 + $0x8] sm:$0xff]  ;;  %s17200_s0 = sld [smem:[#allocation17_spill]] }
  0x11   :  { %17189 = sst [smem:[#allocation24_spill]] %s17150_s27  ;;  %v14198_v3 = vpack.c.bf16 %v144_v1, %v143_v0  ;;  %v14800_v21 = vld [vmem:[%s17194_s9] ss:$0 sm:$0xff]  ;;  %s17201_s28 = sld [smem:[#allocation18_spill]] }
  0x12   :  { %v14720_v5 = vld [vmem:[%s17192_s14] sm:$0xff]  ;;  %v14729_v7 = vld [vmem:[%s17192_s14 + $0x8] sm:$0xff]  ;;  %v14734_v8 = vld [vmem:[%s17192_s14 + $0x10] sm:$0xff]  ;;  %s17202_s26 = sld [smem:[#allocation19_spill]] }
  0x13   :  { %13529 = vmatprep.mubr.msk.f32.mxu0 %vm152_vm0, %v14720_v5  ;;  %13542 = vmatprep.mubr.msk.f32.mxu1 %vm152_vm0, %v14720_v5  ;;  %v14745_v9 = vld [vmem:[%s17192_s14 + $0x18] sm:$0xff]  ;;  %v14752_v10 = vld [vmem:[%s17192_s14 + $0x20] sm:$0xff]  ;;  %v14765_v11 = vld [vmem:[%s17192_s14 + $0x28] sm:$0xff] }
  0x14   :  { %14199 = vmatprep.subr.bf16.mxu0 %v14198_v3  ;;  %13543 = vmatmul.mubr.msk.f32.vlgmr.msra.gmra.mrb[0].mxu1 %vm152_vm0, %v14729_v7  ;;  %v14805_v22 = vld [vmem:[%s17195_s12] ss:$0 sm:$0xff] }
  0x15   :  { %14201 = vmatpush3.bf16.msra.mxu0 %v14198_v3  ;;  %13545 = vmatprep.mubr.msk.f32.mxu1 %vm152_vm0, %v14734_v8 }
  0x16   :  { %14207 = vmatprep.subr.bf16.mxu0 %v14206_v14 }
  0x18   :  { %13530 = vmatmul.mubr.msk.f32.vlgmr.msra.gmra.mrb[0].mxu0 %vm152_vm0, %v14729_v7  ;;  %13546 = vmatmul.mubr.msk.f32.gmra.mrb[2].mxu1 %vm152_vm0, %v14745_v9 }
  0x19   :  { %13532 = vmatprep.mubr.msk.f32.mxu0 %vm152_vm0, %v14734_v8  ;;  %13548 = vmatprep.mubr.msk.f32.mxu1 %vm152_vm0, %v14752_v10 }
  0x1a   :  { %14209 = vmatpush3.bf16.msra.mxu0 %v14206_v14 }
  0x1b   :  { %13589 = vmatprep.subr.mxu0 %v17165_v15 }
  0x1c   :  { %13533 = vmatmul.mubr.msk.f32.gmra.mrb[2].mxu0 %vm152_vm0, %v14745_v9  ;;  %13549 = vmatmul.mubr.msk.f32.gmra.mrb[4].mxu1 %vm152_vm0, %v14765_v11 }
  0x1d   :  { %13535 = vmatprep.mubr.msk.f32.mxu0 %vm152_vm0, %v14752_v10  ;;  %13566 = vmatprep.mubr.msk.f32.mxu1 %vm14559_vm1, %v17165_v15 }
  0x20   :  { %13536 = vmatmul.mubr.msk.f32.gmra.mrb[4].mxu0 %vm152_vm0, %v14765_v11 }
  0x21   :  { %13555 = vmatprep.mubr.msk.f32.mxu0 %vm152_vm0, %v14720_v5 }
  0x24   :  { %13556 = vmatmul.mubr.msk.f32.vlgmr.msra.gmra.mrb[6].mxu0 %vm152_vm0, %v14729_v7 }
  0x25   :  { %13558 = vmatprep.mubr.msk.f32.mxu0 %vm152_vm0, %v14734_v8 }
  0x28   :  { %13559 = vmatmul.mubr.msk.f32.gmra.mrb[8].mxu0 %vm152_vm0, %v14745_v9 }
  0x29   :  { %13561 = vmatprep.mubr.msk.f32.mxu0 %vm152_vm0, %v14752_v10 }
  0x2c   :  { %13562 = vmatmul.mubr.msk.f32.gmra.mrb[10].mxu0 %vm152_vm0, %v14765_v11 }
  0x2d   :  { %13591 = vmatprep.mubr.msk.f32.mxu0 %vm14559_vm1, %v17165_v15 }
  0xe7   :  { %v13544_v26 = vpop.f32.mrb[0].mxu1 }
  0xe8   :  { %v347_v28 = vadd.f32 %v13544_v26, %v14805_v22  ;;  %v341_v30 = vpop.f32.mrb[1].mxu1 }
  0xe9   :  { %v342_v32 = vadd.f32 %v14805_v22, %v341_v30 }
  0xea   :  { %v605_v33 = vcombine.high %v347_v28, %v347_v28  ;;  %v612_v53 = vrot.slane %v347_v28, %v14808_v24 }
  0xeb   :  { %v13531_v23 = vpop.f32.mrb[0].mxu0  ;;  %v588_v37 = vcombine.high %v342_v32, %v342_v32  ;;  %v595_v38 = vrot.slane %v342_v32, %v14808_v24  ;;  %v13547_v39 = vpop.f32.mrb[2].mxu1 }
  0xec   :  { %v243_v25 = vadd.f32 %v13531_v23, %v14800_v21  ;;  %v237_v27 = vpop.f32.mrb[1].mxu0  ;;  %v619_v42 = vrot.slane %v605_v33, %v14808_v24  ;;  %v351_v45 = vpop.f32.mrb[3].mxu1  ;;  %v357_v3 = vadd.f32 %v13547_v39, %v14805_v22  ;;  %v620_v13 = vcombine.high %v612_v53, %v612_v53 }
  0xed   :  { %v238_v29 = vadd.f32 %v14800_v21, %v237_v27  ;;  %v602_v46 = vrot.slane %v588_v37, %v14808_v24  ;;  %v603_v47 = vcombine.high %v595_v38, %v595_v38  ;;  %v352_v4 = vadd.f32 %v14805_v22, %v351_v45 }
  0xee   :  { %v497_v31 = vcombine.high %v243_v25, %v243_v25  ;;  %v504_v48 = vrot.slane %v243_v25, %v14808_v24  ;;  %v621_v49 = vcombine.high %v619_v42, %v619_v42  ;;  %v639_v26 = vcombine.high %v357_v3, %v357_v3 }
  0xef   :  { %v480_v34 = vcombine.high %v238_v29, %v238_v29  ;;  %v487_v35 = vrot.slane %v238_v29, %v14808_v24  ;;  %v13534_v36 = vpop.f32.mrb[2].mxu0  ;;  %v604_v54 = vcombine.high %v602_v46, %v602_v46  ;;  %v814_v55 = vcombine.low %v595_v38, %v603_v47  ;;  %v13550_v56 = vpop.f32.mrb[4].mxu1 }
  0xf0   :  { %v247_v40 = vpop.f32.mrb[3].mxu0  ;;  %v511_v41 = vrot.slane %v497_v31, %v14808_v24  ;;  %v361_v60 = vpop.f32.mrb[5].mxu1  ;;  %v1027_v61 = vcombine.low %v619_v42, %v621_v49  ;;  %v828_v63 = vrot.slane %v602_v46, %v14808_v24  ;;  %v512_v6 = vcombine.high %v504_v48, %v504_v48 }
  0xf1   :  { %v494_v43 = vrot.slane %v480_v34, %v14808_v24  ;;  %v495_v44 = vcombine.high %v487_v35, %v487_v35  ;;  %v821_v62 = vrot.slane %v814_v55, %v14808_v24  ;;  %v14830_v0 = vcombine.low %v604_v54, %v612_v53 }
  0xf2   :  { %v513_v58 = vcombine.high %v511_v41, %v511_v41  ;;  %v253_v14 = vadd.f32 %v13534_v36, %v14800_v21  ;;  %v622_v16 = vcombine.high %v352_v4, %v352_v4  ;;  %v629_v17 = vrot.slane %v352_v4, %v14808_v24 }
  0xf3   :  { %v496_v50 = vcombine.high %v494_v43, %v494_v43  ;;  %v798_v51 = vcombine.low %v487_v35, %v495_v44  ;;  %v14821_v52 = vpop.f32.mrb[4].mxu0  ;;  %v812_v2 = vrot.slane %v494_v43, %v14808_v24  ;;  %v829_v12 = vcombine.low %v821_v62, %v828_v63 }
  0xf4   :  { %v14824_v57 = vpop.f32.mrb[5].mxu0  ;;  %v1011_v18 = vcombine.low %v511_v41, %v513_v58  ;;  %v1034_v20 = vrot.slane %v1027_v61, %v14808_v24  ;;  %v248_v23 = vadd.f32 %v14800_v21, %v247_v40  ;;  %v636_v27 = vrot.slane %v622_v16, %v14808_v24 }
  0xf5   :  { %v14826_v59 = vcombine.low %v496_v50, %v504_v48  ;;  %v805_v1 = vrot.slane %v798_v51, %v14808_v24  ;;  %13565 = vmatpush3.xpose.msk.msra.mxu1 %vm830_vm2, %v829_v12  ;;  %v637_v28 = vcombine.high %v629_v17, %v629_v17  ;;  %v14844_v29 = vrot.slane %v357_v3, %v14808_v24 }
  0xf6   :  { %13569 = vmatprep.subr.mxu1 %v17165_v15  ;;  %v1041_v30 = vrot.slane %v629_v17, %v14808_v24  ;;  %v919_v31 = vrot.slane %v512_v6, %v14808_v24  ;;  %v935_v32 = vrot.slane %v620_v13, %v14808_v24  ;;  %v531_v33 = vcombine.high %v253_v14, %v253_v14 }
  0xf7   :  { %v813_v25 = vcombine.low %v805_v1, %v812_v2  ;;  %v514_v34 = vcombine.high %v248_v23, %v248_v23  ;;  %v14851_v35 = vrot.slane %v253_v14, %v14808_v24  ;;  %v521_v37 = vrot.slane %v248_v23, %v14808_v24 }
  0xf8   :  { %v14853_v36 = vcombine.low %v1034_v20, %v1041_v30  ;;  %v1018_v38 = vrot.slane %v1011_v18, %v14808_v24  ;;  %v912_v39 = vrot.slane %v14826_v59, %v14808_v24  ;;  %v14862_v40 = vrot.slane %v639_v26, %v14808_v24 }
  0xf9   :  { %13567 = vmatmul.mubr.msk.f32.vlgmr.msra.gmra.mrb[6].mxu1 %vm830_vm2, %v813_v25  ;;  %v14864_v41 = vcombine.low %v637_v28, %v636_v27  ;;  %v367_v42 = vadd.f32 %v13550_v56, %v14805_v22  ;;  %v928_v43 = vrot.slane %v14830_v0, %v14808_v24  ;;  %v654_v44 = vcombine.high %v14844_v29, %v14844_v29 }
  0xfa   :  { %13571 = vmatprep.mubr.msk.f32.mxu1 %vm14559_vm1, %v17165_v15  ;;  %v638_v45 = vcombine.high %v636_v27, %v636_v27  ;;  %v1025_v46 = vrot.slane %v521_v37, %v14808_v24  ;;  %v14873_v47 = vrot.slane %v531_v33, %v14808_v24  ;;  %v528_v48 = vrot.slane %v514_v34, %v14808_v24 }
  0xfb   :  { %v673_v49 = vcombine.high %v367_v42, %v367_v42  ;;  %v680_v50 = vrot.slane %v367_v42, %v14808_v24  ;;  %v546_v51 = vcombine.high %v14851_v35, %v14851_v35  ;;  %v529_v53 = vcombine.high %v521_v37, %v521_v37 }
  0xfc   :  { %v14879_v54 = vcombine.low %v1018_v38, %v1025_v46  ;;  %v362_v55 = vadd.f32 %v14805_v22, %v361_v60  ;;  %v1140_v56 = vrot.slane %v14864_v41, %v14808_v24  ;;  %v655_v61 = vcombine.high %v14862_v40, %v14862_v40 }
  0xfd   :  { %v687_v58 = vrot.slane %v673_v49, %v14808_v24  ;;  %v688_v59 = vcombine.high %v680_v50, %v680_v50  ;;  %v1147_v62 = vrot.slane %v638_v45, %v14808_v24  ;;  %v263_v1 = vadd.f32 %v14821_v52, %v14800_v21 }
  0xfe   :  { %v656_v63 = vcombine.high %v362_v55, %v362_v55  ;;  %v663_v0 = vrot.slane %v362_v55, %v14808_v24  ;;  %v530_v2 = vcombine.high %v528_v48, %v528_v48  ;;  %v258_v60 = vadd.f32 %v14800_v21, %v14824_v57 }
  0xff   :  { %v689_v3 = vcombine.high %v687_v58, %v687_v58  ;;  %v1557_v22 = vcombine.low %v688_v59, %v687_v58  ;;  %v1117_v4 = vcombine.low %v529_v53, %v528_v48  ;;  %v1465_v14 = vrot.slane %v680_v50, %v14808_v24 }
 0x100   :  { %v670_v6 = vrot.slane %v656_v63, %v14808_v24  ;;  %v671_v12 = vcombine.high %v663_v0, %v663_v0  ;;  %v1345_v13 = vcombine.low %v655_v61, %v663_v0  ;;  %v565_v16 = vcombine.high %v263_v1, %v263_v1 }
 0x101   :  { %v572_v17 = vrot.slane %v263_v1, %v14808_v24  ;;  %v547_v18 = vcombine.high %v14873_v47, %v14873_v47  ;;  %v548_v25 = vcombine.high %v258_v60, %v258_v60  ;;  %v1564_v21 = vrot.slane %v1557_v22, %v14808_v24 }
 0x102   :  { %v672_v52 = vcombine.high %v670_v6, %v670_v6  ;;  %v1352_v20 = vrot.slane %v1345_v13, %v14808_v24  ;;  %v1359_v23 = vrot.slane %v671_v12, %v14808_v24  ;;  %v1571_v57 = vrot.slane %v689_v3, %v14808_v24 }
 0x103   :  { %v579_v26 = vrot.slane %v565_v16, %v14808_v24  ;;  %v580_v27 = vcombine.high %v572_v17, %v572_v17  ;;  %v555_v33 = vrot.slane %v258_v60, %v14808_v24  ;;  %v562_v34 = vrot.slane %v548_v25, %v14808_v24 }
 0x104   :  { %v1360_v28 = vcombine.low %v1352_v20, %v1359_v23  ;;  %v1451_v30 = vcombine.low %v670_v6, %v672_v52  ;;  %v936_v41 = vcombine.low %v928_v43, %v935_v32  ;;  %v920_v42 = vcombine.low %v912_v39, %v919_v31 }
 0x105   :  { %v581_v37 = vcombine.high %v579_v26, %v579_v26  ;;  %v1541_v38 = vcombine.low %v580_v27, %v579_v26  ;;  %v563_v46 = vcombine.high %v555_v33, %v555_v33  ;;  %v564_v48 = vcombine.high %v562_v34, %v562_v34 }
 0x106   :  { %v1458_v45 = vrot.slane %v1451_v30, %v14808_v24  ;;  %v1329_v49 = vcombine.low %v547_v18, %v555_v33  ;;  %13590 = vmatpush3.xpose.msk.msra.mxu0 %vm830_vm2, %v1360_v28  ;;  %v1449_v50 = vrot.slane %v572_v17, %v14808_v24  ;;  %13570 = vmatpush3.xpose.msk.msra.mxu1 %vm830_vm2, %v936_v41 }
 0x107   :  { %v1548_v53 = vrot.slane %v1541_v38, %v14808_v24  ;;  %v1555_v55 = vrot.slane %v581_v37, %v14808_v24  ;;  %13599 = vmatprep.subr.mxu0 %v17165_v15  ;;  %v1343_v32 = vrot.slane %v563_v46, %v14808_v24  ;;  %v1435_v39 = vcombine.low %v562_v34, %v564_v48 }
 0x108   :  { %v1466_v58 = vcombine.low %v1458_v45, %v1465_v14  ;;  %v1336_v31 = vrot.slane %v1329_v49, %v14808_v24  ;;  %13574 = vmatprep.subr.mxu1 %v17165_v15  ;;  %v1239_v43 = vcombine.low %v14844_v29, %v654_v44  ;;  %v1572_v59 = vcombine.low %v1564_v21, %v1571_v57 }
 0x109   :  { %v1124_v61 = vrot.slane %v1117_v4, %v14808_v24  ;;  %v1131_v63 = vrot.slane %v530_v2, %v14808_v24  ;;  %v1442_v1 = vrot.slane %v1435_v39, %v14808_v24  ;;  %13572 = vmatmul.mubr.msk.f32.vlgmr.msra.gmra.mrb[8].mxu1 %vm830_vm2, %v920_v42  ;;  %v1148_v3 = vcombine.low %v1140_v56, %v1147_v62  ;;  %v13557_v62 = vpop.f32.mrb[6].mxu0 }
 0x10a   :  { %v1344_v0 = vcombine.low %v1336_v31, %v1343_v32  ;;  %13575 = vmatpush3.xpose.msk.msra.mxu1 %vm830_vm2, %v14853_v36  ;;  %13576 = vmatprep.mubr.msk.f32.mxu1 %vm14559_vm1, %v17165_v15  ;;  %v1223_v29 = vcombine.low %v14851_v35, %v546_v51  ;;  %v1556_v44 = vcombine.low %v1548_v53, %v1555_v55  ;;  %v445_v4 = vpop.f32.mrb[7].mxu0 }
 0x10b   :  { %v1450_v22 = vcombine.low %v1442_v1, %v1449_v50  ;;  %13579 = vmatprep.subr.mxu1 %v17165_v15  ;;  %v1246_v2 = vrot.slane %v1239_v43, %v14808_v24  ;;  %v1253_v56 = vrot.slane %v14862_v40, %v14808_v24  ;;  %v1132_v36 = vcombine.low %v1124_v61, %v1131_v63  ;;  %v13560_v14 = vpop.f32.mrb[8].mxu0 }
 0x10c   :  { %13592 = vmatmul.mubr.msk.f32.vlgmr.msra.gmra.mrb[12].mxu0 %vm830_vm2, %v1344_v0  ;;  %v1230_v35 = vrot.slane %v1223_v29, %v14808_v24  ;;  %v1237_v40 = vrot.slane %v14873_v47, %v14808_v24  ;;  %v12867_v47 = vld [vmem:[%s17196_s7] ss:$0 sm:$0xff]  ;;  %v455_v30 = vpop.f32.mrb[9].mxu0 }
 0x10d   :  { %13600 = vmatpush3.xpose.msk.msra.mxu0 %vm830_vm2, %v1572_v59  ;;  %13601 = vmatprep.mubr.msk.f32.mxu0 %vm14559_vm1, %v17165_v15  ;;  %v1254_v51 = vcombine.low %v1246_v2, %v1253_v56  ;;  %v451_v60 = vadd.f32 %v13557_v62, %v12867_v47  ;;  %v446_v6 = vadd.f32 %v12867_v47, %v445_v4  ;;  %v13563_v37 = vpop.f32.mrb[10].mxu0 }
 0x10e   :  { %13577 = vmatmul.mubr.msk.f32.vlgmr.msra.gmra.mrb[10].mxu1 %vm830_vm2, %v14879_v54  ;;  %13609 = vmatprep.subr.mxu0 %v17165_v15  ;;  %v1238_v54 = vcombine.low %v1230_v35, %v1237_v40  ;;  %v14966_v17 = vadd.f32 %v13560_v14, %v12867_v47  ;;  %v14976_v34 = vadd.f32 %v12867_v47, %v455_v30  ;;  %v465_v42 = vpop.f32.mrb[11].mxu0 }
 0x10f   :  { %13580 = vmatpush3.xpose.msk.msra.mxu1 %vm830_vm2, %v1148_v3  ;;  %13581 = vmatprep.mubr.msk.f32.mxu1 %vm14559_vm1, %v17165_v15  ;;  %v713_v12 = vcombine.high %v451_v60, %v451_v60  ;;  %v696_v13 = vcombine.high %v446_v6, %v446_v6  ;;  %v720_v18 = vrot.slane %v451_v60, %v14808_v24 }
 0x110   :  { %13584 = vmatprep.subr.mxu1 %v17165_v15  ;;  %13602 = vmatmul.mubr.msk.f32.vlgmr.msra.gmra.mrb[14].mxu0 %vm830_vm2, %v1556_v44  ;;  %v703_v20 = vrot.slane %v446_v6, %v14808_v24  ;;  %v747_v57 = vcombine.high %v14966_v17, %v14966_v17  ;;  %v14978_v41 = vadd.f32 %v13563_v37, %v12867_v47  ;;  %v92_v6 = vld [vmem:[%s17197_s5] sm:$0xff] }
 0x111   :  { %13611 = vmatprep.mubr.msk.f32.mxu0 %vm14559_vm1, %v17165_v15  ;;  %v727_v16 = vrot.slane %v713_v12, %v14808_v24  ;;  %v710_v52 = vrot.slane %v696_v13, %v14808_v24  ;;  %v728_v38 = vcombine.high %v720_v18, %v720_v18  ;;  %v14982_v45 = vrot.slane %v14976_v34, %v14808_v24 }
 0x112   :  { %13582 = vmatmul.mubr.msk.f32.vlgmr.msra.gmra.mrb[12].mxu1 %vm830_vm2, %v1132_v36  ;;  %v711_v26 = vcombine.high %v703_v20, %v703_v20  ;;  %v14974_v28 = vrot.slane %v747_v57, %v14808_v24  ;;  %v466_v48 = vadd.f32 %v12867_v47, %v465_v42  ;;  %v14998_v59 = vrot.slane %v14978_v41, %v14808_v24 }
 0x113   :  { %13585 = vmatpush3.xpose.msk.msra.mxu1 %vm830_vm2, %v1254_v51  ;;  %13586 = vmatprep.mubr.msk.f32.mxu1 %vm14559_vm1, %v17165_v15  ;;  %v712_v23 = vcombine.high %v710_v52, %v710_v52  ;;  %v729_v25 = vcombine.high %v727_v16, %v727_v16  ;;  %v1806_v53 = vrot.slane %v710_v52, %v14808_v24  ;;  %v14561_v51 = vmov 1966171168  }
 0x114   :  { %13594 = vmatprep.subr.mxu1 %v17165_v15  ;;  %v1792_v33 = vcombine.low %v703_v20, %v711_v26  ;;  %v763_v49 = vcombine.high %v14974_v28, %v14974_v28  ;;  %v1990_v55 = vrot.slane %v14982_v45, %v14808_v24  ;;  %v1899_v31 = vrot.slane %v728_v38, %v14808_v24 }
 0x115   :  { %v1885_v21 = vcombine.low %v712_v23, %v720_v18  ;;  %v1976_v27 = vcombine.low %v727_v16, %v729_v25  ;;  %v771_v32 = vrot.slane %v466_v48, %v14808_v24  ;;  %v94_v12 = vcombine.high %v92_v6, %v92_v6 }
 0x116   :  { %13587 = vmatmul.mubr.msk.f32.vlgmr.msra.gmra.mrb[14].mxu1 %vm830_vm2, %v1238_v54  ;;  %v1799_v50 = vrot.slane %v1792_v33, %v14808_v24  ;;  %v96_v54 = vunpack.c.l.s4 %v14561_v51  ;;  %v15019_v20 = vsub.s32 0, %v14795_v19 }
 0x117   :  { %13595 = vmatpush3.xpose.msk.msra.mxu1 %vm830_vm2, %v1466_v58  ;;  %13596 = vmatprep.mubr.msk.f32.mxu1 %vm14559_vm1, %v17165_v15  ;;  %v1983_v46 = vrot.slane %v1976_v27, %v14808_v24  ;;  %v764_v58 = vcombine.high %v466_v48, %v466_v48  ;;  %v1892_v39 = vrot.slane %v1885_v21, %v14808_v24 }
 0x118   :  { %13604 = vmatprep.subr.mxu1 %v17165_v15  ;;  %v779_v63 = vcombine.high %v771_v32, %v771_v32  ;;  %v2249_v0 = vcombine.low %v763_v49, %v771_v32  ;;  %v1807_v1 = vcombine.low %v1799_v50, %v1806_v53  ;;  %v97_v62 = vunpack.c.0.s8 %v96_v54  ;;  %17198 = vst [vmem:[#allocation3_spill] sm:$0xff] %v15019_v20 }
 0x119   :  { %v14994_v43 = vcombine.low %v1983_v46, %v1990_v55  ;;  %v778_v61 = vrot.slane %v764_v58, %v14808_v24  ;;  %v1900_v56 = vcombine.low %v1892_v39, %v1899_v31 }
 0x11a   :  { %13597 = vmatmul.mubr.msk.f32.vlgmr.msra.gmra.mrb[16].mxu1 %vm830_vm2, %v1450_v22  ;;  %v2256_v29 = vrot.slane %v2249_v0, %v14808_v24  ;;  %v2263_v44 = vrot.slane %v779_v63, %v14808_v24  ;;  %v2354_v22 = vrot.slane %v14998_v59, %v14808_v24  ;;  %v100_v4 = vsub.s32 %v97_v62, %v14795_v19 }
 0x11b   :  { %13606 = vmatprep.mubr.msk.f32.mxu1 %vm14559_vm1, %v17165_v15  ;;  %v780_v3 = vcombine.high %v778_v61, %v778_v61  ;;  %13605 = vmatpush3.msk.msra.mxu1 %vm1812_vm3, %v1807_v1 }
 0x11c   :  { %v15005_v36 = vcombine.low %v2256_v29, %v2263_v44  ;;  %13610 = vmatpush3.msk.msra.mxu0 %vm1812_vm3, %v1900_v56  ;;  %13614 = vmatprep.subr.mxu1 %v17165_v15  ;;  %v101_v13 = vrot.slane %v92_v6, %v100_v4  ;;  %v108_v16 = vrot.slane %v94_v12, %v100_v4 }
 0x11d   :  { %v2340_v2 = vcombine.low %v778_v61, %v780_v3  ;;  %13619 = vmatprep.subr.mxu0 %v17165_v15 }
 0x11e   :  { %v109_v14 = vcombine.high %v101_v13, %v101_v13  ;;  %v110_v52 = vcombine.high %v108_v16, %v108_v16  ;;  %v117_v23 = vrot.slane %v101_v13, %v100_v4  ;;  %v124_v29 = vrot.slane %v108_v16, %v100_v4 }
 0x11f   :  { %v2347_v35 = vrot.slane %v2340_v2, %v14808_v24 }
 0x120   :  { %v131_v18 = vrot.slane %v109_v14, %v100_v4  ;;  %v138_v21 = vrot.slane %v110_v52, %v100_v4  ;;  %v15025_v33 = vrot.slane %v117_v23, %v15019_v20  ;;  %v139_v31 = vcombine.high %v117_v23, %v117_v23 }
 0x121   :  { %v15012_v40 = vcombine.low %v2347_v35, %v2354_v22  ;;  %v140_v14 = vcombine.high %v124_v29, %v124_v29 }
 0x122   :  { %v15022_v25 = vrot.slane %v131_v18, %v15019_v20  ;;  %v141_v38 = vcombine.high %v131_v18, %v131_v18  ;;  %v15029_v19 = vrot.slane %v138_v21, %v15019_v20  ;;  %v142_v49 = vcombine.high %v138_v21, %v138_v21 }
 0x123   :  { %v15042_v35 = vrot.slane %v139_v31, %v15019_v20 }
 0x124   :  { %v15035_v0 = vrot.slane %v141_v38, %v15019_v20  ;;  %v15038_v1 = vrot.slane %v142_v49, %v15019_v20 }
 0x1cc   :  { %v901_v47 = vpop.f32.mrb[6].mxu1 }
 0x1cd   :  { %v13568_v60 = vpop.f32.mrb[7].mxu1  ;;  %v1647_v26 = vmul.f32 0.35355338, %v901_v47 }
 0x1ce   :  { %v15048_v60 = vrot.slane %v124_v29, %v15019_v20 }
 0x1cf   :  { %v1695_v58 = vadd.f32 %v15025_v33, %v1647_v26  ;;  %v15056_v26 = vrot.slane %v140_v14, %v15019_v20 }
 0x1d1   :  { %v1704_v56 = vsel %vm1703_vm4, %v1695_v58, -inf }
 0x1dc   :  { %v1007_v57 = vpop.f32.mrb[8].mxu1 }
 0x1dd   :  { %v1648_v27 = vmul.f32 0.35355338, %v1007_v57  ;;  %v13573_v30 = vpop.f32.mrb[9].mxu1 }
 0x1df   :  { %v1431_v37 = vpop.f32.mrb[12].mxu0  ;;  %v1696_v42 = vadd.f32 %v15022_v25, %v1648_v27 }
 0x1e0   :  { %v1652_v46 = vmul.f32 0.35355338, %v1431_v37  ;;  %v13593_v48 = vpop.f32.mrb[13].mxu0 }
 0x1e1   :  { %v1113_v50 = vpop.f32.mrb[10].mxu1  ;;  %v1707_v55 = vsel %vm1703_vm4, %v1696_v42, -inf }
 0x1e2   :  { %v13578_v53 = vpop.f32.mrb[11].mxu1  ;;  %1708 = vmax.xlane.f32.xlu0 %v1707_v55  ;;  %v1700_v63 = vadd.f32 %v15029_v19, %v1652_v46  ;;  %v1649_v44 = vmul.f32 0.35355338, %v1113_v50 }
 0x1e3   :  { %v1643_v32 = vpop.f32.mrb[14].mxu0 }
 0x1e4   :  { %v1654_v39 = vmul.f32 0.35355338, %v1643_v32  ;;  %v13603_v61 = vpop.f32.mrb[15].mxu0  ;;  %v1719_v51 = vsel %vm1703_vm4, %v1700_v63, -inf  ;;  %v1697_v13 = vadd.f32 %v15042_v35, %v1649_v44 }
 0x1e5   :  { %v1219_v3 = vpop.f32.mrb[12].mxu1 }
 0x1e6   :  { %v1650_v22 = vmul.f32 0.35355338, %v1219_v3  ;;  %v13583_v2 = vpop.f32.mrb[13].mxu1  ;;  %1705 = vmax.xlane.f32.xlu0 %v1704_v56  ;;  %v1702_v47 = vadd.f32 %v15038_v1, %v1654_v39  ;;  %v1710_v21 = vsel %vm1703_vm4, %v1697_v13, -inf }
 0x1e8   :  { %v1698_v54 = vadd.f32 %v15035_v0, %v1650_v22  ;;  %v1725_v16 = vsel %vm1703_vm4, %v1702_v47, -inf }
 0x1e9   :  { %v1325_v62 = vpop.f32.mrb[14].mxu1 }
 0x1ea   :  { %v1651_v4 = vmul.f32 0.35355338, %v1325_v62  ;;  %v13588_v6 = vpop.f32.mrb[15].mxu1  ;;  %v1713_v12 = vsel %vm1703_vm4, %v1698_v54, -inf  ;;  %1720 = vmax.xlane.f32.xlu0 %v1719_v51 }
 0x1eb   :  { %1714 = vmax.xlane.f32.xlu1 %v1713_v12 }
 0x1ec   :  { %v1699_v57 = vadd.f32 %v15048_v60, %v1651_v4 }
 0x1ed   :  { %v1537_v18 = vpop.f32.mrb[16].mxu1 }
 0x1ee   :  { %v1653_v52 = vmul.f32 0.35355338, %v1537_v18  ;;  %v13598_v23 = vpop.f32.mrb[17].mxu1  ;;  %1726 = vmax.xlane.f32.xlu0 %v1725_v16  ;;  %v1716_v27 = vsel %vm1703_vm4, %v1699_v57, -inf }
 0x1ef   :  { %1711 = vmax.xlane.f32.xlu1 %v1710_v21 }
 0x1f0   :  { %v1701_v30 = vadd.f32 %v15056_v26, %v1653_v52 }
 0x1f2   :  { %v1722_v37 = vsel %vm1703_vm4, %v1701_v30, -inf }
 0x1f3   :  { %1717 = vmax.xlane.f32.xlu1 %v1716_v27 }
 0x1f7   :  { %1723 = vmax.xlane.f32.xlu1 %v1722_v37 }
 0x26f   :  { %v1709_v38 = vpop.xlane.xlu0 %1708 }
 0x270   :  { %v1729_v46 = vsub.f32 %v1696_v42, %v1709_v38 }
 0x272   :  { %v1738_v48 = vmul.f32 1.442695, %v1729_v46 }
 0x273   :  { %v1706_v49 = vpop.xlane.xlu0 %1705 }
 0x274   :  { %14338 = vpow2.f32 %v1738_v48  ;;  %v1728_v50 = vsub.f32 %v1695_v58, %v1706_v49  ;;  %v730_v48 = vcombine.high %v14976_v34, %v14976_v34 }
 0x276   :  { %v1736_v53 = vmul.f32 1.442695, %v1728_v50  ;;  %v744_v50 = vrot.slane %v730_v48, %v14808_v24 }
 0x277   :  { %v1721_v55 = vpop.xlane.xlu0 %1720 }
 0x278   :  { %v1715_v31 = vpop.xlane.xlu1 %1714  ;;  %14340 = vpow2.f32 %v1736_v53  ;;  %v1733_v32 = vsub.f32 %v1700_v63, %v1721_v55  ;;  %v745_v53 = vcombine.high %v14982_v45, %v14982_v45 }
 0x279   :  { %v1731_v39 = vsub.f32 %v1698_v54, %v1715_v31  ;;  %v746_v31 = vcombine.high %v744_v50, %v744_v50 }
 0x27a   :  { %v1746_v3 = vmul.f32 1.442695, %v1733_v32  ;;  %v2067_v32 = vcombine.low %v745_v53, %v744_v50  ;;  %v12906_v50 = vld [vmem:[%s17190_s8 + $0x10] sm:$0xff]  ;;  %v12907_v53 = vld [vmem:[%s17190_s8 + $0x18] sm:$0xff] }
 0x27b   :  { %v1742_v61 = vmul.f32 1.442695, %v1731_v39  ;;  %v1727_v29 = vpop.xlane.xlu0 %1726 }
 0x27c   :  { %v1712_v44 = vpop.xlane.xlu1 %1711  ;;  %v1735_v22 = vsub.f32 %v1702_v47, %v1727_v29  ;;  %v2074_v39 = vrot.slane %v2067_v32, %v14808_v24  ;;  %v781_v29 = vcombine.high %v14978_v41, %v14978_v41  ;;  %v14210_v32 = vpack.c.bf16 %v12907_v53, %v12906_v50 }
 0x27d   :  { %v1730_v2 = vsub.f32 %v1697_v13, %v1712_v44  ;;  %14342 = vpow2.f32 %v1742_v61  ;;  %v2081_v61 = vrot.slane %v746_v31, %v14808_v24  ;;  %v754_v44 = vrot.slane %v14966_v17, %v14808_v24 }
 0x27e   :  { %v14339_v56 = vpop.eup %14338  ;;  %14344 = vpow2.f32 %v1746_v3  ;;  %v1750_v42 = vmul.f32 1.442695, %v1735_v22 }
 0x27f   :  { %v1740_v51 = vmul.f32 1.442695, %v1730_v2  ;;  %v1755_v58 = vsel %vm1703_vm4, %v14339_v56, 0.0  ;;  %v2082_v22 = vcombine.low %v2074_v39, %v2081_v61  ;;  %v762_v41 = vcombine.high %v754_v44, %v754_v44 }
 0x280   :  { %v1718_v62 = vpop.xlane.xlu1 %1717  ;;  %1756 = vadd.xlane.f32.xlu0 %v1755_v58 }
 0x281   :  { %v1732_v4 = vsub.f32 %v1699_v57, %v1718_v62  ;;  %14346 = vpow2.f32 %v1740_v51  ;;  %v796_v62 = vcombine.high %v14998_v59, %v14998_v59  ;;  %v2158_v59 = vcombine.low %v754_v44, %v762_v41 }
 0x282   :  { %v14341_v6 = vpop.eup %14340  ;;  %14348 = vpow2.f32 %v1750_v42  ;;  %v795_v42 = vrot.slane %v781_v29, %v14808_v24 }
 0x283   :  { %v1744_v63 = vmul.f32 1.442695, %v1732_v4  ;;  %v1752_v12 = vsel %vm1703_vm4, %v14341_v6, 0.0 }
 0x284   :  { %v1724_v54 = vpop.xlane.xlu1 %1723  ;;  %1753 = vadd.xlane.f32.xlu1 %v1752_v12 }
 0x285   :  { %14350 = vpow2.f32 %v1744_v63  ;;  %v1734_v47 = vsub.f32 %v1701_v30, %v1724_v54  ;;  %v797_v63 = vcombine.high %v795_v42, %v795_v42  ;;  %v2431_v54 = vcombine.low %v796_v62, %v795_v42 }
 0x287   :  { %v1748_v13 = vmul.f32 1.442695, %v1734_v47  ;;  %v15063_v14 = vpop.eup %14342 }
 0x288   :  { %v1761_v16 = vsel %vm1703_vm4, %v15063_v14, 0.0  ;;  %v15067_v18 = vpop.eup %14344 }
 0x289   :  { %14352 = vpow2.f32 %v1748_v13  ;;  %1762 = vadd.xlane.f32.xlu0 %v1761_v16  ;;  %v1767_v23 = vsel %vm1703_vm4, %v15067_v18, 0.0  ;;  %v2438_v13 = vrot.slane %v2431_v54, %v14808_v24  ;;  %v2445_v16 = vrot.slane %v797_v63, %v14808_v24 }
 0x28b   :  { %v15069_v52 = vpop.eup %14346 }
 0x28c   :  { %v1758_v21 = vsel %vm1703_vm4, %v15069_v52, 0.0  ;;  %v15075_v57 = vpop.eup %14348 }
 0x28d   :  { %1768 = vadd.xlane.f32.xlu0 %v1767_v23  ;;  %1759 = vadd.xlane.f32.xlu1 %v1758_v21  ;;  %v1773_v37 = vsel %vm1703_vm4, %v15075_v57, 0.0  ;;  %v2165_v23 = vrot.slane %v2158_v59, %v14808_v24  ;;  %v2172_v21 = vrot.slane %v14974_v28, %v14808_v24 }
 0x28f   :  { %v15077_v27 = vpop.eup %14350 }
 0x290   :  { %v1764_v30 = vsel %vm1703_vm4, %v15077_v27, 0.0 }
 0x291   :  { %1774 = vadd.xlane.f32.xlu0 %v1773_v37  ;;  %1765 = vadd.xlane.f32.xlu1 %v1764_v30  ;;  %v12917_v30 = vld [vmem:[%s17191_s2 + $0x18] sm:$0xff] }
 0x293   :  { %v15083_v38 = vpop.eup %14352 }
 0x294   :  { %v1770_v46 = vsel %vm1703_vm4, %v15083_v38, 0.0 }
 0x295   :  { %1771 = vadd.xlane.f32.xlu1 %v1770_v46  ;;  %v2446_v46 = vcombine.low %v2438_v13, %v2445_v16 }
 0x30d   :  { %v1757_v49 = vpop.xlane.xlu0 %1756 }
 0x30e   :  { %14354 = vrcp.f32 %v1757_v49 }
 0x311   :  { %v1754_v55 = vpop.xlane.xlu1 %1753 }
 0x312   :  { %14356 = vrcp.f32 %v1754_v55 }
 0x316   :  { %v1763_v3 = vpop.xlane.xlu0 %1762 }
 0x317   :  { %14358 = vrcp.f32 %v1763_v3 }
 0x318   :  { %v14355_v34 = vpop.eup %14354 }
 0x319   :  { %v1779_v45 = vmul.f32 %v14355_v34, %v14339_v56 }
 0x31a   :  { %v1769_v2 = vpop.xlane.xlu0 %1768  ;;  %v1760_v51 = vpop.xlane.xlu1 %1759 }
 0x31b   :  { %14360 = vrcp.f32 %v1769_v2  ;;  %13612 = vmatmul.mubr.msk.f32.vlgmr.msra.gmra.mrb[16].mxu0 %vm1808_vm5, %v1779_v45 }
 0x31c   :  { %v14357_v58 = vpop.eup %14356  ;;  %14362 = vrcp.f32 %v1760_v51  ;;  %13620 = vmatpush3.msk.msra.mxu0 %vm1812_vm3, %v2082_v22  ;;  %13621 = vmatprep.mubr.msk.f32.mxu0 %vm14559_vm1, %v17165_v15 }
 0x31d   :  { %v1777_v17 = vmul.f32 %v14357_v58, %v14341_v6  ;;  %13629 = vmatprep.subr.mxu0 %v17165_v15 }
 0x31e   :  { %v1775_v56 = vpop.xlane.xlu0 %1774  ;;  %v1766_v4 = vpop.xlane.xlu1 %1765 }
 0x31f   :  { %14364 = vrcp.f32 %v1775_v56  ;;  %13607 = vmatmul.mubr.msk.f32.vlgmr.msra.gmra.mrb[18].mxu1 %vm1808_vm5, %v1777_v17 }
 0x320   :  { %14366 = vrcp.f32 %v1766_v4  ;;  %13615 = vmatpush3.msk.msra.mxu1 %vm1812_vm3, %v14994_v43  ;;  %13616 = vmatprep.mubr.msk.f32.mxu1 %vm14559_vm1, %v17165_v15 }
 0x321   :  { %v14359_v12 = vpop.eup %14358  ;;  %13624 = vmatprep.subr.mxu1 %v17165_v15 }
 0x322   :  { %v1772_v6 = vpop.xlane.xlu1 %1771  ;;  %v1783_v47 = vmul.f32 %v14359_v12, %v15063_v14  ;;  %v12916_v14 = vld [vmem:[%s17191_s2 + $0x10] sm:$0xff] }
 0x323   :  { %14368 = vrcp.f32 %v1772_v6  ;;  %v14214_v49 = vpack.c.bf16 %v12917_v30, %v12916_v14 }
 0x324   :  { %13622 = vmatmul.mubr.msk.f32.vlgmr.msra.gmra.mrb[18].mxu0 %vm1808_vm5, %v1783_v47 }
 0x325   :  { %v14361_v43 = vpop.eup %14360  ;;  %13630 = vmatpush3.msk.msra.mxu0 %vm1812_vm3, %v15005_v36  ;;  %13631 = vmatprep.mubr.msk.f32.mxu0 %vm14559_vm1, %v17165_v15  ;;  %v2173_v36 = vcombine.low %v2165_v23, %v2172_v21 }
 0x326   :  { %v14363_v37 = vpop.eup %14362  ;;  %13639 = vmatprep.subr.mxu0 %v17165_v15  ;;  %v1787_v28 = vmul.f32 %v14361_v43, %v15067_v18 }
 0x327   :  { %v1781_v48 = vmul.f32 %v14363_v37, %v15069_v52 }
 0x328   :  { %13632 = vmatmul.mubr.msk.f32.vlgmr.msra.gmra.mrb[20].mxu0 %vm1808_vm5, %v1787_v28 }
 0x329   :  { %v14365_v55 = vpop.eup %14364  ;;  %13617 = vmatmul.mubr.msk.f32.vlgmr.msra.gmra.mrb[20].mxu1 %vm1808_vm5, %v1781_v48  ;;  %13640 = vmatpush3.msk.msra.mxu0 %vm1812_vm3, %v2446_v46 }
 0x32a   :  { %v14367_v18 = vpop.eup %14366  ;;  %13625 = vmatpush3.msk.msra.mxu1 %vm1812_vm3, %v2173_v36  ;;  %13626 = vmatprep.mubr.msk.f32.mxu1 %vm14559_vm1, %v17165_v15  ;;  %v1791_v52 = vmul.f32 %v14365_v55, %v15075_v57 }
 0x32b   :  { %13634 = vmatprep.subr.mxu1 %v17165_v15  ;;  %13641 = vmatprep.mubr.msk.f32.mxu0 %vm14559_vm1, %v17165_v15  ;;  %v1785_v31 = vmul.f32 %v14367_v18, %v15077_v27  ;;  %v12927_v27 = vld [vmem:[%s17193_s1 + $0x18] sm:$0xff] }
 0x32c   :  { %13642 = vmatmul.mubr.msk.f32.vlgmr.msra.gmra.mrb[22].mxu0 %vm1808_vm5, %v1791_v52  ;;  %14215 = vmatprep.subr.bf16.mxu0 %v14214_v49 }
 0x32d   :  { %v14369_v39 = vpop.eup %14368  ;;  %13627 = vmatmul.mubr.msk.f32.vlgmr.msra.gmra.mrb[22].mxu1 %vm1808_vm5, %v1785_v31  ;;  %14217 = vmatpush3.bf16.msra.mxu0 %v14214_v49 }
 0x32e   :  { %13635 = vmatpush3.msk.msra.mxu1 %vm1812_vm3, %v15012_v40  ;;  %13636 = vmatprep.mubr.msk.f32.mxu1 %vm14559_vm1, %v17165_v15  ;;  %v1789_v57 = vmul.f32 %v14369_v39, %v15083_v38  ;;  %v14546_v40 = vld [vmem:[%s17192_s14] sm:$0xff]  ;;  %v14551_v38 = vld [vmem:[%s17192_s14 + $0x28] sm:$0xff] }
 0x32f   :  { %13661 = vmatprep.mubr.msk.f32.mxu0 %vm152_vm0, %v14720_v5  ;;  %14211 = vmatprep.subr.bf16.mxu1 %v14210_v32  ;;  %v14547_v5 = vld [vmem:[%s17192_s14 + $0x8] sm:$0xff] }
 0x330   :  { %13662 = vmatmul.mubr.msk.f32.vlgmr.msra.gmra.mrb[24].mxu0 %vm152_vm0, %v14729_v7  ;;  %13683 = vmatprep.subr.mxu0 %v17165_v15  ;;  %v14548_v7 = vld [vmem:[%s17192_s14 + $0x10] sm:$0xff] }
 0x331   :  { %13637 = vmatmul.mubr.msk.f32.vlgmr.msra.gmra.mrb[24].mxu1 %vm1808_vm5, %v1789_v57  ;;  %13664 = vmatprep.mubr.msk.f32.mxu0 %vm152_vm0, %v14734_v8  ;;  %v12926_v8 = vld [vmem:[%s17193_s1 + $0x10] sm:$0xff] }
 0x332   :  { %14213 = vmatpush3.bf16.msra.mxu1 %v14210_v32  ;;  %13648 = vmatprep.mubr.msk.f32.mxu1 %vm152_vm0, %v14546_v40 }
 0x334   :  { %13665 = vmatmul.mubr.msk.f32.gmra.mrb[26].mxu0 %vm152_vm0, %v14745_v9 }
 0x335   :  { %13649 = vmatmul.mubr.msk.f32.vlgmr.msra.gmra.mrb[26].mxu1 %vm152_vm0, %v14547_v5  ;;  %13667 = vmatprep.mubr.msk.f32.mxu0 %vm152_vm0, %v14752_v10 }
 0x336   :  { %13651 = vmatprep.mubr.msk.f32.mxu1 %vm152_vm0, %v14548_v7 }
 0x338   :  { %13668 = vmatmul.mubr.msk.f32.gmra.mrb[28].mxu0 %vm152_vm0, %v14765_v11 }
 0x339   :  { %13652 = vmatmul.mubr.msk.f32.gmra.mrb[28].mxu1 %vm152_vm0, %v14745_v9  ;;  %13685 = vmatprep.mubr.msk.f32.mxu0 %vm14559_vm1, %v17165_v15  ;;  %v14218_v9 = vpack.c.bf16 %v12927_v27, %v12926_v8 }
 0x33a   :  { %13654 = vmatprep.mubr.msk.f32.mxu1 %vm152_vm0, %v14752_v10  ;;  %v14549_v10 = vld [vmem:[%s17192_s14 + $0x18] sm:$0xff] }
 0x33b   :  { %14219 = vmatprep.subr.bf16.mxu1 %v14218_v9 }
 0x33c   :  { %14221 = vmatpush3.bf16.msra.mxu1 %v14218_v9 }
 0x33d   :  { %13655 = vmatmul.mubr.msk.f32.gmra.mrb[30].mxu1 %vm152_vm0, %v14765_v11  ;;  %13698 = vmatprep.subr.mxu1 %v17165_v15  ;;  %v14550_v11 = vld [vmem:[%s17192_s14 + $0x20] sm:$0xff] }
 0x33e   :  { %13674 = vmatprep.mubr.msk.f32.mxu1 %vm152_vm0, %v14546_v40  ;;  %v15241_v40 = vld [vmem:[%s17195_s12 + $0x1] ss:$0 sm:$0xff] }
 0x341   :  { %13675 = vmatmul.mubr.msk.f32.vlgmr.msra.gmra.mrb[32].mxu1 %vm152_vm0, %v14547_v5 }
 0x342   :  { %13677 = vmatprep.mubr.msk.f32.mxu1 %vm152_vm0, %v14548_v7 }
 0x345   :  { %13678 = vmatmul.mubr.msk.f32.gmra.mrb[34].mxu1 %vm152_vm0, %v14549_v10 }
 0x346   :  { %13680 = vmatprep.mubr.msk.f32.mxu1 %vm152_vm0, %v14550_v11 }
 0x349   :  { %13681 = vmatmul.mubr.msk.f32.gmra.mrb[36].mxu1 %vm152_vm0, %v14551_v38 }
 0x34a   :  { %13700 = vmatprep.mubr.msk.f32.mxu1 %vm14559_vm1, %v17165_v15 }
 0x3ee   :  { %v1972_v61 = vpop.f32.mrb[16].mxu0 }
 0x3ef   :  { %v13613_v3 = vpop.f32.mrb[17].mxu0  ;;  %v2553_v22 = vrot.slane %v1972_v61, %v14808_v24  ;;  %v2546_v42 = vcombine.high %v1972_v61, %v1972_v61 }
 0x3f1   :  { %v2560_v63 = vrot.slane %v2546_v42, %v14808_v24  ;;  %v2561_v54 = vcombine.high %v2553_v22, %v2553_v22 }
 0x3f2   :  { %v1881_v29 = vpop.f32.mrb[18].mxu1 }
 0x3f3   :  { %v2530_v34 = vcombine.high %v1881_v29, %v1881_v29  ;;  %v2537_v44 = vrot.slane %v1881_v29, %v14808_v24  ;;  %v13608_v45 = vpop.f32.mrb[19].mxu1  ;;  %v5345_v14 = vcombine.low %v2561_v54, %v2560_v63 }
 0x3f5   :  { %v2544_v2 = vrot.slane %v2530_v34, %v14808_v24  ;;  %v2545_v51 = vcombine.high %v2537_v44, %v2537_v44  ;;  %v5353_v9 = vrot.slane %v5345_v14, %v14808_v24 }
 0x3f7   :  { %v5328_v62 = vcombine.low %v2537_v44, %v2545_v51  ;;  %v5329_v58 = vcombine.low %v2544_v2, %v2553_v22  ;;  %v2154_v41 = vpop.f32.mrb[18].mxu0 }
 0x3f8   :  { %v13623_v17 = vpop.f32.mrb[19].mxu0  ;;  %v2578_v59 = vcombine.high %v2154_v41, %v2154_v41  ;;  %v15221_v12 = vrot.slane %v2154_v41, %v14808_v24 }
 0x3f9   :  { %v5336_v56 = vrot.slane %v5328_v62, %v14808_v24  ;;  %v5343_v4 = vrot.slane %v5329_v58, %v14808_v24  ;;  %v15266_v17 = vld [vmem:[%s17194_s9 + $0x1] ss:$0 sm:$0xff] }
 0x3fa   :  { %v2592_v28 = vrot.slane %v2578_v59, %v14808_v24  ;;  %v2593_v46 = vcombine.high %v15221_v12, %v15221_v12 }
 0x3fb   :  { %v2336_v6 = vpop.f32.mrb[20].mxu0  ;;  %v15223_v47 = vcombine.low %v5336_v56, %v5343_v4 }
 0x3fc   :  { %v2063_v13 = vpop.f32.mrb[20].mxu1  ;;  %v13633_v16 = vpop.f32.mrb[21].mxu0  ;;  %v2610_v30 = vcombine.high %v2336_v6, %v2336_v6  ;;  %v15227_v37 = vrot.slane %v2336_v6, %v14808_v24  ;;  %v15250_v10 = vcombine.low %v2593_v46, %v2592_v28 }
 0x3fd   :  { %v2562_v23 = vcombine.high %v2063_v13, %v2063_v13  ;;  %v2569_v21 = vrot.slane %v2063_v13, %v14808_v24  ;;  %v13618_v43 = vpop.f32.mrb[21].mxu1 }
 0x3fe   :  { %v2624_v5 = vrot.slane %v2610_v30, %v14808_v24  ;;  %v2625_v7 = vcombine.high %v15227_v37, %v15227_v37  ;;  %v5377_v56 = vrot.slane %v15250_v10, %v14808_v24 }
 0x3ff   :  { %v2576_v48 = vrot.slane %v2562_v23, %v14808_v24  ;;  %v2577_v36 = vcombine.high %v2569_v21, %v2569_v21  ;;  %v2518_v49 = vpop.f32.mrb[22].mxu0 }
 0x400   :  { %v2245_v50 = vpop.f32.mrb[22].mxu1  ;;  %v2642_v53 = vcombine.high %v2518_v49, %v2518_v49  ;;  %v15234_v55 = vrot.slane %v2518_v49, %v14808_v24  ;;  %v13643_v18 = vpop.f32.mrb[23].mxu0  ;;  %v15258_v42 = vcombine.low %v2625_v7, %v2624_v5 }
 0x401   :  { %v5346_v52 = vcombine.low %v2569_v21, %v2577_v36  ;;  %v5362_v31 = vcombine.low %v2576_v48, %v15221_v12  ;;  %v2594_v32 = vcombine.high %v2245_v50, %v2245_v50  ;;  %v2601_v39 = vrot.slane %v2245_v50, %v14808_v24  ;;  %v13628_v57 = vpop.f32.mrb[23].mxu1 }
 0x402   :  { %v2656_v8 = vrot.slane %v2642_v53, %v14808_v24  ;;  %v2657_v27 = vcombine.high %v15234_v55, %v15234_v55  ;;  %v5404_v46 = vrot.slane %v15258_v42, %v14808_v24 }
 0x403   :  { %v5360_v11 = vrot.slane %v5346_v52, %v14808_v24  ;;  %v2608_v38 = vrot.slane %v2594_v32, %v14808_v24  ;;  %v13663_v61 = vpop.f32.mrb[24].mxu0  ;;  %v2609_v3 = vcombine.high %v2601_v39, %v2601_v39  ;;  %v15280_v28 = vrot.slane %v5362_v31, %v14808_v24 }
 0x404   :  { %v2427_v29 = vpop.f32.mrb[24].mxu1  ;;  %v2848_v34 = vadd.f32 %v13663_v61, %v15241_v40  ;;  %v2842_v44 = vpop.f32.mrb[25].mxu0  ;;  %v15260_v62 = vcombine.low %v2657_v27, %v2656_v8 }
 0x405   :  { %v15255_v45 = vcombine.low %v5353_v9, %v5360_v11  ;;  %v5380_v22 = vcombine.low %v2608_v38, %v15227_v37  ;;  %v2626_v2 = vcombine.high %v2427_v29, %v2427_v29  ;;  %v13638_v51 = vpop.f32.mrb[25].mxu1  ;;  %v2633_v58 = vrot.slane %v2427_v29, %v14808_v24 }
 0x406   :  { %v3108_v41 = vcombine.high %v2848_v34, %v2848_v34  ;;  %v2843_v63 = vadd.f32 %v15241_v40, %v2842_v44  ;;  %v15272_v59 = vcombine.low %v2601_v39, %v2609_v3  ;;  %v3115_v6 = vrot.slane %v2848_v34, %v14808_v24 }
 0x407   :  { %v2640_v4 = vrot.slane %v2626_v2, %v14808_v24  ;;  %v13666_v54 = vpop.f32.mrb[26].mxu0  ;;  %v2641_v12 = vcombine.high %v2633_v58, %v2633_v58  ;;  %v5428_v48 = vrot.slane %v15260_v62, %v14808_v24  ;;  %v15292_v31 = vrot.slane %v5380_v22, %v14808_v24 }
 0x408   :  { %v3122_v13 = vrot.slane %v3108_v41, %v14808_v24  ;;  %v13650_v16 = vpop.f32.mrb[26].mxu1  ;;  %v2852_v23 = vpop.f32.mrb[27].mxu0  ;;  %v3091_v43 = vcombine.high %v2843_v63, %v2843_v63  ;;  %v3098_v14 = vrot.slane %v2843_v63, %v14808_v24  ;;  %v5387_v52 = vrot.slane %v15272_v59, %v14808_v24 }
 0x409   :  { %v5413_v21 = vcombine.low %v2640_v4, %v15234_v55  ;;  %v2742_v30 = vadd.f32 %v13650_v16, %v15266_v17  ;;  %v2736_v37 = vpop.f32.mrb[27].mxu1  ;;  %v2858_v55 = vadd.f32 %v13666_v54, %v15241_v40  ;;  %v3123_v32 = vcombine.high %v3115_v6, %v3115_v6 }
 0x40a   :  { %v2737_v36 = vadd.f32 %v15266_v17, %v2736_v37  ;;  %v3105_v49 = vrot.slane %v3091_v43, %v14808_v24  ;;  %v3106_v50 = vcombine.high %v3098_v14, %v3098_v14  ;;  %v15296_v7 = vcombine.low %v2633_v58, %v2641_v12 }
 0x40b   :  { %v3000_v53 = vcombine.high %v2742_v30, %v2742_v30  ;;  %v13669_v18 = vpop.f32.mrb[28].mxu0  ;;  %v3124_v8 = vcombine.high %v3122_v13, %v3122_v13  ;;  %v3007_v61 = vrot.slane %v2742_v30, %v14808_v24  ;;  %v3149_v2 = vrot.slane %v2858_v55, %v14808_v24 }
 0x40c   :  { %v2983_v39 = vcombine.high %v2737_v36, %v2737_v36  ;;  %v13653_v57 = vpop.f32.mrb[28].mxu1  ;;  %v15294_v5 = vpop.f32.mrb[29].mxu0  ;;  %v3107_v27 = vcombine.high %v3105_v49, %v3105_v49  ;;  %v3317_v9 = vcombine.low %v3098_v14, %v3106_v50  ;;  %v3331_v38 = vrot.slane %v3105_v49, %v14808_v24 }
 0x40d   :  { %v2746_v11 = vpop.f32.mrb[29].mxu1  ;;  %v2990_v3 = vrot.slane %v2737_v36, %v14808_v24  ;;  %v3014_v22 = vrot.slane %v3000_v53, %v14808_v24  ;;  %v15308_v51 = vrot.slane %v3123_v32, %v14808_v24  ;;  %v3142_v4 = vcombine.high %v2858_v55, %v2858_v55 }
 0x40e   :  { %v2997_v29 = vrot.slane %v2983_v39, %v14808_v24  ;;  %v3324_v34 = vrot.slane %v3317_v9, %v14808_v24  ;;  %v15303_v44 = vcombine.low %v3107_v27, %v3115_v6  ;;  %v5411_v54 = vrot.slane %v15296_v7, %v14808_v24 }
 0x40f   :  { %v2998_v58 = vcombine.high %v2990_v3, %v2990_v3  ;;  %v15313_v12 = vrot.slane %v5413_v21, %v14808_v24  ;;  %v3529_v16 = vcombine.low %v3122_v13, %v3124_v8  ;;  %v3157_v37 = vcombine.high %v3149_v2, %v3149_v2 }
 0x410   :  { %v2999_v41 = vcombine.high %v2997_v29, %v2997_v29  ;;  %v13656_v63 = vpop.f32.mrb[30].mxu1  ;;  %v3332_v6 = vcombine.low %v3324_v34, %v3331_v38  ;;  %v2853_v36 = vadd.f32 %v15241_v40, %v2852_v23  ;;  %v3015_v49 = vcombine.high %v3007_v61, %v3007_v61 }
 0x411   :  { %v2756_v43 = vpop.f32.mrb[31].mxu1  ;;  %v3301_v14 = vcombine.low %v2990_v3, %v2998_v58  ;;  %v3016_v50 = vcombine.high %v3014_v22, %v3014_v22  ;;  %v2752_v53 = vadd.f32 %v13653_v57, %v15266_v17  ;;  %v2868_v55 = vadd.f32 %v13669_v18, %v15241_v40 }
 0x412   :  { %v15315_v30 = vcombine.low %v2999_v41, %v3007_v61  ;;  %13684 = vmatpush3.xpose.msk.msra.mxu0 %vm830_vm2, %v3332_v6  ;;  %v3315_v13 = vrot.slane %v2997_v29, %v14808_v24  ;;  %v15324_v32 = vrot.slane %v3142_v4, %v14808_v24  ;;  %v3125_v39 = vcombine.high %v2853_v36, %v2853_v36 }
 0x413   :  { %v3308_v21 = vrot.slane %v3301_v14, %v14808_v24  ;;  %13688 = vmatprep.subr.mxu0 %v17165_v15  ;;  %v3132_v23 = vrot.slane %v2853_v36, %v14808_v24  ;;  %v3536_v8 = vrot.slane %v3529_v16, %v14808_v24  ;;  %v3041_v57 = vrot.slane %v2752_v53, %v14808_v24 }
 0x414   :  { %v3176_v27 = vcombine.high %v2868_v55, %v2868_v55  ;;  %v15330_v9 = vcombine.low %v3149_v2, %v3157_v37  ;;  %v3139_v38 = vrot.slane %v3125_v39, %v14808_v24  ;;  %v15334_v61 = vrot.slane %v2868_v55, %v14808_v24 }
 0x415   :  { %v3316_v18 = vcombine.low %v3308_v21, %v3315_v13  ;;  %v3140_v3 = vcombine.high %v3132_v23, %v3132_v23  ;;  %v3543_v29 = vrot.slane %v3132_v23, %v14808_v24  ;;  %v3034_v34 = vcombine.high %v2752_v53, %v2752_v53 }
 0x416   :  { %v3049_v58 = vcombine.high %v3041_v57, %v3041_v57  ;;  %v3430_v41 = vrot.slane %v15303_v44, %v14808_v24  ;;  %v3421_v4 = vrot.slane %v3015_v49, %v14808_v24  ;;  %v3141_v16 = vcombine.high %v3139_v38, %v3139_v38 }
 0x417   :  { %v3190_v6 = vrot.slane %v3176_v27, %v14808_v24  ;;  %13686 = vmatmul.mubr.msk.f32.vlgmr.msra.gmra.mrb[30].mxu0 %vm830_vm2, %v3316_v18  ;;  %v3513_v2 = vcombine.low %v3014_v22, %v3016_v50  ;;  %v3755_v14 = vrot.slane %v15324_v32, %v14808_v24  ;;  %v15344_v37 = vcombine.low %v3536_v8, %v3543_v29 }
 0x418   :  { %v3635_v36 = vcombine.low %v3140_v3, %v3139_v38  ;;  %13690 = vmatprep.mubr.msk.f32.mxu0 %vm14559_vm1, %v17165_v15  ;;  %v3414_v44 = vrot.slane %v15315_v30, %v14808_v24  ;;  %v3748_v49 = vrot.slane %v15330_v9, %v14808_v24  ;;  %v3649_v53 = vrot.slane %v3141_v16, %v14808_v24 }
 0x419   :  { %v3191_v22 = vcombine.high %v15334_v61, %v15334_v61  ;;  %v15357_v55 = vrot.slane %v3034_v34, %v14808_v24  ;;  %v15359_v21 = vcombine.low %v3041_v57, %v3049_v58  ;;  %v2747_v13 = vadd.f32 %v15266_v17, %v2746_v11 }
 0x41a   :  { %v3642_v50 = vrot.slane %v3635_v36, %v14808_v24  ;;  %v3192_v39 = vcombine.high %v3190_v6, %v3190_v6  ;;  %v3967_v30 = vrot.slane %v15334_v61, %v14808_v24  ;;  %v2863_v23 = vadd.f32 %v15241_v40, %v15294_v5 }
 0x41b   :  { %v3158_v8 = vcombine.high %v15324_v32, %v15324_v32  ;;  %v3017_v18 = vcombine.high %v2747_v13, %v2747_v13  ;;  %v3024_v38 = vrot.slane %v2747_v13, %v14808_v24  ;;  %v3520_v3 = vrot.slane %v3513_v2, %v14808_v24  ;;  %v13676_v32 = vpop.f32.mrb[32].mxu1 }
 0x41c   :  { %v3650_v27 = vcombine.low %v3642_v50, %v3649_v53  ;;  %v4059_v57 = vcombine.low %v3191_v22, %v3190_v6  ;;  %v3159_v29 = vcombine.high %v2863_v23, %v2863_v23  ;;  %v3166_v11 = vrot.slane %v2863_v23, %v14808_v24 }
 0x41d   :  { %v2762_v34 = vadd.f32 %v13656_v63, %v15266_v17  ;;  %v3031_v61 = vrot.slane %v3017_v18, %v14808_v24  ;;  %v3032_v58 = vcombine.high %v3024_v38, %v3024_v38  ;;  %v3527_v40 = vrot.slane %v3024_v38, %v14808_v24 }
 0x41e   :  { %v2757_v5 = vadd.f32 %v15266_v17, %v2756_v43  ;;  %13699 = vmatpush3.xpose.msk.msra.mxu1 %vm830_vm2, %v3650_v27  ;;  %v3173_v16 = vrot.slane %v3159_v29, %v14808_v24  ;;  %v3174_v36 = vcombine.high %v3166_v11, %v3166_v11  ;;  %v3847_v53 = vcombine.low %v3158_v8, %v3166_v11 }
 0x41f   :  { %v3068_v2 = vcombine.high %v2762_v34, %v2762_v34  ;;  %13708 = vmatprep.subr.mxu1 %v17165_v15  ;;  %v3033_v6 = vcombine.high %v3031_v61, %v3031_v61  ;;  %v3528_v22 = vcombine.low %v3520_v3, %v3527_v40  ;;  %v3619_v50 = vcombine.low %v3032_v58, %v3031_v61 }
 0x420   :  { %v3075_v63 = vrot.slane %v2762_v34, %v14808_v24  ;;  %v3175_v13 = vcombine.high %v3173_v16, %v3173_v16  ;;  %v3854_v23 = vrot.slane %v3847_v53, %v14808_v24  ;;  %v3861_v18 = vrot.slane %v3174_v36, %v14808_v24 }
 0x421   :  { %v3082_v17 = vrot.slane %v3068_v2, %v14808_v24  ;;  %v4066_v43 = vrot.slane %v4059_v57, %v14808_v24  ;;  %v3626_v27 = vrot.slane %v3619_v50, %v14808_v24  ;;  %v3633_v8 = vrot.slane %v3033_v6, %v14808_v24 }
 0x422   :  { %v3083_v38 = vcombine.high %v3075_v63, %v3075_v63  ;;  %v3862_v29 = vcombine.low %v3854_v23, %v3861_v18  ;;  %v3953_v11 = vcombine.low %v3173_v16, %v3175_v13  ;;  %v3050_v34 = vcombine.high %v15357_v55, %v15357_v55 }
 0x423   :  { %v3084_v3 = vcombine.high %v3082_v17, %v3082_v17  ;;  %v3634_v61 = vcombine.low %v3626_v27, %v3633_v8  ;;  %v3051_v40 = vcombine.high %v2757_v5, %v2757_v5  ;;  %v3058_v36 = vrot.slane %v2757_v5, %v14808_v24 }
 0x424   :  { %v4043_v58 = vcombine.low %v3083_v38, %v3082_v17  ;;  %v4073_v53 = vrot.slane %v3192_v39, %v14808_v24  ;;  %v3960_v57 = vrot.slane %v3953_v11, %v14808_v24  ;;  %v3438_v2 = vcombine.low %v3430_v41, %v15308_v51 }
 0x425   :  { %v3422_v50 = vcombine.low %v3414_v44, %v3421_v4  ;;  %v4057_v6 = vrot.slane %v3084_v3, %v14808_v24  ;;  %v3065_v16 = vrot.slane %v3051_v40, %v14808_v24  ;;  %v3066_v13 = vcombine.high %v3058_v36, %v3058_v36  ;;  %13701 = vmatmul.mubr.msk.f32.vlgmr.msra.gmra.mrb[38].mxu1 %vm830_vm2, %v3634_v61 }
 0x426   :  { %v3831_v23 = vcombine.low %v3050_v34, %v3058_v36  ;;  %v3968_v18 = vcombine.low %v3960_v57, %v3967_v30  ;;  %13689 = vmatpush3.xpose.msk.msra.mxu0 %vm830_vm2, %v3438_v2  ;;  %13709 = vmatpush3.xpose.msk.msra.mxu1 %vm830_vm2, %v3862_v29  ;;  %v15400_v39 = vcombine.low %v15280_v28, %v5377_v56 }
 0x427   :  { %v15406_v51 = vcombine.low %v5387_v52, %v15292_v31  ;;  %v4050_v41 = vrot.slane %v4043_v58, %v14808_v24  ;;  %v3067_v4 = vcombine.high %v3065_v16, %v3065_v16  ;;  %v3845_v30 = vrot.slane %v3066_v13, %v14808_v24  ;;  %13693 = vmatprep.subr.mxu0 %v17165_v15 }
 0x428   :  { %v3838_v44 = vrot.slane %v3831_v23, %v14808_v24  ;;  %v4074_v5 = vcombine.low %v4066_v43, %v4073_v53  ;;  %13710 = vmatprep.mubr.msk.f32.mxu1 %vm14559_vm1, %v17165_v15  ;;  %13718 = vmatprep.subr.mxu1 %v17165_v15  ;;  %v15421_v10 = vcombine.low %v5404_v46, %v5411_v54 }
 0x429   :  { %v15427_v56 = vcombine.low %v15313_v12, %v5428_v48  ;;  %v3951_v59 = vrot.slane %v3075_v63, %v14808_v24  ;;  %v3937_v52 = vcombine.low %v3065_v16, %v3067_v4  ;;  %13691 = vmatmul.mubr.msk.f32.vlgmr.msra.gmra.mrb[32].mxu0 %vm830_vm2, %v3422_v50  ;;  %v3739_v31 = vrot.slane %v15357_v55, %v14808_v24  ;;  %v12929_v12 = vld [vmem:[%s17196_s7 + $0x1] ss:$0 sm:$0xff] }
 0x42a   :  { %v3846_v28 = vcombine.low %v3838_v44, %v3845_v30  ;;  %13694 = vmatpush3.xpose.msk.msra.mxu0 %vm830_vm2, %v15344_v37  ;;  %13695 = vmatprep.mubr.msk.f32.mxu0 %vm14559_vm1, %v17165_v15  ;;  %v3732_v42 = vrot.slane %v15359_v21, %v14808_v24  ;;  %v4058_v62 = vcombine.low %v4050_v41, %v4057_v6 }
 0x42b   :  { %v3944_v46 = vrot.slane %v3937_v52, %v14808_v24  ;;  %13703 = vmatprep.subr.mxu0 %v17165_v15  ;;  %v3756_v48 = vcombine.low %v3748_v49, %v3755_v14  ;;  %v2954_v9 = vadd.f32 %v13676_v32, %v12929_v12  ;;  %v2948_v14 = vpop.f32.mrb[33].mxu1 }
 0x42c   :  { %13711 = vmatmul.mubr.msk.f32.vlgmr.msra.gmra.mrb[40].mxu1 %vm830_vm2, %v3846_v28  ;;  %v3740_v54 = vcombine.low %v3732_v42, %v3739_v31  ;;  %v2949_v37 = vadd.f32 %v12929_v12, %v2948_v14 }
 0x42d   :  { %13719 = vmatpush3.xpose.msk.msra.mxu1 %vm830_vm2, %v4074_v5  ;;  %13720 = vmatprep.mubr.msk.f32.mxu1 %vm14559_vm1, %v17165_v15  ;;  %v3952_v7 = vcombine.low %v3944_v46, %v3951_v59  ;;  %v3216_v49 = vcombine.high %v2954_v9, %v2954_v9  ;;  %v3223_v27 = vrot.slane %v2954_v9, %v14808_v24 }
 0x42e   :  { %13696 = vmatmul.mubr.msk.f32.vlgmr.msra.gmra.mrb[34].mxu0 %vm830_vm2, %v3528_v22  ;;  %13728 = vmatprep.subr.mxu1 %v17165_v15  ;;  %v3199_v55 = vcombine.high %v2949_v37, %v2949_v37  ;;  %v3206_v21 = vrot.slane %v2949_v37, %v14808_v24  ;;  %v13679_v22 = vpop.f32.mrb[34].mxu1 }
 0x42f   :  { %13704 = vmatpush3.xpose.msk.msra.mxu0 %vm830_vm2, %v3756_v48  ;;  %13705 = vmatprep.mubr.msk.f32.mxu0 %vm14559_vm1, %v17165_v15  ;;  %v3230_v63 = vrot.slane %v3216_v49, %v14808_v24  ;;  %v15473_v17 = vadd.f32 %v13679_v22, %v12929_v12  ;;  %v2958_v43 = vpop.f32.mrb[35].mxu1  ;;  %v3231_v9 = vcombine.high %v3223_v27, %v3223_v27 }
 0x430   :  { %13713 = vmatprep.subr.mxu0 %v17165_v15  ;;  %13721 = vmatmul.mubr.msk.f32.vlgmr.msra.gmra.mrb[42].mxu1 %vm830_vm2, %v4058_v62  ;;  %v3213_v8 = vrot.slane %v3199_v55, %v14808_v24  ;;  %v3214_v38 = vcombine.high %v3206_v21, %v3206_v21  ;;  %v15477_v29 = vadd.f32 %v12929_v12, %v2958_v43  ;;  %v13682_v40 = vpop.f32.mrb[36].mxu1 }
 0x431   :  { %13730 = vmatprep.mubr.msk.f32.mxu1 %vm14559_vm1, %v17165_v15  ;;  %v3232_v11 = vcombine.high %v3230_v63, %v3230_v63  ;;  %v3250_v3 = vcombine.high %v15473_v17, %v15473_v17  ;;  %v2968_v57 = vpop.f32.mrb[37].mxu1  ;;  %v15490_v16 = vadd.f32 %v13682_v40, %v12929_v12  ;;  %v4358_v14 = vrot.slane %v3231_v9, %v14808_v24 }
 0x432   :  { %13706 = vmatmul.mubr.msk.f32.vlgmr.msra.gmra.mrb[36].mxu0 %vm830_vm2, %v3740_v54  ;;  %v3215_v34 = vcombine.high %v3213_v8, %v3213_v8  ;;  %v4253_v61 = vcombine.low %v3206_v21, %v3214_v38  ;;  %v4267_v58 = vrot.slane %v3213_v8, %v14808_v24  ;;  %v15484_v53 = vrot.slane %v15477_v29, %v14808_v24 }
 0x433   :  { %13714 = vmatpush3.xpose.msk.msra.mxu0 %vm830_vm2, %v3968_v18  ;;  %13715 = vmatprep.mubr.msk.f32.mxu0 %vm14559_vm1, %v17165_v15  ;;  %v4435_v36 = vcombine.low %v3230_v63, %v3232_v11  ;;  %v15488_v6 = vrot.slane %v3250_v3, %v14808_v24  ;;  %v2969_v4 = vadd.f32 %v12929_v12, %v2968_v57 }
 0x434   :  { %13723 = vmatprep.subr.mxu0 %v17165_v15  ;;  %v4260_v2 = vrot.slane %v4253_v61, %v14808_v24  ;;  %v4344_v50 = vcombine.low %v3215_v34, %v3223_v27  ;;  %v4449_v18 = vrot.slane %v15484_v53, %v14808_v24  ;;  %v15504_v59 = vrot.slane %v15490_v16, %v14808_v24 }
 0x435   :  { %v4442_v13 = vrot.slane %v4435_v36, %v14808_v24  ;;  %v3266_v44 = vcombine.high %v15488_v6, %v15488_v6  ;;  %v3267_v30 = vcombine.high %v2969_v4, %v2969_v4  ;;  %v3274_v5 = vrot.slane %v2969_v4, %v14808_v24 }
 0x436   :  { %13716 = vmatmul.mubr.msk.f32.vlgmr.msra.gmra.mrb[38].mxu0 %vm830_vm2, %v3952_v7  ;;  %v4268_v23 = vcombine.low %v4260_v2, %v4267_v58  ;;  %v4813_v48 = vrot.slane %v15504_v59, %v14808_v24  ;;  %v4351_v37 = vrot.slane %v4344_v50, %v14808_v24 }
 0x437   :  { %13725 = vmatprep.mubr.msk.f32.mxu0 %vm14559_vm1, %v17165_v15  ;;  %v15495_v41 = vcombine.low %v4442_v13, %v4449_v18  ;;  %v3281_v28 = vrot.slane %v3267_v30, %v14808_v24  ;;  %v3282_v52 = vcombine.high %v3274_v5, %v3274_v5  ;;  %v4708_v31 = vcombine.low %v3266_v44, %v3274_v5 }
 0x438   :  { %13724 = vmatpush3.msk.msra.mxu0 %vm1812_vm3, %v4268_v23  ;;  %v4359_v49 = vcombine.low %v4351_v37, %v4358_v14 }
 0x439   :  { %13733 = vmatprep.subr.mxu0 %v17165_v15  ;;  %v3283_v42 = vcombine.high %v3281_v28, %v3281_v28  ;;  %v4715_v62 = vrot.slane %v4708_v31, %v14808_v24  ;;  %v4722_v46 = vrot.slane %v3282_v52, %v14808_v24 }
 0x43a   :  { %13729 = vmatpush3.msk.msra.mxu1 %vm1812_vm3, %v4359_v49 }
 0x43b   :  { %v15511_v7 = vcombine.low %v4715_v62, %v4722_v46  ;;  %v4799_v54 = vcombine.low %v3281_v28, %v3283_v42  ;;  %13738 = vmatprep.subr.mxu1 %v17165_v15 }
 0x43d   :  { %v4806_v12 = vrot.slane %v4799_v54, %v14808_v24 }
 0x43f   :  { %v15514_v32 = vcombine.low %v4806_v12, %v4813_v48 }
 0x4ea   :  { %v3403_v55 = vpop.f32.mrb[30].mxu0 }
 0x4eb   :  { %v4149_v21 = vmul.f32 0.35355338, %v3403_v55  ;;  %v13687_v22 = vpop.f32.mrb[31].mxu0 }
 0x4ed   :  { %v4157_v63 = vadd.f32 %v4149_v21, %v15025_v33 }
 0x4ef   :  { %v4165_v43 = vsel %vm1703_vm4, %v4157_v63, -inf }
 0x4f0   :  { %4166 = vmax.xlane.f32.xlu0 %v4165_v43 }
 0x4f8   :  { %v3721_v8 = vpop.f32.mrb[38].mxu1 }
 0x4f9   :  { %v13702_v38 = vpop.f32.mrb[39].mxu1  ;;  %v4152_v27 = vmul.f32 0.35355338, %v3721_v8 }
 0x4fb   :  { %v4160_v36 = vadd.f32 %v4152_v27, %v15035_v0 }
 0x4fc   :  { %v3509_v11 = vpop.f32.mrb[32].mxu0 }
 0x4fd   :  { %v4150_v3 = vmul.f32 0.35355338, %v3509_v11  ;;  %v13692_v34 = vpop.f32.mrb[33].mxu0  ;;  %v4174_v44 = vsel %vm1703_vm4, %v4160_v36, -inf }
 0x4ff   :  { %v3933_v61 = vpop.f32.mrb[40].mxu1  ;;  %v4158_v40 = vadd.f32 %v4150_v3, %v15022_v25 }
 0x500   :  { %v13712_v58 = vpop.f32.mrb[41].mxu1  ;;  %v4154_v13 = vmul.f32 0.35355338, %v3933_v61 }
 0x501   :  { %v3615_v57 = vpop.f32.mrb[34].mxu0  ;;  %v4168_v23 = vsel %vm1703_vm4, %v4158_v40, -inf }
 0x502   :  { %v4151_v2 = vmul.f32 0.35355338, %v3615_v57  ;;  %v13697_v50 = vpop.f32.mrb[35].mxu0  ;;  %4169 = vmax.xlane.f32.xlu1 %v4168_v23  ;;  %v4162_v62 = vadd.f32 %v4154_v13, %v15029_v19 }
 0x503   :  { %v4145_v18 = vpop.f32.mrb[42].mxu1 }
 0x504   :  { %v13722_v4 = vpop.f32.mrb[43].mxu1  ;;  %v4159_v30 = vadd.f32 %v4151_v2, %v15042_v35  ;;  %v4156_v52 = vmul.f32 0.35355338, %v4145_v18  ;;  %v4180_v9 = vsel %vm1703_vm4, %v4162_v62, -inf }
 0x505   :  { %v3827_v5 = vpop.f32.mrb[36].mxu0 }
 0x506   :  { %v4153_v28 = vmul.f32 0.35355338, %v3827_v5  ;;  %v13707_v31 = vpop.f32.mrb[37].mxu0  ;;  %v4171_v42 = vsel %vm1703_vm4, %v4159_v30, -inf  ;;  %4175 = vmax.xlane.f32.xlu1 %v4174_v44  ;;  %v4164_v37 = vadd.f32 %v4156_v52, %v15038_v1 }
 0x507   :  { %4172 = vmax.xlane.f32.xlu0 %v4171_v42 }
 0x508   :  { %v4161_v46 = vadd.f32 %v4153_v28, %v15048_v60  ;;  %v4186_v55 = vsel %vm1703_vm4, %v4164_v37, -inf }
 0x509   :  { %v4039_v48 = vpop.f32.mrb[38].mxu0 }
 0x50a   :  { %v4155_v54 = vmul.f32 0.35355338, %v4039_v48  ;;  %v13717_v12 = vpop.f32.mrb[39].mxu0  ;;  %v4177_v14 = vsel %vm1703_vm4, %v4161_v46, -inf  ;;  %4181 = vmax.xlane.f32.xlu1 %v4180_v9 }
 0x50b   :  { %4178 = vmax.xlane.f32.xlu0 %v4177_v14 }
 0x50c   :  { %v4163_v49 = vadd.f32 %v4155_v54, %v15056_v26 }
 0x50e   :  { %v4183_v21 = vsel %vm1703_vm4, %v4163_v49, -inf  ;;  %4187 = vmax.xlane.f32.xlu1 %v4186_v55 }
 0x50f   :  { %4184 = vmax.xlane.f32.xlu0 %v4183_v21 }
 0x57d   :  { %v4167_v22 = vpop.xlane.xlu0 %4166 }
 0x57e   :  { %v4189_v43 = vsub.f32 %v4157_v63, %v4167_v22 }
 0x580   :  { %v4197_v8 = vmul.f32 1.442695, %v4189_v43 }
 0x582   :  { %14370 = vpow2.f32 %v4197_v8 }
 0x58c   :  { %v14371_v38 = vpop.eup %14370 }
 0x58d   :  { %v4213_v27 = vsel %vm1703_vm4, %v14371_v38, 0.0 }
 0x58e   :  { %4214 = vadd.xlane.f32.xlu0 %v4213_v27 }
 0x58f   :  { %v4170_v11 = vpop.xlane.xlu1 %4169 }
 0x590   :  { %v4190_v3 = vsub.f32 %v4158_v40, %v4170_v11 }
 0x592   :  { %v4199_v34 = vmul.f32 1.442695, %v4190_v3  ;;  %v3233_v3 = vcombine.high %v15477_v29, %v15477_v29 }
 0x593   :  { %v4176_v61 = vpop.xlane.xlu1 %4175 }
 0x594   :  { %v4173_v58 = vpop.xlane.xlu0 %4172  ;;  %14372 = vpow2.f32 %v4199_v34  ;;  %v4192_v57 = vsub.f32 %v4160_v36, %v4176_v61  ;;  %v3247_v34 = vrot.slane %v3233_v3, %v14808_v24 }
 0x595   :  { %v4191_v2 = vsub.f32 %v4159_v30, %v4173_v58  ;;  %v3248_v58 = vcombine.high %v15484_v53, %v15484_v53 }
 0x596   :  { %v4203_v50 = vmul.f32 1.442695, %v4192_v57  ;;  %v3249_v57 = vcombine.high %v3247_v34, %v3247_v34 }
 0x597   :  { %v4201_v13 = vmul.f32 1.442695, %v4191_v2  ;;  %v4182_v23 = vpop.xlane.xlu1 %4181  ;;  %v4526_v2 = vcombine.low %v3248_v58, %v3247_v34 }
 0x598   :  { %v4179_v18 = vpop.xlane.xlu0 %4178  ;;  %14374 = vpow2.f32 %v4203_v50  ;;  %v4194_v63 = vsub.f32 %v4162_v62, %v4182_v23  ;;  %v4540_v23 = vrot.slane %v3249_v57, %v14808_v24 }
 0x599   :  { %v4193_v4 = vsub.f32 %v4161_v46, %v4179_v18  ;;  %14376 = vpow2.f32 %v4201_v13 }
 0x59a   :  { %v4207_v44 = vmul.f32 1.442695, %v4194_v63  ;;  %v4533_v63 = vrot.slane %v4526_v2, %v14808_v24 }
 0x59b   :  { %v4205_v5 = vmul.f32 1.442695, %v4193_v4  ;;  %v4188_v28 = vpop.xlane.xlu1 %4187 }
 0x59c   :  { %v4185_v52 = vpop.xlane.xlu0 %4184  ;;  %14378 = vpow2.f32 %v4207_v44  ;;  %v4196_v40 = vsub.f32 %v4164_v37, %v4188_v28 }
 0x59d   :  { %v4195_v31 = vsub.f32 %v4163_v49, %v4185_v52  ;;  %14380 = vpow2.f32 %v4205_v5  ;;  %v4541_v52 = vcombine.low %v4533_v63, %v4540_v23 }
 0x59e   :  { %v14373_v42 = vpop.eup %14372  ;;  %v4211_v48 = vmul.f32 1.442695, %v4196_v40 }
 0x59f   :  { %v4209_v36 = vmul.f32 1.442695, %v4195_v31  ;;  %v4216_v30 = vsel %vm1703_vm4, %v14373_v42, 0.0 }
 0x5a0   :  { %14382 = vpow2.f32 %v4211_v48  ;;  %4217 = vadd.xlane.f32.xlu1 %v4216_v30  ;;  %v4631_v30 = vrot.slane %v15488_v6, %v14808_v24 }
 0x5a1   :  { %14384 = vpow2.f32 %v4209_v36 }
 0x5a2   :  { %v15538_v54 = vpop.eup %14374 }
 0x5a3   :  { %v15540_v62 = vpop.eup %14376  ;;  %v4222_v46 = vsel %vm1703_vm4, %v15538_v54, 0.0 }
 0x5a4   :  { %4223 = vadd.xlane.f32.xlu1 %v4222_v46  ;;  %v4219_v12 = vsel %vm1703_vm4, %v15540_v62, 0.0 }
 0x5a5   :  { %4220 = vadd.xlane.f32.xlu0 %v4219_v12 }
 0x5a6   :  { %v15546_v9 = vpop.eup %14378 }
 0x5a7   :  { %v15548_v14 = vpop.eup %14380  ;;  %v4228_v37 = vsel %vm1703_vm4, %v15546_v9, 0.0 }
 0x5a8   :  { %4229 = vadd.xlane.f32.xlu1 %v4228_v37  ;;  %v4225_v49 = vsel %vm1703_vm4, %v15548_v14, 0.0 }
 0x5a9   :  { %4226 = vadd.xlane.f32.xlu0 %v4225_v49 }
 0x5aa   :  { %v15554_v55 = vpop.eup %14382 }
 0x5ab   :  { %v15556_v21 = vpop.eup %14384  ;;  %v4234_v22 = vsel %vm1703_vm4, %v15554_v55, 0.0 }
 0x5ac   :  { %4235 = vadd.xlane.f32.xlu1 %v4234_v22  ;;  %v4231_v43 = vsel %vm1703_vm4, %v15556_v21, 0.0 }
 0x5ad   :  { %4232 = vadd.xlane.f32.xlu0 %v4231_v43 }
 0x61b   :  { %v4215_v8 = vpop.xlane.xlu0 %4214 }
 0x61c   :  { %14386 = vrcp.f32 %v4215_v8 }
 0x626   :  { %v14387_v27 = vpop.eup %14386 }
 0x627   :  { %v4238_v11 = vmul.f32 %v14387_v27, %v14371_v38  ;;  %v3257_v38 = vrot.slane %v15473_v17, %v14808_v24  ;;  %v3299_v17 = vcombine.high %v15504_v59, %v15504_v59 }
 0x629   :  { %13726 = vmatmul.mubr.msk.f32.vlgmr.msra.gmra.mrb[40].mxu0 %vm1808_vm5, %v4238_v11  ;;  %v3265_v13 = vcombine.high %v3257_v38, %v3257_v38  ;;  %v12968_v11 = vld [vmem:[%s17199_s30 + $0x8] sm:$0xff] }
 0x62a   :  { %13734 = vmatpush3.msk.msra.mxu0 %vm1812_vm3, %v15495_v41  ;;  %13735 = vmatprep.mubr.msk.f32.mxu0 %vm14559_vm1, %v17165_v15  ;;  %v3284_v41 = vcombine.high %v15490_v16, %v15490_v16 }
 0x62b   :  { %13743 = vmatprep.subr.mxu0 %v17165_v15  ;;  %v4617_v44 = vcombine.low %v3257_v38, %v3265_v13 }
 0x62c   :  { %v3298_v53 = vrot.slane %v3284_v41, %v14808_v24 }
 0x62d   :  { %v4218_v61 = vpop.xlane.xlu1 %4217  ;;  %v4624_v36 = vrot.slane %v4617_v44, %v14808_v24 }
 0x62e   :  { %14388 = vrcp.f32 %v4218_v61  ;;  %v3300_v40 = vcombine.high %v3298_v53, %v3298_v53  ;;  %v4890_v31 = vcombine.low %v3299_v17, %v3298_v53 }
 0x62f   :  { %v4632_v49 = vcombine.low %v4624_v36, %v4631_v30 }
 0x630   :  { %v4897_v12 = vrot.slane %v4890_v31, %v14808_v24  ;;  %v4904_v37 = vrot.slane %v3300_v40, %v14808_v24 }
 0x631   :  { %v4224_v29 = vpop.xlane.xlu1 %4223 }
 0x632   :  { %14390 = vrcp.f32 %v4224_v29  ;;  %v4221_v50 = vpop.xlane.xlu0 %4220  ;;  %v4905_v8 = vcombine.low %v4897_v12, %v4904_v37 }
 0x633   :  { %14392 = vrcp.f32 %v4221_v50 }
 0x635   :  { %v4230_v18 = vpop.xlane.xlu1 %4229 }
 0x636   :  { %14394 = vrcp.f32 %v4230_v18  ;;  %v4227_v4 = vpop.xlane.xlu0 %4226 }
 0x637   :  { %14396 = vrcp.f32 %v4227_v4 }
 0x638   :  { %v14389_v5 = vpop.eup %14388 }
 0x639   :  { %v4236_v16 = vpop.xlane.xlu1 %4235  ;;  %v4240_v28 = vmul.f32 %v14389_v5, %v14373_v42 }
 0x63a   :  { %14398 = vrcp.f32 %v4236_v16  ;;  %v4233_v48 = vpop.xlane.xlu0 %4232 }
 0x63b   :  { %14400 = vrcp.f32 %v4233_v48  ;;  %13731 = vmatmul.mubr.msk.f32.vlgmr.msra.gmra.mrb[44].mxu1 %vm1808_vm5, %v4240_v28 }
 0x63c   :  { %v14391_v59 = vpop.eup %14390  ;;  %13739 = vmatpush3.msk.msra.mxu1 %vm1812_vm3, %v4541_v52  ;;  %13740 = vmatprep.mubr.msk.f32.mxu1 %vm14559_vm1, %v17165_v15 }
 0x63d   :  { %v14393_v42 = vpop.eup %14392  ;;  %13748 = vmatprep.subr.mxu1 %v17165_v15  ;;  %v4244_v46 = vmul.f32 %v14391_v59, %v15538_v54 }
 0x63e   :  { %v4242_v6 = vmul.f32 %v14393_v42, %v15540_v62 }
 0x63f   :  { %13741 = vmatmul.mubr.msk.f32.vlgmr.msra.gmra.mrb[46].mxu1 %vm1808_vm5, %v4244_v46 }
 0x640   :  { %v14395_v22 = vpop.eup %14394  ;;  %13736 = vmatmul.mubr.msk.f32.vlgmr.msra.gmra.mrb[42].mxu0 %vm1808_vm5, %v4242_v6  ;;  %13749 = vmatpush3.msk.msra.mxu1 %vm1812_vm3, %v15511_v7 }
 0x641   :  { %v14397_v43 = vpop.eup %14396  ;;  %13744 = vmatpush3.msk.msra.mxu0 %vm1812_vm3, %v4632_v49  ;;  %13745 = vmatprep.mubr.msk.f32.mxu0 %vm14559_vm1, %v17165_v15  ;;  %v4248_v54 = vmul.f32 %v14395_v22, %v15546_v9 }
 0x642   :  { %v4246_v62 = vmul.f32 %v14397_v43, %v15548_v14  ;;  %13750 = vmatprep.mubr.msk.f32.mxu1 %vm14559_vm1, %v17165_v15  ;;  %13753 = vmatprep.subr.mxu0 %v17165_v15 }
 0x643   :  { %13758 = vmatprep.subr.mxu1 %v17165_v15  ;;  %13751 = vmatmul.mubr.msk.f32.vlgmr.msra.gmra.mrb[48].mxu1 %vm1808_vm5, %v4248_v54 }
 0x644   :  { %v14399_v7 = vpop.eup %14398  ;;  %13746 = vmatmul.mubr.msk.f32.vlgmr.msra.gmra.mrb[44].mxu0 %vm1808_vm5, %v4246_v62  ;;  %13759 = vmatpush3.msk.msra.mxu1 %vm1812_vm3, %v4905_v8 }
 0x645   :  { %v14401_v27 = vpop.eup %14400  ;;  %13754 = vmatpush3.msk.msra.mxu0 %vm1812_vm3, %v15514_v32  ;;  %13755 = vmatprep.mubr.msk.f32.mxu0 %vm14559_vm1, %v17165_v15  ;;  %v4252_v9 = vmul.f32 %v14399_v7, %v15554_v55  ;;  %v15626_v32 = vld [vmem:[%s17199_s30] sm:$0xff] }
 0x646   :  { %v4250_v14 = vmul.f32 %v14401_v27, %v15556_v21  ;;  %13760 = vmatprep.mubr.msk.f32.mxu1 %vm14559_vm1, %v17165_v15  ;;  %13763 = vmatprep.subr.mxu0 %v12968_v11 }
 0x647   :  { %13761 = vmatmul.mubr.msk.f32.vlgmr.msra.gmra.mrb[50].mxu1 %vm1808_vm5, %v4252_v9 }
 0x648   :  { %13756 = vmatmul.mubr.msk.f32.vlgmr.msra.gmra.mrb[46].mxu0 %vm1808_vm5, %v4250_v14 }
 0x649   :  { %13764 = vmatpush3.msra.mxu0 %v12968_v11 }
 0x64a   :  { %13774 = vmatprep.subr.mxu0 %v15626_v32 }
 0x6fc   :  { %v4340_v55 = vpop.f32.mrb[40].mxu0 }
 0x6fd   :  { %v13727_v21 = vpop.f32.mrb[41].mxu0  ;;  %v4996_v3 = vrot.slane %v4340_v55, %v14808_v24  ;;  %v4989_v34 = vcombine.high %v4340_v55, %v4340_v55 }
 0x6ff   :  { %v5004_v61 = vcombine.high %v4996_v3, %v4996_v3  ;;  %v5003_v38 = vrot.slane %v4989_v34, %v14808_v24 }
 0x701   :  { %v5119_v57 = vcombine.low %v4996_v3, %v5004_v61 }
 0x703   :  { %v5127_v63 = vrot.slane %v5119_v57, %v14808_v24 }
 0x70e   :  { %v4431_v58 = vpop.f32.mrb[44].mxu1 }
 0x70f   :  { %v5005_v29 = vcombine.high %v4431_v58, %v4431_v58  ;;  %v5012_v2 = vrot.slane %v4431_v58, %v14808_v24  ;;  %v13732_v41 = vpop.f32.mrb[45].mxu1 }
 0x711   :  { %v5019_v50 = vrot.slane %v5005_v29, %v14808_v24  ;;  %v5020_v13 = vcombine.high %v5012_v2, %v5012_v2  ;;  %v5120_v23 = vcombine.low %v5003_v38, %v5012_v2 }
 0x712   :  { %v4613_v18 = vpop.f32.mrb[46].mxu1 }
 0x713   :  { %v5134_v53 = vrot.slane %v5120_v23, %v14808_v24  ;;  %v4522_v17 = vpop.f32.mrb[42].mxu0  ;;  %v5037_v4 = vcombine.high %v4613_v18, %v4613_v18  ;;  %v5044_v44 = vrot.slane %v4613_v18, %v14808_v24  ;;  %v13742_v5 = vpop.f32.mrb[47].mxu1  ;;  %v5136_v40 = vcombine.low %v5020_v13, %v5019_v50 }
 0x714   :  { %v5021_v16 = vcombine.high %v4522_v17, %v4522_v17  ;;  %v5028_v28 = vrot.slane %v4522_v17, %v14808_v24  ;;  %v13737_v52 = vpop.f32.mrb[43].mxu0 }
 0x715   :  { %v5051_v31 = vrot.slane %v5037_v4, %v14808_v24  ;;  %v5052_v48 = vcombine.high %v5044_v44, %v5044_v44  ;;  %v5135_v36 = vcombine.low %v5127_v63, %v5134_v53  ;;  %v5144_v7 = vrot.slane %v5136_v40, %v14808_v24 }
 0x716   :  { %v5035_v30 = vrot.slane %v5021_v16, %v14808_v24  ;;  %v5036_v59 = vcombine.high %v5028_v28, %v5028_v28  ;;  %v4795_v42 = vpop.f32.mrb[48].mxu1 }
 0x717   :  { %v5154_v46 = vcombine.low %v5052_v48, %v5051_v31  ;;  %v4704_v12 = vpop.f32.mrb[44].mxu0  ;;  %v5069_v37 = vcombine.high %v4795_v42, %v4795_v42  ;;  %v5076_v6 = vrot.slane %v4795_v42, %v14808_v24  ;;  %v13752_v49 = vpop.f32.mrb[49].mxu1  ;;  %13765 = vmatprep.mubr.msk.f32.mxu0 %vm830_vm2, %v5135_v36 }
 0x718   :  { %v5137_v22 = vcombine.low %v5028_v28, %v5036_v59  ;;  %v5153_v43 = vcombine.low %v5035_v30, %v5044_v44  ;;  %v5053_v54 = vcombine.high %v4704_v12, %v4704_v12  ;;  %v5060_v8 = vrot.slane %v4704_v12, %v14808_v24  ;;  %v13747_v62 = vpop.f32.mrb[45].mxu0 }
 0x719   :  { %v5168_v27 = vrot.slane %v5154_v46, %v14808_v24  ;;  %v5083_v3 = vrot.slane %v5069_v37, %v14808_v24  ;;  %v5084_v34 = vcombine.high %v5076_v6, %v5076_v6 }
 0x71a   :  { %v5151_v9 = vrot.slane %v5137_v22, %v14808_v24  ;;  %v5161_v14 = vrot.slane %v5153_v43, %v14808_v24  ;;  %v5067_v11 = vrot.slane %v5053_v54, %v14808_v24  ;;  %v5068_v55 = vcombine.high %v5060_v8, %v5060_v8  ;;  %v4977_v21 = vpop.f32.mrb[50].mxu1 }
 0x71b   :  { %v4886_v61 = vpop.f32.mrb[46].mxu0  ;;  %v5101_v58 = vcombine.high %v4977_v21, %v4977_v21  ;;  %v5108_v38 = vrot.slane %v4977_v21, %v14808_v24  ;;  %v13762_v57 = vpop.f32.mrb[51].mxu1  ;;  %v5187_v5 = vcombine.low %v5084_v34, %v5083_v3  ;;  %v14557_v34 = vld [vmem:[%s17192_s14 + $0x20] sm:$0xff] }
 0x71c   :  { %v5152_v29 = vcombine.low %v5144_v7, %v5151_v9  ;;  %v5170_v2 = vcombine.low %v5060_v8, %v5068_v55  ;;  %v5171_v41 = vcombine.low %v5067_v11, %v5076_v6  ;;  %v5085_v50 = vcombine.high %v4886_v61, %v4886_v61  ;;  %v13757_v13 = vpop.f32.mrb[47].mxu0  ;;  %v14555_v8 = vld [vmem:[%s17192_s14 + $0x10] sm:$0xff]  ;;  %v14556_v11 = vld [vmem:[%s17192_s14 + $0x28] sm:$0xff] }
 0x71d   :  { %v5092_v23 = vrot.slane %v4886_v61, %v14808_v24  ;;  %v5115_v18 = vrot.slane %v5101_v58, %v14808_v24  ;;  %v5116_v63 = vcombine.high %v5108_v38, %v5108_v38  ;;  %v5169_v44 = vcombine.low %v5161_v14, %v5168_v27 }
 0x71e   :  { %v5178_v53 = vrot.slane %v5170_v2, %v14808_v24  ;;  %v5185_v17 = vrot.slane %v5171_v41, %v14808_v24  ;;  %v5099_v4 = vrot.slane %v5085_v50, %v14808_v24  ;;  %13766 = vmatmul.mubr.msk.f32.vlgmr.msra.gmra.mrb[48].mxu0 %vm830_vm2, %v5152_v29  ;;  %v5195_v30 = vrot.slane %v5187_v5, %v14808_v24 }
 0x71f   :  { %v5100_v16 = vcombine.high %v5092_v23, %v5092_v23  ;;  %v5205_v28 = vcombine.low %v5116_v63, %v5115_v18  ;;  %13775 = vmatpush3.msra.mxu0 %v15626_v32  ;;  %13768 = vmatprep.mubr.msk.f32.mxu0 %vm830_vm2, %v5169_v44 }
 0x720   :  { %v5204_v52 = vcombine.low %v5099_v4, %v5108_v38  ;;  %v5186_v40 = vcombine.low %v5178_v53, %v5185_v17 }
 0x721   :  { %v5188_v31 = vcombine.low %v5092_v23, %v5100_v16  ;;  %v5219_v48 = vrot.slane %v5205_v28, %v14808_v24 }
 0x722   :  { %v5212_v36 = vrot.slane %v5204_v52, %v14808_v24  ;;  %13769 = vmatmul.mubr.msk.f32.gmra.mrb[50].mxu0 %vm830_vm2, %v5186_v40 }
 0x723   :  { %v5202_v59 = vrot.slane %v5188_v31, %v14808_v24 }
 0x724   :  { %v5220_v42 = vcombine.low %v5212_v36, %v5219_v48 }
 0x725   :  { %v5203_v46 = vcombine.low %v5195_v30, %v5202_v59 }
 0x727   :  { %13771 = vmatprep.mubr.msk.f32.mxu0 %vm830_vm2, %v5203_v46 }
 0x728   :  { %13772 = vmatmul.mubr.msk.f32.gmra.mrb[52].mxu0 %vm830_vm2, %v5220_v42 }
 0x729   :  { %13776 = vmatprep.mubr.msk.f32.mxu0 %vm830_vm2, %v15223_v47  ;;  %v12981_v47 = vld [vmem:[%s17200_s0] ss:$0 sm:$0xff] }
 0x72c   :  { %13777 = vmatmul.mubr.msk.f32.vlgmr.msra.gmra.mrb[48].mxu0 %vm830_vm2, %v15255_v45  ;;  %v14552_v45 = vld [vmem:[%s17192_s14 + $0x8] sm:$0xff] }
 0x72d   :  { %13779 = vmatprep.mubr.msk.f32.mxu0 %vm830_vm2, %v15400_v39 }
 0x730   :  { %13780 = vmatmul.mubr.msk.f32.gmra.mrb[50].mxu0 %vm830_vm2, %v15406_v51  ;;  %v14553_v51 = vld [vmem:[%s17192_s14] sm:$0xff] }
 0x731   :  { %13782 = vmatprep.mubr.msk.f32.mxu0 %vm830_vm2, %v15421_v10 }
 0x734   :  { %13783 = vmatmul.mubr.msk.f32.gmra.mrb[52].mxu0 %vm830_vm2, %v15427_v56  ;;  %v14554_v56 = vld [vmem:[%s17192_s14 + $0x18] sm:$0xff]  ;;  %s14564_s14 = smov 32  }
 0x7ff   :  { %v13778_v32 = vpop.f32.mrb[48].mxu0 }
 0x800   :  { %v5538_v12 = vadd.f32 %v14552_v45, %v13778_v32  ;;  %v5508_v39 = vpop.f32.mrb[49].mxu0 }
 0x801   :  { %v5537_v37 = vadd.f32 %v14553_v51, %v5508_v39 }
 0x802   :  { %v5551_v10 = vadd.f32 %v12981_v47, %v5538_v12 }
 0x803   :  { %v13781_v6 = vpop.f32.mrb[50].mxu0  ;;  %v5550_v49 = vadd.f32 %v12981_v47, %v5537_v37 }
 0x804   :  { %v5540_v22 = vadd.f32 %v14554_v56, %v13781_v6  ;;  %v5518_v43 = vpop.f32.mrb[51].mxu0  ;;  %v5559_v54 = vsel %vm152_vm0, %v5551_v10, 0.0  ;;  %v5661_v6 = vld [vmem:[%s17201_s28] sm:$0xff] }
 0x805   :  { %v5539_v62 = vadd.f32 %v14555_v8, %v5518_v43  ;;  %5560 = vadd.xlane.f32.xlu1 %v5559_v54  ;;  %v5556_v7 = vsel %vm152_vm0, %v5550_v49, 0.0  ;;  %v5790_v43 = vld [vmem:[%s17202_s26 + $0x8] sm:$0xff] }
 0x806   :  { %5557 = vadd.xlane.f32.xlu0 %v5556_v7  ;;  %v5553_v27 = vadd.f32 %v12981_v47, %v5540_v22  ;;  %v5789_v22 = vld [vmem:[%s17202_s26] sm:$0xff] }
 0x807   :  { %v13784_v9 = vpop.f32.mrb[52].mxu0  ;;  %v5552_v14 = vadd.f32 %v12981_v47, %v5539_v62  ;;  %v14226_v54 = vpack.c.bf16 %v5790_v43, %v5789_v22 }
 0x808   :  { %v5542_v55 = vadd.f32 %v14556_v11, %v13784_v9  ;;  %v5528_v21 = vpop.f32.mrb[53].mxu0  ;;  %v5565_v3 = vsel %vm152_vm0, %v5553_v27, 0.0 }
 0x809   :  { %v5541_v61 = vadd.f32 %v14557_v34, %v5528_v21  ;;  %5566 = vadd.xlane.f32.xlu1 %v5565_v3  ;;  %v5562_v58 = vsel %vm152_vm0, %v5552_v14, 0.0 }
 0x80a   :  { %5563 = vadd.xlane.f32.xlu0 %v5562_v58  ;;  %v5555_v38 = vadd.f32 %v12981_v47, %v5542_v55 }
 0x80b   :  { %v5554_v57 = vadd.f32 %v12981_v47, %v5541_v61 }
 0x80c   :  { %v5571_v29 = vsel %vm152_vm0, %v5555_v38, 0.0 }
 0x80d   :  { %5572 = vadd.xlane.f32.xlu1 %v5571_v29  ;;  %v5568_v2 = vsel %vm152_vm0, %v5554_v57, 0.0 }
 0x80e   :  { %5569 = vadd.xlane.f32.xlu0 %v5568_v2 }
 0x892   :  { %v5561_v41 = vpop.xlane.xlu1 %5560 }
 0x893   :  { %v5576_v50 = vmul.f32 0.0625, %v5561_v41  ;;  %v5558_v13 = vpop.xlane.xlu0 %5557 }
 0x894   :  { %v5575_v23 = vmul.f32 0.0625, %v5558_v13  ;;  %v12982_v13 = vld [vmem:[%s17135_s10] ss:$0 sm:$0xff] }
 0x895   :  { %v15703_v18 = vsub.f32 %v5551_v10, %v5576_v50 }
 0x896   :  { %v15705_v63 = vsub.f32 %v5550_v49, %v5575_v23  ;;  %v5567_v53 = vpop.xlane.xlu1 %5566  ;;  %v5662_v49 = vld [vmem:[%s17201_s28 + $0x8] sm:$0xff] }
 0x897   :  { %v5578_v17 = vmul.f32 0.0625, %v5567_v53  ;;  %v5564_v4 = vpop.xlane.xlu0 %5563  ;;  %v5588_v44 = vmul.f32 %v15703_v18, %v15703_v18  ;;  %v14222_v56 = vpack.c.bf16 %v5662_v49, %v5661_v6  ;;  %v12984_v6 = vld [vmem:[%s17137_s13] ss:$0 sm:$0xff] }
 0x898   :  { %v5577_v5 = vmul.f32 0.0625, %v5564_v4  ;;  %v5587_v16 = vmul.f32 %v15705_v63, %v15705_v63  ;;  %v12983_v4 = vld [vmem:[%s17136_s11] ss:$0 sm:$0xff] }
 0x899   :  { %v15711_v28 = vsub.f32 %v5553_v27, %v5578_v17  ;;  %v5596_v52 = vsel %vm152_vm0, %v5588_v44, 0.0  ;;  %14223 = vmatprep.subr.bf16.mxu1 %v14222_v56 }
 0x89a   :  { %v15714_v40 = vsub.f32 %v5552_v14, %v5577_v5  ;;  %5597 = vadd.xlane.f32.xlu1 %v5596_v52  ;;  %v5573_v31 = vpop.xlane.xlu1 %5572  ;;  %v5593_v48 = vsel %vm152_vm0, %v5587_v16, 0.0  ;;  %14225 = vmatpush3.bf16.msra.mxu1 %v14222_v56 }
 0x89b   :  { %v5580_v36 = vmul.f32 0.0625, %v5573_v31  ;;  %5594 = vadd.xlane.f32.xlu0 %v5593_v48  ;;  %v5570_v30 = vpop.xlane.xlu0 %5569  ;;  %v5590_v59 = vmul.f32 %v15711_v28, %v15711_v28  ;;  %14227 = vmatprep.subr.bf16.mxu1 %v14226_v54 }
 0x89c   :  { %v5579_v42 = vmul.f32 0.0625, %v5570_v30  ;;  %v5589_v46 = vmul.f32 %v15714_v40, %v15714_v40 }
 0x89d   :  { %v15721_v32 = vsub.f32 %v5555_v38, %v5580_v36  ;;  %v5602_v47 = vsel %vm152_vm0, %v5590_v59, 0.0 }
 0x89e   :  { %v15724_v45 = vsub.f32 %v5554_v57, %v5579_v42  ;;  %5603 = vadd.xlane.f32.xlu1 %v5602_v47  ;;  %v5599_v12 = vsel %vm152_vm0, %v5589_v46, 0.0 }
 0x89f   :  { %5600 = vadd.xlane.f32.xlu0 %v5599_v12  ;;  %v5592_v39 = vmul.f32 %v15721_v32, %v15721_v32 }
 0x8a0   :  { %v5591_v51 = vmul.f32 %v15724_v45, %v15724_v45 }
 0x8a1   :  { %v5608_v37 = vsel %vm152_vm0, %v5592_v39, 0.0 }
 0x8a2   :  { %5609 = vadd.xlane.f32.xlu1 %v5608_v37  ;;  %v5605_v10 = vsel %vm152_vm0, %v5591_v51, 0.0 }
 0x8a3   :  { %5606 = vadd.xlane.f32.xlu0 %v5605_v10 }
 0x927   :  { %v5598_v8 = vpop.xlane.xlu1 %5597 }
 0x928   :  { %v5612_v62 = vmul.f32 0.0625, %v5598_v8  ;;  %v5595_v7 = vpop.xlane.xlu0 %5594 }
 0x929   :  { %v5611_v27 = vmul.f32 0.0625, %v5595_v7 }
 0x92a   :  { %v5618_v9 = vadd.f32 1e-08, %v5612_v62 }
 0x92b   :  { %v5617_v14 = vadd.f32 1e-08, %v5611_v27  ;;  %v5604_v11 = vpop.xlane.xlu1 %5603 }
 0x92c   :  { %14402 = vrsqrt.f32 %v5618_v9  ;;  %v5614_v55 = vmul.f32 0.0625, %v5604_v11  ;;  %v5601_v21 = vpop.xlane.xlu0 %5600 }
 0x92d   :  { %14404 = vrsqrt.f32 %v5617_v14  ;;  %v5613_v3 = vmul.f32 0.0625, %v5601_v21 }
 0x92e   :  { %v5620_v34 = vadd.f32 1e-08, %v5614_v55 }
 0x92f   :  { %v5619_v61 = vadd.f32 1e-08, %v5613_v3  ;;  %v5610_v58 = vpop.xlane.xlu1 %5609 }
 0x930   :  { %14406 = vrsqrt.f32 %v5620_v34  ;;  %v5616_v38 = vmul.f32 0.0625, %v5610_v58  ;;  %v5607_v57 = vpop.xlane.xlu0 %5606 }
 0x931   :  { %14408 = vrsqrt.f32 %v5619_v61  ;;  %v5615_v29 = vmul.f32 0.0625, %v5607_v57 }
 0x932   :  { %v5622_v2 = vadd.f32 1e-08, %v5616_v38  ;;  %v12991_v38 = vld [vmem:[%s17138_s15] ss:$0 sm:$0xff] }
 0x933   :  { %v5621_v41 = vadd.f32 1e-08, %v5615_v29 }
 0x934   :  { %14410 = vrsqrt.f32 %v5622_v2 }
 0x935   :  { %14412 = vrsqrt.f32 %v5621_v41 }
 0x936   :  { %v14403_v50 = vpop.eup %14402 }
 0x937   :  { %v14405_v23 = vpop.eup %14404  ;;  %v5630_v53 = vmul.f32 %v14403_v50, %v15703_v18 }
 0x938   :  { %v5629_v17 = vmul.f32 %v14405_v23, %v15705_v63 }
 0x939   :  { %v5643_v44 = vmul.f32 %v12982_v13, %v5630_v53 }
 0x93a   :  { %v14407_v5 = vpop.eup %14406  ;;  %v5642_v16 = vmul.f32 %v12982_v13, %v5629_v17 }
 0x93b   :  { %v14409_v52 = vpop.eup %14408  ;;  %v5632_v31 = vmul.f32 %v14407_v5, %v15711_v28  ;;  %v5656_v30 = vadd.f32 %v12983_v4, %v5643_v44 }
 0x93c   :  { %v5655_v48 = vadd.f32 %v12983_v4, %v5642_v16  ;;  %v5631_v36 = vmul.f32 %v14409_v52, %v15714_v40 }
 0x93d   :  { %v5645_v59 = vmul.f32 %v12982_v13, %v5632_v31 }
 0x93e   :  { %v14411_v42 = vpop.eup %14410  ;;  %13789 = vmatprep.mubr.msk.f32.mxu1 %vm152_vm0, %v5655_v48  ;;  %v5644_v18 = vmul.f32 %v12982_v13, %v5631_v36 }
 0x93f   :  { %v14413_v63 = vpop.eup %14412  ;;  %13790 = vmatmul.mubr.msk.f32.vlgmr.msra.gmra.mrb[52].mxu1 %vm152_vm0, %v5656_v30  ;;  %v5634_v46 = vmul.f32 %v14411_v42, %v15721_v32  ;;  %v5658_v39 = vadd.f32 %v12983_v4, %v5645_v59  ;;  %v5791_v32 = vld [vmem:[%s17202_s26 + $0x10] sm:$0xff] }
 0x940   :  { %v5657_v47 = vadd.f32 %v12983_v4, %v5644_v18  ;;  %v5633_v12 = vmul.f32 %v14413_v63, %v15724_v45  ;;  %14229 = vmatpush3.bf16.msra.mxu1 %v14226_v54  ;;  %v5792_v45 = vld [vmem:[%s17202_s26 + $0x18] sm:$0xff] }
 0x941   :  { %v5647_v28 = vmul.f32 %v12982_v13, %v5634_v46  ;;  %v14230_v10 = vpack.c.bf16 %v5792_v45, %v5791_v32 }
 0x942   :  { %13792 = vmatprep.mubr.msk.f32.mxu1 %vm152_vm0, %v5657_v47  ;;  %v5646_v40 = vmul.f32 %v12982_v13, %v5633_v12 }
 0x943   :  { %13793 = vmatmul.mubr.msk.f32.gmra.mrb[54].mxu1 %vm152_vm0, %v5658_v39  ;;  %v5660_v37 = vadd.f32 %v12983_v4, %v5647_v28  ;;  %14231 = vmatprep.subr.bf16.mxu1 %v14230_v10 }
 0x944   :  { %v15761_v51 = vadd.f32 %v12983_v4, %v5646_v40  ;;  %14233 = vmatpush3.bf16.msra.mxu1 %v14230_v10 }
 0x946   :  { %13795 = vmatprep.mubr.msk.f32.mxu1 %vm152_vm0, %v15761_v51 }
 0x947   :  { %13796 = vmatmul.mubr.msk.f32.gmra.mrb[56].mxu1 %vm152_vm0, %v5660_v37 }
 0xa12   :  { %v13791_v49 = vpop.f32.mrb[52].mxu1 }
 0xa13   :  { %v5760_v56 = vadd.f32 %v13791_v49, %v12984_v6  ;;  %v5754_v22 = vpop.f32.mrb[53].mxu1 }
 0xa14   :  { %v5755_v43 = vadd.f32 %v12984_v6, %v5754_v22 }
 0xa15   :  { %v5784_v62 = vmax.f32 %v5760_v56, 0.0 }
 0xa16   :  { %v5783_v54 = vmax.f32 %v5755_v43, 0.0  ;;  %v13794_v8 = vpop.f32.mrb[54].mxu1 }
 0xa17   :  { %v5770_v7 = vadd.f32 %v13794_v8, %v12984_v6  ;;  %v5764_v27 = vpop.f32.mrb[55].mxu1 }
 0xa18   :  { %v5765_v9 = vadd.f32 %v12984_v6, %v5764_v27  ;;  %13806 = vmatprep.mubr.msk.f32.mxu1 %vm5800_vm6, %v5783_v54 }
 0xa19   :  { %13807 = vmatmul.mubr.msk.f32.vlgmr.msra.gmra.mrb[58].mxu1 %vm5800_vm6, %v5784_v62  ;;  %v5786_v55 = vmax.f32 %v5770_v7, 0.0 }
 0xa1a   :  { %v5785_v14 = vmax.f32 %v5765_v9, 0.0  ;;  %v13797_v11 = vpop.f32.mrb[56].mxu1 }
 0xa1b   :  { %v5780_v21 = vadd.f32 %v13797_v11, %v12984_v6  ;;  %v5774_v3 = vpop.f32.mrb[57].mxu1 }
 0xa1c   :  { %v5775_v34 = vadd.f32 %v12984_v6, %v5774_v3  ;;  %13809 = vmatprep.mubr.msk.f32.mxu1 %vm5800_vm6, %v5785_v14 }
 0xa1d   :  { %13810 = vmatmul.mubr.msk.f32.gmra.mrb[60].mxu1 %vm5800_vm6, %v5786_v55  ;;  %v5788_v58 = vmax.f32 %v5780_v21, 0.0 }
 0xa1e   :  { %v5787_v61 = vmax.f32 %v5775_v34, 0.0 }
 0xa20   :  { %13812 = vmatprep.mubr.msk.f32.mxu1 %vm5800_vm6, %v5787_v61 }
 0xa21   :  { %13813 = vmatmul.mubr.msk.f32.gmra.mrb[62].mxu1 %vm5800_vm6, %v5788_v58 }
 0xaec   :  { %v13808_v57 = vpop.f32.mrb[58].mxu1 }
 0xaed   :  { %v5891_v29 = vadd.f32 %v13808_v57, %v12991_v38  ;;  %v5885_v2 = vpop.f32.mrb[59].mxu1 }
 0xaee   :  { %v5886_v41 = vadd.f32 %v12991_v38, %v5885_v2  ;;  %v13001_v2 = vld [vmem:[%s17190_s8 + $0x28] sm:$0xff] }
 0xaef   :  { %v5915_v50 = vadd.f32 %v5891_v29, %v5656_v30  ;;  %v13000_v29 = vld [vmem:[%s17190_s8 + $0x20] sm:$0xff] }
 0xaf0   :  { %v13811_v13 = vpop.f32.mrb[60].mxu1  ;;  %v5914_v23 = vadd.f32 %v5886_v41, %v5655_v48  ;;  %v13010_v41 = vld [vmem:[%s17191_s2 + $0x20] sm:$0xff] }
 0xaf1   :  { %v5901_v53 = vadd.f32 %v13811_v13, %v12991_v38  ;;  %v5895_v17 = vpop.f32.mrb[61].mxu1  ;;  %v5923_v4 = vsel %vm152_vm0, %v5915_v50, 0.0  ;;  %v13011_v13 = vld [vmem:[%s17191_s2 + $0x28] sm:$0xff] }
 0xaf2   :  { %v5896_v44 = vadd.f32 %v12991_v38, %v5895_v17  ;;  %5924 = vadd.xlane.f32.xlu1 %v5923_v4  ;;  %v5920_v5 = vsel %vm152_vm0, %v5914_v23, 0.0  ;;  %v13021_v17 = vld [vmem:[%s17193_s1 + $0x28] sm:$0xff] }
 0xaf3   :  { %5921 = vadd.xlane.f32.xlu0 %v5920_v5  ;;  %v5917_v16 = vadd.f32 %v5901_v53, %v5658_v39  ;;  %v13020_v53 = vld [vmem:[%s17193_s1 + $0x20] sm:$0xff] }
 0xaf4   :  { %v13814_v52 = vpop.f32.mrb[62].mxu1  ;;  %v5916_v31 = vadd.f32 %v5896_v44, %v5657_v47  ;;  %v14242_v4 = vpack.c.bf16 %v13021_v17, %v13020_v53 }
 0xaf5   :  { %v5911_v36 = vadd.f32 %v13814_v52, %v12991_v38  ;;  %v5905_v59 = vpop.f32.mrb[63].mxu1  ;;  %v5929_v42 = vsel %vm152_vm0, %v5917_v16, 0.0 }
 0xaf6   :  { %v5906_v18 = vadd.f32 %v12991_v38, %v5905_v59  ;;  %5930 = vadd.xlane.f32.xlu1 %v5929_v42  ;;  %v5926_v48 = vsel %vm152_vm0, %v5916_v31, 0.0 }
 0xaf7   :  { %5927 = vadd.xlane.f32.xlu0 %v5926_v48  ;;  %v5919_v30 = vadd.f32 %v5911_v36, %v5660_v37 }
 0xaf8   :  { %v5918_v63 = vadd.f32 %v5906_v18, %v15761_v51 }
 0xaf9   :  { %v5935_v46 = vsel %vm152_vm0, %v5919_v30, 0.0 }
 0xafa   :  { %5936 = vadd.xlane.f32.xlu1 %v5935_v46  ;;  %v5932_v12 = vsel %vm152_vm0, %v5918_v63, 0.0 }
 0xafb   :  { %5933 = vadd.xlane.f32.xlu0 %v5932_v12 }
 0xb7f   :  { %v5925_v39 = vpop.xlane.xlu1 %5924 }
 0xb80   :  { %v5939_v47 = vmul.f32 0.0625, %v5925_v39  ;;  %v5922_v28 = vpop.xlane.xlu0 %5921 }
 0xb81   :  { %v5938_v40 = vmul.f32 0.0625, %v5922_v28 }
 0xb82   :  { %v15791_v32 = vsub.f32 %v5915_v50, %v5939_v47  ;;  %v14234_v50 = vpack.c.bf16 %v13001_v2, %v13000_v29  ;;  %v15908_v29 = vld [vmem:[%s17194_s9 + $0x2] ss:$0 sm:$0xff] }
 0xb83   :  { %v15793_v45 = vsub.f32 %v5914_v23, %v5938_v40  ;;  %v5931_v10 = vpop.xlane.xlu1 %5930  ;;  %v14238_v23 = vpack.c.bf16 %v13011_v13, %v13010_v41  ;;  %v15913_v2 = vld [vmem:[%s17195_s12 + $0x2] ss:$0 sm:$0xff] }
 0xb84   :  { %v5941_v6 = vmul.f32 0.0625, %v5931_v10  ;;  %v5928_v49 = vpop.xlane.xlu0 %5927  ;;  %v5951_v51 = vmul.f32 %v15791_v32, %v15791_v32  ;;  %14235 = vmatprep.subr.bf16.mxu0 %v14234_v50 }
 0xb85   :  { %v5940_v37 = vmul.f32 0.0625, %v5928_v49  ;;  %v5950_v56 = vmul.f32 %v15793_v45, %v15793_v45  ;;  %14239 = vmatprep.subr.bf16.mxu1 %v14238_v23  ;;  %14237 = vmatpush3.bf16.msra.mxu0 %v14234_v50 }
 0xb86   :  { %v15799_v22 = vsub.f32 %v5917_v16, %v5941_v6  ;;  %v5959_v43 = vsel %vm152_vm0, %v5951_v51, 0.0  ;;  %14241 = vmatpush3.bf16.msra.mxu1 %v14238_v23  ;;  %14243 = vmatprep.subr.bf16.mxu0 %v14242_v4  ;;  %v12998_v6 = vld [vmem:[%s17139_s16] ss:$0 sm:$0xff] }
 0xb87   :  { %v15802_v54 = vsub.f32 %v5916_v31, %v5940_v37  ;;  %5960 = vadd.xlane.f32.xlu1 %v5959_v43  ;;  %v5937_v8 = vpop.xlane.xlu1 %5936  ;;  %v5956_v62 = vsel %vm152_vm0, %v5950_v56, 0.0  ;;  %13854 = vmatprep.subr.mxu1 %v17165_v15  ;;  %v12999_v56 = vld [vmem:[%s17140_s17] ss:$0 sm:$0xff] }
 0xb88   :  { %v5943_v7 = vmul.f32 0.0625, %v5937_v8  ;;  %5957 = vadd.xlane.f32.xlu0 %v5956_v62  ;;  %v5934_v27 = vpop.xlane.xlu0 %5933  ;;  %v5953_v9 = vmul.f32 %v15799_v22, %v15799_v22 }
 0xb89   :  { %v5942_v14 = vmul.f32 0.0625, %v5934_v27  ;;  %v5952_v11 = vmul.f32 %v15802_v54, %v15802_v54 }
 0xb8a   :  { %v15809_v55 = vsub.f32 %v5919_v30, %v5943_v7  ;;  %v5965_v21 = vsel %vm152_vm0, %v5953_v9, 0.0 }
 0xb8b   :  { %v15812_v3 = vsub.f32 %v5918_v63, %v5942_v14  ;;  %5966 = vadd.xlane.f32.xlu1 %v5965_v21  ;;  %v5962_v34 = vsel %vm152_vm0, %v5952_v11, 0.0 }
 0xb8c   :  { %5963 = vadd.xlane.f32.xlu0 %v5962_v34  ;;  %v5955_v61 = vmul.f32 %v15809_v55, %v15809_v55 }
 0xb8d   :  { %v5954_v58 = vmul.f32 %v15812_v3, %v15812_v3 }
 0xb8e   :  { %v5971_v38 = vsel %vm152_vm0, %v5955_v61, 0.0 }
 0xb8f   :  { %5972 = vadd.xlane.f32.xlu1 %v5971_v38  ;;  %v5968_v57 = vsel %vm152_vm0, %v5954_v58, 0.0 }
 0xb90   :  { %5969 = vadd.xlane.f32.xlu0 %v5968_v57 }
 0xc14   :  { %v5961_v44 = vpop.xlane.xlu1 %5960 }
 0xc15   :  { %v5975_v5 = vmul.f32 0.0625, %v5961_v44  ;;  %v5958_v16 = vpop.xlane.xlu0 %5957 }
 0xc16   :  { %v5974_v52 = vmul.f32 0.0625, %v5958_v16 }
 0xc17   :  { %v5981_v31 = vadd.f32 1e-08, %v5975_v5 }
 0xc18   :  { %v5980_v36 = vadd.f32 1e-08, %v5974_v52  ;;  %v5967_v59 = vpop.xlane.xlu1 %5966 }
 0xc19   :  { %14414 = vrsqrt.f32 %v5981_v31  ;;  %v5977_v42 = vmul.f32 0.0625, %v5967_v59  ;;  %v5964_v18 = vpop.xlane.xlu0 %5963 }
 0xc1a   :  { %14416 = vrsqrt.f32 %v5980_v36  ;;  %v5976_v48 = vmul.f32 0.0625, %v5964_v18 }
 0xc1b   :  { %v5983_v30 = vadd.f32 1e-08, %v5977_v42 }
 0xc1c   :  { %v5982_v63 = vadd.f32 1e-08, %v5976_v48  ;;  %v5973_v46 = vpop.xlane.xlu1 %5972 }
 0xc1d   :  { %14418 = vrsqrt.f32 %v5983_v30  ;;  %v5979_v12 = vmul.f32 0.0625, %v5973_v46  ;;  %v5970_v39 = vpop.xlane.xlu0 %5969 }
 0xc1e   :  { %14420 = vrsqrt.f32 %v5982_v63  ;;  %v5978_v47 = vmul.f32 0.0625, %v5970_v39 }
 0xc1f   :  { %v5985_v28 = vadd.f32 1e-08, %v5979_v12 }
 0xc20   :  { %v5984_v40 = vadd.f32 1e-08, %v5978_v47 }
 0xc21   :  { %14422 = vrsqrt.f32 %v5985_v28 }
 0xc22   :  { %14424 = vrsqrt.f32 %v5984_v40 }
 0xc23   :  { %v14415_v10 = vpop.eup %14414 }
 0xc24   :  { %v14417_v49 = vpop.eup %14416  ;;  %v5993_v51 = vmul.f32 %v14415_v10, %v15791_v32 }
 0xc25   :  { %v5992_v37 = vmul.f32 %v14417_v49, %v15793_v45 }
 0xc26   :  { %v6006_v43 = vmul.f32 %v12998_v6, %v5993_v51 }
 0xc27   :  { %v14419_v8 = vpop.eup %14418  ;;  %v6005_v62 = vmul.f32 %v12998_v6, %v5992_v37 }
 0xc28   :  { %v14421_v7 = vpop.eup %14420  ;;  %v5995_v27 = vmul.f32 %v14419_v8, %v15799_v22  ;;  %v15852_v11 = vadd.f32 %v12999_v56, %v6006_v43 }
 0xc29   :  { %v15849_v9 = vadd.f32 %v12999_v56, %v6005_v62  ;;  %v5994_v14 = vmul.f32 %v14421_v7, %v15802_v54 }
 0xc2a   :  { %v6008_v21 = vmul.f32 %v12998_v6, %v5995_v27 }
 0xc2b   :  { %v14423_v32 = vpop.eup %14422  ;;  %v6007_v34 = vmul.f32 %v12998_v6, %v5994_v14  ;;  %13819 = vmatprep.mubr.msk.f32.mxu0 %vm152_vm0, %v15849_v9  ;;  %13832 = vmatprep.mubr.msk.f32.mxu1 %vm152_vm0, %v15849_v9 }
 0xc2c   :  { %v14425_v45 = vpop.eup %14424  ;;  %v5997_v61 = vmul.f32 %v14423_v32, %v15809_v55  ;;  %13820 = vmatmul.mubr.msk.f32.vlgmr.msra.gmra.mrb[54].mxu0 %vm152_vm0, %v15852_v11  ;;  %13833 = vmatmul.mubr.msk.f32.vlgmr.msra.gmra.mrb[64].mxu1 %vm152_vm0, %v15852_v11  ;;  %v15866_v58 = vadd.f32 %v12999_v56, %v6008_v21 }
 0xc2d   :  { %v15863_v22 = vadd.f32 %v12999_v56, %v6007_v34  ;;  %v5996_v54 = vmul.f32 %v14425_v45, %v15812_v3  ;;  %14245 = vmatpush3.bf16.msra.mxu0 %v14242_v4 }
 0xc2e   :  { %17204 = vst [vmem:[#allocation5_spill] sm:$0xff] %v15866_v58  ;;  %v6010_v38 = vmul.f32 %v12998_v6, %v5997_v61  ;;  %13869 = vmatprep.subr.mxu0 %v17165_v15 }
 0xc2f   :  { %17203 = vst [vmem:[#allocation4_spill] sm:$0xff] %v15863_v22  ;;  %v6009_v57 = vmul.f32 %v12998_v6, %v5996_v54  ;;  %13822 = vmatprep.mubr.msk.f32.mxu0 %vm152_vm0, %v15863_v22  ;;  %13835 = vmatprep.mubr.msk.f32.mxu1 %vm152_vm0, %v15863_v22 }
 0xc30   :  { %13823 = vmatmul.mubr.msk.f32.gmra.mrb[56].mxu0 %vm152_vm0, %v15866_v58  ;;  %13836 = vmatmul.mubr.msk.f32.gmra.mrb[66].mxu1 %vm152_vm0, %v15866_v58  ;;  %v15879_v3 = vadd.f32 %v12999_v56, %v6010_v38 }
 0xc31   :  { %v15877_v55 = vadd.f32 %v12999_v56, %v6009_v57 }
 0xc32   :  { %17206 = vst [vmem:[#allocation7_spill] sm:$0xff] %v15879_v3 }
 0xc33   :  { %17205 = vst [vmem:[#allocation6_spill] sm:$0xff] %v15877_v55  ;;  %13825 = vmatprep.mubr.msk.f32.mxu0 %vm152_vm0, %v15877_v55  ;;  %13838 = vmatprep.mubr.msk.f32.mxu1 %vm152_vm0, %v15877_v55 }
 0xc34   :  { %13826 = vmatmul.mubr.msk.f32.gmra.mrb[58].mxu0 %vm152_vm0, %v15879_v3  ;;  %13839 = vmatmul.mubr.msk.f32.gmra.mrb[68].mxu1 %vm152_vm0, %v15879_v3 }
 0xc35   :  { %13845 = vmatprep.mubr.msk.f32.mxu0 %vm152_vm0, %v15849_v9  ;;  %13856 = vmatprep.mubr.msk.f32.mxu1 %vm14559_vm1, %v17165_v15 }
 0xc38   :  { %13846 = vmatmul.mubr.msk.f32.vlgmr.msra.gmra.mrb[60].mxu0 %vm152_vm0, %v15852_v11 }
 0xc39   :  { %13848 = vmatprep.mubr.msk.f32.mxu0 %vm152_vm0, %v15863_v22 }
 0xc3c   :  { %13849 = vmatmul.mubr.msk.f32.gmra.mrb[62].mxu0 %vm152_vm0, %v15866_v58 }
 0xc3d   :  { %13851 = vmatprep.mubr.msk.f32.mxu0 %vm152_vm0, %v15877_v55 }
 0xc40   :  { %13852 = vmatmul.mubr.msk.f32.gmra.mrb[64].mxu0 %vm152_vm0, %v15879_v3 }
 0xc41   :  { %13871 = vmatprep.mubr.msk.f32.mxu0 %vm14559_vm1, %v17165_v15 }
 0xcff   :  { %v13821_v41 = vpop.f32.mrb[54].mxu0  ;;  %v13834_v50 = vpop.f32.mrb[64].mxu1 }
 0xd00   :  { %v6125_v13 = vadd.f32 %v13821_v41, %v15908_v29  ;;  %v6231_v23 = vadd.f32 %v13834_v50, %v15913_v2  ;;  %v6119_v53 = vpop.f32.mrb[55].mxu0  ;;  %v6225_v17 = vpop.f32.mrb[65].mxu1 }
 0xd01   :  { %v6120_v4 = vadd.f32 %v15908_v29, %v6119_v53  ;;  %v6226_v44 = vadd.f32 %v15913_v2, %v6225_v17 }
 0xd02   :  { %v6383_v5 = vcombine.high %v6125_v13, %v6125_v13  ;;  %v6491_v16 = vcombine.high %v6231_v23, %v6231_v23  ;;  %v15926_v40 = vrot.slane %v6125_v13, %v14808_v24  ;;  %v15929_v6 = vrot.slane %v6231_v23, %v14808_v24 }
 0xd03   :  { %v6366_v52 = vcombine.high %v6120_v4, %v6120_v4  ;;  %v6373_v31 = vrot.slane %v6120_v4, %v14808_v24  ;;  %v6474_v36 = vcombine.high %v6226_v44, %v6226_v44  ;;  %v6481_v59 = vrot.slane %v6226_v44, %v14808_v24  ;;  %v13824_v42 = vpop.f32.mrb[56].mxu0  ;;  %v13837_v18 = vpop.f32.mrb[66].mxu1 }
 0xd04   :  { %v6397_v48 = vrot.slane %v6383_v5, %v14808_v24  ;;  %v6505_v30 = vrot.slane %v6491_v16, %v14808_v24  ;;  %v6129_v63 = vpop.f32.mrb[57].mxu0  ;;  %v6235_v46 = vpop.f32.mrb[67].mxu1  ;;  %v15942_v38 = vadd.f32 %v13824_v42, %v15908_v29 }
 0xd05   :  { %v6380_v12 = vrot.slane %v6366_v52, %v14808_v24  ;;  %v6381_v39 = vcombine.high %v6373_v31, %v6373_v31  ;;  %v6488_v47 = vrot.slane %v6474_v36, %v14808_v24  ;;  %v6489_v28 = vcombine.high %v6481_v59, %v6481_v59 }
 0xd06   :  { %v6399_v10 = vcombine.high %v6397_v48, %v6397_v48  ;;  %v6507_v8 = vcombine.high %v6505_v30, %v6505_v30  ;;  %v6130_v61 = vadd.f32 %v15908_v29, %v6129_v63  ;;  %v6236_v44 = vadd.f32 %v15913_v2, %v6235_v46 }
 0xd07   :  { %v6382_v49 = vcombine.high %v6380_v12, %v6380_v12  ;;  %v6684_v51 = vcombine.low %v6373_v31, %v6381_v39  ;;  %v6490_v37 = vcombine.high %v6488_v47, %v6488_v47  ;;  %v13827_v56 = vpop.f32.mrb[58].mxu0  ;;  %v13840_v43 = vpop.f32.mrb[68].mxu1  ;;  %v6700_v62 = vcombine.low %v6481_v59, %v6489_v28 }
 0xd08   :  { %v6139_v7 = vpop.f32.mrb[59].mxu0  ;;  %v6245_v27 = vpop.f32.mrb[69].mxu1  ;;  %v6896_v14 = vcombine.low %v6397_v48, %v6399_v10  ;;  %v6714_v45 = vrot.slane %v6488_v47, %v14808_v24  ;;  %v6912_v41 = vcombine.low %v6505_v30, %v6507_v8  ;;  %v6698_v50 = vrot.slane %v6380_v12, %v14808_v24 }
 0xd09   :  { %v15932_v21 = vcombine.low %v6382_v49, %v15926_v40  ;;  %v15935_v32 = vcombine.low %v6490_v37, %v15929_v6  ;;  %v6707_v34 = vrot.slane %v6700_v62, %v14808_v24  ;;  %v6691_v54 = vrot.slane %v6684_v51, %v14808_v24 }
 0xd0a   :  { %v6400_v53 = vcombine.high %v6130_v61, %v6130_v61  ;;  %v6407_v17 = vrot.slane %v6130_v61, %v14808_v24  ;;  %v6903_v4 = vrot.slane %v6896_v14, %v14808_v24  ;;  %v6417_v16 = vcombine.high %v15942_v38, %v15942_v38 }
 0xd0b   :  { %v15944_v57 = vpop.f32.mrb[60].mxu0  ;;  %v6715_v13 = vcombine.low %v6707_v34, %v6714_v45  ;;  %v6699_v5 = vcombine.low %v6691_v54, %v6698_v50  ;;  %v6241_v52 = vadd.f32 %v13837_v18, %v15913_v2  ;;  %v6508_v48 = vcombine.high %v6236_v44, %v6236_v44 }
 0xd0c   :  { %v15947_v23 = vpop.f32.mrb[61].mxu0  ;;  %v6910_v31 = vrot.slane %v6407_v17, %v14808_v24  ;;  %v6414_v59 = vrot.slane %v6400_v53, %v14808_v24  ;;  %v6415_v42 = vcombine.high %v6407_v17, %v6407_v17  ;;  %v6515_v46 = vrot.slane %v6236_v44, %v14808_v24 }
 0xd0d   :  { %13855 = vmatpush3.xpose.msk.msra.mxu1 %vm830_vm2, %v6715_v13  ;;  %v6919_v12 = vrot.slane %v6912_v41, %v14808_v24  ;;  %v6522_v18 = vrot.slane %v6508_v48, %v14808_v24  ;;  %v15972_v39 = vrot.slane %v6417_v16, %v14808_v24  ;;  %v6525_v47 = vcombine.high %v6241_v52, %v6241_v52 }
 0xd0e   :  { %13859 = vmatprep.subr.mxu1 %v17165_v15  ;;  %v15963_v63 = vcombine.low %v6903_v4, %v6910_v31  ;;  %v6523_v28 = vcombine.high %v6515_v46, %v6515_v46  ;;  %v6926_v10 = vrot.slane %v6515_v46, %v14808_v24  ;;  %v6416_v51 = vcombine.high %v6414_v59, %v6414_v59 }
 0xd0f   :  { %v15957_v36 = vpop.f32.mrb[62].mxu0  ;;  %v7002_v37 = vcombine.low %v6415_v42, %v6414_v59  ;;  %v6524_v8 = vcombine.high %v6522_v18, %v6522_v18  ;;  %v6145_v62 = vadd.f32 %v13827_v56, %v15908_v29  ;;  %v6506_v61 = vcombine.high %v15929_v6, %v15929_v6 }
 0xd10   :  { %v15961_v30 = vpop.f32.mrb[63].mxu0  ;;  %13857 = vmatmul.mubr.msk.f32.vlgmr.msra.gmra.mrb[70].mxu1 %vm830_vm2, %v6699_v5  ;;  %v15980_v34 = vcombine.low %v6919_v12, %v6926_v10  ;;  %v7018_v45 = vcombine.low %v6523_v28, %v6522_v18  ;;  %v6251_v41 = vadd.f32 %v13840_v43, %v15913_v2  ;;  %v6140_v50 = vadd.f32 %v15908_v29, %v6139_v7  ;;  %v16013_v28 = vld [vmem:[%s17196_s7 + $0x2] ss:$0 sm:$0xff] }
 0xd11   :  { %13861 = vmatprep.mubr.msk.f32.mxu1 %vm14559_vm1, %v17165_v15  ;;  %v7032_v54 = vrot.slane %v6524_v8, %v14808_v24  ;;  %v15988_v13 = vrot.slane %v6525_v47, %v14808_v24  ;;  %v6433_v56 = vcombine.high %v15972_v39, %v15972_v39  ;;  %v7009_v17 = vrot.slane %v7002_v37, %v14808_v24 }
 0xd12   :  { %v7025_v53 = vrot.slane %v7018_v45, %v14808_v24  ;;  %v7016_v4 = vrot.slane %v6416_v51, %v14808_v24  ;;  %v6451_v44 = vcombine.high %v6145_v62, %v6145_v62  ;;  %v6434_v6 = vcombine.high %v6140_v50, %v6140_v50 }
 0xd13   :  { %v15975_v49 = vpop.f32.mrb[64].mxu0  ;;  %v6559_v16 = vcombine.high %v6251_v41, %v6251_v41  ;;  %v6441_v43 = vrot.slane %v6140_v50, %v14808_v24  ;;  %v6246_v29 = vadd.f32 %v15913_v2, %v6245_v27  ;;  %v6820_v7 = vrot.slane %v6506_v61, %v14808_v24 }
 0xd14   :  { %v15978_v14 = vpop.f32.mrb[65].mxu0  ;;  %v7033_v5 = vcombine.low %v7025_v53, %v7032_v54  ;;  %v6813_v31 = vrot.slane %v15935_v32, %v14808_v24  ;;  %v6458_v59 = vrot.slane %v6145_v62, %v14808_v24  ;;  %v6566_v42 = vrot.slane %v6251_v41, %v14808_v24 }
 0xd15   :  { %v16003_v48 = vrot.slane %v6241_v52, %v14808_v24  ;;  %v6448_v46 = vrot.slane %v6434_v6, %v14808_v24  ;;  %v6449_v12 = vcombine.high %v6441_v43, %v6441_v43  ;;  %v7214_v18 = vcombine.low %v6433_v56, %v6441_v43 }
 0xd16   :  { %13870 = vmatpush3.xpose.msk.msra.mxu0 %vm830_vm2, %v7033_v5  ;;  %v7017_v47 = vcombine.low %v7009_v17, %v7016_v4  ;;  %v6465_v2 = vrot.slane %v6451_v44, %v14808_v24  ;;  %v6541_v27 = vcombine.high %v15988_v13, %v15988_v13  ;;  %v6542_v32 = vcombine.high %v6246_v29, %v6246_v29 }
 0xd17   :  { %13879 = vmatprep.subr.mxu0 %v17165_v15  ;;  %v6573_v52 = vrot.slane %v6559_v16, %v14808_v24  ;;  %v6450_v10 = vcombine.high %v6448_v46, %v6448_v46  ;;  %v7221_v51 = vrot.slane %v7214_v18, %v14808_v24  ;;  %v7228_v37 = vrot.slane %v6449_v12, %v14808_v24 }
 0xd18   :  { %v6466_v8 = vcombine.high %v6458_v59, %v6458_v59  ;;  %v6574_v62 = vcombine.high %v6566_v42, %v6566_v42  ;;  %v6549_v45 = vrot.slane %v6246_v29, %v14808_v24  ;;  %v6556_v61 = vrot.slane %v6542_v32, %v14808_v24 }
 0xd19   :  { %13872 = vmatmul.mubr.msk.f32.vlgmr.msra.gmra.mrb[66].mxu0 %vm830_vm2, %v7017_v47  ;;  %v7229_v54 = vcombine.low %v7221_v51, %v7228_v37  ;;  %v7320_v41 = vcombine.low %v6448_v46, %v6450_v10  ;;  %v6337_v50 = vadd.f32 %v15944_v57, %v16013_v28  ;;  %v6332_v53 = vadd.f32 %v16013_v28, %v15947_v23 }
 0xd1a   :  { %13881 = vmatprep.mubr.msk.f32.mxu0 %vm14559_vm1, %v17165_v15  ;;  %v7334_v56 = vrot.slane %v6458_v59, %v14808_v24  ;;  %v6557_v17 = vcombine.high %v6549_v45, %v6549_v45  ;;  %v6558_v4 = vcombine.high %v6556_v61, %v6556_v61  ;;  %v7230_v44 = vcombine.low %v6541_v27, %v6549_v45 }
 0xd1b   :  { %v6575_v6 = vcombine.high %v6573_v52, %v6573_v52  ;;  %v7327_v5 = vrot.slane %v7320_v41, %v14808_v24  ;;  %v6599_v16 = vcombine.high %v6337_v50, %v6337_v50  ;;  %v6582_v43 = vcombine.high %v6332_v53, %v6332_v53 }
 0xd1c   :  { %v7442_v29 = vcombine.low %v6574_v62, %v6573_v52  ;;  %v7237_v46 = vrot.slane %v7230_v44, %v14808_v24  ;;  %v7244_v57 = vrot.slane %v6557_v17, %v14808_v24  ;;  %v7336_v12 = vcombine.low %v6556_v61, %v6558_v4 }
 0xd1d   :  { %v6467_v23 = vcombine.high %v6465_v2, %v6465_v2  ;;  %v16032_v18 = vcombine.low %v7327_v5, %v7334_v56  ;;  %v6613_v47 = vrot.slane %v6599_v16, %v14808_v24  ;;  %v16036_v59 = vrot.slane %v6582_v43, %v14808_v24 }
 0xd1e   :  { %v7350_v27 = vrot.slane %v6566_v42, %v14808_v24  ;;  %v7245_v32 = vcombine.low %v7237_v46, %v7244_v57  ;;  %v7343_v10 = vrot.slane %v7336_v12, %v14808_v24  ;;  %v16042_v52 = vadd.f32 %v15957_v36, %v16013_v28 }
 0xd1f   :  { %v7426_v51 = vcombine.low %v6466_v8, %v6465_v2  ;;  %v6606_v37 = vrot.slane %v6337_v50, %v14808_v24  ;;  %v6615_v62 = vcombine.high %v6613_v47, %v6613_v47  ;;  %v6598_v45 = vcombine.high %v16036_v59, %v16036_v59 }
 0xd20   :  { %v7449_v61 = vrot.slane %v7442_v29, %v14808_v24  ;;  %v7456_v41 = vrot.slane %v6575_v6, %v14808_v24  ;;  %v16049_v56 = vcombine.low %v7343_v10, %v7350_v27  ;;  %v6633_v42 = vcombine.high %v16042_v52, %v16042_v52  ;;  %13880 = vmatpush3.xpose.msk.msra.mxu0 %vm830_vm2, %v7245_v32 }
 0xd21   :  { %v7818_v36 = vcombine.low %v6613_v47, %v6615_v62  ;;  %v7727_v17 = vcombine.low %v6598_v45, %v6606_v37  ;;  %v16056_v2 = vadd.f32 %v16013_v28, %v15961_v30  ;;  %v6821_v8 = vcombine.low %v6813_v31, %v6820_v7  ;;  %13889 = vmatprep.subr.mxu0 %v17165_v15 }
 0xd22   :  { %v6424_v50 = vrot.slane %v15942_v38, %v14808_v24  ;;  %v6540_v4 = vcombine.high %v16003_v48, %v16003_v48  ;;  %v7440_v44 = vrot.slane %v6467_v23, %v14808_v24  ;;  %v16066_v6 = vadd.f32 %v15975_v49, %v16013_v28 }
 0xd23   :  { %v7433_v5 = vrot.slane %v7426_v51, %v14808_v24  ;;  %v16070_v30 = vrot.slane %v6633_v42, %v14808_v24  ;;  %v16074_v7 = vrot.slane %v16056_v2, %v14808_v24  ;;  %v7825_v38 = vrot.slane %v7818_v36, %v14808_v24  ;;  %13860 = vmatpush3.xpose.msk.msra.mxu1 %vm830_vm2, %v6821_v8 }
 0xd24   :  { %v6398_v31 = vcombine.high %v15926_v40, %v15926_v40  ;;  %v7457_v16 = vcombine.low %v7449_v61, %v7456_v41  ;;  %v6614_v43 = vcombine.high %v6606_v37, %v6606_v37  ;;  %13864 = vmatprep.subr.mxu1 %v17165_v15  ;;  %v6797_v49 = vrot.slane %v15932_v21, %v14808_v24 }
 0xd25   :  { %v7832_v29 = vrot.slane %v16074_v7, %v14808_v24  ;;  %13882 = vmatmul.mubr.msk.f32.vlgmr.msra.gmra.mrb[68].mxu0 %vm830_vm2, %v7229_v54  ;;  %v6432_v46 = vcombine.high %v6424_v50, %v6424_v50  ;;  %v7124_v57 = vcombine.low %v16003_v48, %v6540_v4  ;;  %v7734_v12 = vrot.slane %v7727_v17, %v14808_v24 }
 0xd26   :  { %v6352_v40 = vadd.f32 %v16013_v28, %v15978_v14  ;;  %13890 = vmatpush3.xpose.msk.msra.mxu0 %vm830_vm2, %v7457_v16  ;;  %v7441_v23 = vcombine.low %v7433_v5, %v7440_v44  ;;  %v6589_v47 = vrot.slane %v6332_v53, %v14808_v24  ;;  %v6649_v21 = vcombine.high %v16070_v30, %v16070_v30 }
 0xd27   :  { %v16092_v27 = vcombine.low %v7825_v38, %v7832_v29  ;;  %13891 = vmatprep.mubr.msk.f32.mxu0 %vm14559_vm1, %v17165_v15  ;;  %v6804_v48 = vrot.slane %v6398_v31, %v14808_v24  ;;  %v7741_v54 = vrot.slane %v6614_v43, %v14808_v24  ;;  %13899 = vmatprep.subr.mxu0 %v17165_v15 }
 0xd28   :  { %v6650_v32 = vcombine.high %v6352_v40, %v6352_v40  ;;  %v6657_v14 = vrot.slane %v6352_v40, %v14808_v24  ;;  %v7108_v28 = vcombine.low %v6424_v50, %v6432_v46  ;;  %v7131_v37 = vrot.slane %v7124_v57, %v14808_v24 }
 0xd29   :  { %13892 = vmatmul.mubr.msk.f32.vlgmr.msra.gmra.mrb[70].mxu0 %vm830_vm2, %v7441_v23  ;;  %v6805_v10 = vcombine.low %v6797_v49, %v6804_v48  ;;  %v7742_v51 = vcombine.low %v7734_v12, %v7741_v54  ;;  %v6597_v62 = vcombine.high %v6589_v47, %v6589_v47  ;;  %v16109_v41 = vrot.slane %v16066_v6, %v14808_v24 }
 0xd2a   :  { %v6664_v53 = vrot.slane %v6650_v32, %v14808_v24  ;;  %13901 = vmatprep.mubr.msk.f32.mxu0 %vm14559_vm1, %v17165_v15  ;;  %v6665_v45 = vcombine.high %v6657_v14, %v6657_v14  ;;  %v8091_v61 = vcombine.low %v6649_v21, %v6657_v14  ;;  %v7138_v36 = vrot.slane %v15988_v13, %v14808_v24 }
 0xd2b   :  { %13862 = vmatmul.mubr.msk.f32.vlgmr.msra.gmra.mrb[72].mxu1 %vm830_vm2, %v6805_v10  ;;  %13900 = vmatpush3.msk.msra.mxu0 %vm1812_vm3, %v7742_v51  ;;  %v7115_v50 = vrot.slane %v7108_v28, %v14808_v24  ;;  %v7636_v5 = vcombine.low %v6589_v47, %v6597_v62  ;;  %v7122_v38 = vrot.slane %v15972_v39, %v14808_v24 }
 0xd2c   :  { %v6666_v42 = vcombine.high %v6664_v53, %v6664_v53  ;;  %v8098_v17 = vrot.slane %v8091_v61, %v14808_v24  ;;  %v8105_v8 = vrot.slane %v6665_v45, %v14808_v24  ;;  %13865 = vmatpush3.xpose.msk.msra.mxu1 %vm830_vm2, %v15980_v34  ;;  %13866 = vmatprep.mubr.msk.f32.mxu1 %vm14559_vm1, %v17165_v15 }
 0xd2d   :  { %13874 = vmatprep.subr.mxu1 %v17165_v15  ;;  %13909 = vmatprep.subr.mxu0 %v17165_v15  ;;  %v7139_v44 = vcombine.low %v7131_v37, %v7138_v36  ;;  %v8196_v34 = vrot.slane %v16109_v41, %v14808_v24  ;;  %v7123_v16 = vcombine.low %v7115_v50, %v7122_v38 }
 0xd2e   :  { %v8182_v4 = vcombine.low %v6664_v53, %v6666_v42  ;;  %v16124_v13 = vcombine.low %v8098_v17, %v8105_v8  ;;  %v7643_v39 = vrot.slane %v7636_v5, %v14808_v24  ;;  %v7650_v49 = vrot.slane %v16036_v59, %v14808_v24 }
 0xd2f   :  { %13867 = vmatmul.mubr.msk.f32.vlgmr.msra.gmra.mrb[74].mxu1 %vm830_vm2, %v15963_v63 }
 0xd30   :  { %v8189_v31 = vrot.slane %v8182_v4, %v14808_v24  ;;  %13875 = vmatpush3.xpose.msk.msra.mxu1 %vm830_vm2, %v7139_v44  ;;  %13876 = vmatprep.mubr.msk.f32.mxu1 %vm14559_vm1, %v17165_v15  ;;  %v7651_v63 = vcombine.low %v7643_v39, %v7650_v49 }
 0xd31   :  { %13884 = vmatprep.subr.mxu1 %v17165_v15 }
 0xd32   :  { %v16136_v43 = vcombine.low %v8189_v31, %v8196_v34 }
 0xd33   :  { %13877 = vmatmul.mubr.msk.f32.vlgmr.msra.gmra.mrb[76].mxu1 %vm830_vm2, %v7123_v16 }
 0xd34   :  { %13885 = vmatpush3.xpose.msk.msra.mxu1 %vm830_vm2, %v16049_v56  ;;  %13886 = vmatprep.mubr.msk.f32.mxu1 %vm14559_vm1, %v17165_v15 }
 0xd35   :  { %13894 = vmatprep.subr.mxu1 %v17165_v15 }
 0xd37   :  { %13887 = vmatmul.mubr.msk.f32.vlgmr.msra.gmra.mrb[78].mxu1 %vm830_vm2, %v16032_v18 }
 0xd38   :  { %13895 = vmatpush3.msk.msra.mxu1 %vm1812_vm3, %v7651_v63  ;;  %13896 = vmatprep.mubr.msk.f32.mxu1 %vm14559_vm1, %v17165_v15 }
 0xd39   :  { %13904 = vmatprep.subr.mxu1 %v17165_v15 }
 0xde3   :  { %v6786_v59 = vpop.f32.mrb[70].mxu1 }
 0xde4   :  { %v7532_v29 = vmul.f32 0.35355338, %v6786_v59  ;;  %v13858_v46 = vpop.f32.mrb[71].mxu1 }
 0xde6   :  { %v7540_v56 = vadd.f32 %v7532_v29, %v15025_v33 }
 0xde8   :  { %v7548_v57 = vsel %vm1703_vm4, %v7540_v56, -inf }
 0xde9   :  { %7549 = vmax.xlane.f32.xlu1 %v7548_v57 }
 0xdec   :  { %v7104_v12 = vpop.f32.mrb[66].mxu0 }
 0xded   :  { %v13873_v40 = vpop.f32.mrb[67].mxu0  ;;  %v7535_v54 = vmul.f32 0.35355338, %v7104_v12 }
 0xdef   :  { %v7543_v10 = vadd.f32 %v7535_v54, %v15035_v0 }
 0xdf1   :  { %v7557_v36 = vsel %vm1703_vm4, %v7543_v10, -inf }
 0xdf8   :  { %v7316_v23 = vpop.f32.mrb[68].mxu0 }
 0xdf9   :  { %v13883_v47 = vpop.f32.mrb[69].mxu0  ;;  %v7537_v37 = vmul.f32 0.35355338, %v7316_v23 }
 0xdfb   :  { %v7545_v44 = vadd.f32 %v7537_v37, %v15029_v19 }
 0xdfc   :  { %v7528_v18 = vpop.f32.mrb[70].mxu0 }
 0xdfd   :  { %v13893_v21 = vpop.f32.mrb[71].mxu0  ;;  %v7539_v8 = vmul.f32 0.35355338, %v7528_v18  ;;  %v7563_v39 = vsel %vm1703_vm4, %v7545_v44, -inf }
 0xdfe   :  { %v6892_v48 = vpop.f32.mrb[72].mxu1 }
 0xdff   :  { %v7533_v32 = vmul.f32 0.35355338, %v6892_v48  ;;  %v13863_v14 = vpop.f32.mrb[73].mxu1  ;;  %v7547_v49 = vadd.f32 %v7539_v8, %v15038_v1 }
 0xe01   :  { %v7541_v28 = vadd.f32 %v7533_v32, %v15022_v25  ;;  %v7569_v59 = vsel %vm1703_vm4, %v7547_v49, -inf }
 0xe02   :  { %v6998_v53 = vpop.f32.mrb[74].mxu1 }
 0xe03   :  { %v7534_v51 = vmul.f32 0.35355338, %v6998_v53  ;;  %v13868_v62 = vpop.f32.mrb[75].mxu1  ;;  %v7551_v45 = vsel %vm1703_vm4, %v7541_v28, -inf }
 0xe04   :  { %7552 = vmax.xlane.f32.xlu0 %v7551_v45 }
 0xe05   :  { %v7542_v61 = vadd.f32 %v7534_v51, %v15042_v35 }
 0xe06   :  { %v7210_v42 = vpop.f32.mrb[76].mxu1 }
 0xe07   :  { %v7536_v17 = vmul.f32 0.35355338, %v7210_v42  ;;  %v13878_v50 = vpop.f32.mrb[77].mxu1  ;;  %v7554_v4 = vsel %vm1703_vm4, %v7542_v61, -inf }
 0xe08   :  { %7555 = vmax.xlane.f32.xlu1 %v7554_v4  ;;  %7558 = vmax.xlane.f32.xlu0 %v7557_v36 }
 0xe09   :  { %v7544_v5 = vadd.f32 %v7536_v17, %v15048_v60 }
 0xe0a   :  { %v7422_v38 = vpop.f32.mrb[78].mxu1 }
 0xe0b   :  { %v7538_v34 = vmul.f32 0.35355338, %v7422_v38  ;;  %v13888_v31 = vpop.f32.mrb[79].mxu1  ;;  %v7560_v16 = vsel %vm1703_vm4, %v7544_v5, -inf }
 0xe0c   :  { %7561 = vmax.xlane.f32.xlu1 %v7560_v16  ;;  %7564 = vmax.xlane.f32.xlu0 %v7563_v39 }
 0xe0d   :  { %v7546_v63 = vadd.f32 %v7538_v34, %v15056_v26 }
 0xe0f   :  { %v7566_v29 = vsel %vm1703_vm4, %v7546_v63, -inf }
 0xe10   :  { %7570 = vmax.xlane.f32.xlu0 %v7569_v59  ;;  %7567 = vmax.xlane.f32.xlu1 %v7566_v29 }
 0xe76   :  { %v7550_v46 = vpop.xlane.xlu1 %7549 }
 0xe77   :  { %v7572_v57 = vsub.f32 %v7540_v56, %v7550_v46 }
 0xe79   :  { %v7580_v12 = vmul.f32 1.442695, %v7572_v57 }
 0xe7b   :  { %14426 = vpow2.f32 %v7580_v12 }
 0xe85   :  { %v14427_v40 = vpop.eup %14426 }
 0xe86   :  { %v7596_v23 = vsel %vm1703_vm4, %v14427_v40, 0.0 }
 0xe87   :  { %7597 = vadd.xlane.f32.xlu1 %v7596_v23 }
 0xe91   :  { %v7553_v47 = vpop.xlane.xlu0 %7552 }
 0xe92   :  { %v7573_v18 = vsub.f32 %v7541_v28, %v7553_v47 }
 0xe94   :  { %v7582_v21 = vmul.f32 1.442695, %v7573_v18  ;;  %v6616_v18 = vcombine.high %v16056_v2, %v16056_v2 }
 0xe95   :  { %v7556_v48 = vpop.xlane.xlu1 %7555  ;;  %v7559_v54 = vpop.xlane.xlu0 %7558 }
 0xe96   :  { %14428 = vpow2.f32 %v7582_v21  ;;  %v7574_v32 = vsub.f32 %v7542_v61, %v7556_v48  ;;  %v7575_v14 = vsub.f32 %v7543_v10, %v7559_v54  ;;  %v6640_v48 = vrot.slane %v16042_v52, %v14808_v24 }
 0xe97   :  { %v6630_v54 = vrot.slane %v6616_v18, %v14808_v24 }
 0xe98   :  { %v7584_v53 = vmul.f32 1.442695, %v7574_v32  ;;  %v7586_v51 = vmul.f32 1.442695, %v7575_v14 }
 0xe99   :  { %v7562_v37 = vpop.xlane.xlu1 %7561  ;;  %v7565_v62 = vpop.xlane.xlu0 %7564  ;;  %v6632_v14 = vcombine.high %v6630_v54, %v6630_v54 }
 0xe9a   :  { %14430 = vpow2.f32 %v7584_v53  ;;  %v7576_v56 = vsub.f32 %v7544_v5, %v7562_v37  ;;  %v7577_v45 = vsub.f32 %v7545_v44, %v7565_v62  ;;  %v6667_v37 = vcombine.high %v16066_v6, %v16066_v6 }
 0xe9b   :  { %14432 = vpow2.f32 %v7586_v51 }
 0xe9c   :  { %v7588_v42 = vmul.f32 1.442695, %v7576_v56  ;;  %v7590_v36 = vmul.f32 1.442695, %v7577_v45  ;;  %v7923_v56 = vrot.slane %v6632_v14, %v14808_v24 }
 0xe9d   :  { %v7571_v17 = vpop.xlane.xlu0 %7570  ;;  %v7568_v8 = vpop.xlane.xlu1 %7567 }
 0xe9e   :  { %14434 = vpow2.f32 %v7588_v42  ;;  %v7579_v28 = vsub.f32 %v7547_v49, %v7571_v17  ;;  %v7578_v50 = vsub.f32 %v7546_v63, %v7568_v8  ;;  %v6682_v42 = vcombine.high %v16109_v41, %v16109_v41 }
 0xe9f   :  { %14436 = vpow2.f32 %v7590_v36 }
 0xea0   :  { %v14429_v4 = vpop.eup %14428  ;;  %v7594_v38 = vmul.f32 1.442695, %v7579_v28  ;;  %v7592_v61 = vmul.f32 1.442695, %v7578_v50 }
 0xea1   :  { %v7599_v10 = vsel %vm1703_vm4, %v14429_v4, 0.0 }
 0xea2   :  { %14438 = vpow2.f32 %v7594_v38  ;;  %7600 = vadd.xlane.f32.xlu0 %v7599_v10 }
 0xea3   :  { %14440 = vpow2.f32 %v7592_v61 }
 0xea4   :  { %v16172_v34 = vpop.eup %14430 }
 0xea5   :  { %v16174_v44 = vpop.eup %14432  ;;  %v7602_v5 = vsel %vm1703_vm4, %v16172_v34, 0.0 }
 0xea6   :  { %v7605_v31 = vsel %vm1703_vm4, %v16174_v44, 0.0  ;;  %7603 = vadd.xlane.f32.xlu1 %v7602_v5  ;;  %v8014_v5 = vrot.slane %v16070_v30, %v14808_v24  ;;  %v13063_v30 = vld [vmem:[%s17190_s8 + $0x30] sm:$0xff] }
 0xea7   :  { %7606 = vadd.xlane.f32.xlu0 %v7605_v31 }
 0xea8   :  { %v16180_v16 = vpop.eup %14434 }
 0xea9   :  { %v16182_v39 = vpop.eup %14436  ;;  %v7608_v49 = vsel %vm1703_vm4, %v16180_v16, 0.0 }
 0xeaa   :  { %v7611_v63 = vsel %vm1703_vm4, %v16182_v39, 0.0  ;;  %7609 = vadd.xlane.f32.xlu1 %v7608_v49 }
 0xeab   :  { %7612 = vadd.xlane.f32.xlu0 %v7611_v63 }
 0xeac   :  { %v16188_v59 = vpop.eup %14438 }
 0xead   :  { %v16190_v29 = vpop.eup %14440  ;;  %v7617_v46 = vsel %vm1703_vm4, %v16188_v59, 0.0 }
 0xeae   :  { %v7614_v57 = vsel %vm1703_vm4, %v16190_v29, 0.0 }
 0xeaf   :  { %7618 = vadd.xlane.f32.xlu0 %v7617_v46  ;;  %7615 = vadd.xlane.f32.xlu1 %v7614_v57  ;;  %v13064_v57 = vld [vmem:[%s17190_s8 + $0x38] sm:$0xff]  ;;  %s17217_s8 = sld [smem:[#allocation22_spill]] }
 0xf14   :  { %v7598_v12 = vpop.xlane.xlu1 %7597 }
 0xf15   :  { %14442 = vrcp.f32 %v7598_v12  ;;  %v13074_v12 = vld [vmem:[%s17191_s2 + $0x38] sm:$0xff] }
 0xf1f   :  { %v14443_v23 = vpop.eup %14442 }
 0xf20   :  { %v7621_v47 = vmul.f32 %v14443_v23, %v14427_v40  ;;  %v6631_v40 = vcombine.high %v16074_v7, %v16074_v7  ;;  %v6681_v7 = vrot.slane %v6667_v37, %v14808_v24 }
 0xf22   :  { %13897 = vmatmul.mubr.msk.f32.vlgmr.msra.gmra.mrb[80].mxu1 %vm1808_vm5, %v7621_v47  ;;  %v7909_v53 = vcombine.low %v6631_v40, %v6630_v54  ;;  %v6683_v38 = vcombine.high %v6681_v7, %v6681_v7  ;;  %v8273_v61 = vcombine.low %v6682_v42, %v6681_v7 }
 0xf23   :  { %13905 = vmatpush3.msk.msra.mxu1 %vm1812_vm3, %v16092_v27  ;;  %13906 = vmatprep.mubr.msk.f32.mxu1 %vm14559_vm1, %v17165_v15  ;;  %v6648_v27 = vcombine.high %v6640_v48, %v6640_v48 }
 0xf24   :  { %13914 = vmatprep.subr.mxu1 %v17165_v15  ;;  %v7916_v52 = vrot.slane %v7909_v53, %v14808_v24  ;;  %v8280_v63 = vrot.slane %v8273_v61, %v14808_v24  ;;  %v8287_v46 = vrot.slane %v6683_v38, %v14808_v24 }
 0xf25   :  { %v8000_v62 = vcombine.low %v6640_v48, %v6648_v27 }
 0xf26   :  { %v7924_v6 = vcombine.low %v7916_v52, %v7923_v56  ;;  %v8288_v48 = vcombine.low %v8280_v63, %v8287_v46 }
 0xf27   :  { %v8007_v8 = vrot.slane %v8000_v62, %v14808_v24 }
 0xf29   :  { %v8015_v31 = vcombine.low %v8007_v8, %v8014_v5 }
 0xf2f   :  { %v7601_v21 = vpop.xlane.xlu0 %7600 }
 0xf30   :  { %14444 = vrcp.f32 %v7601_v21  ;;  %v14246_v21 = vpack.c.bf16 %v13064_v57, %v13063_v30 }
 0xf33   :  { %v7604_v32 = vpop.xlane.xlu1 %7603 }
 0xf34   :  { %v7607_v51 = vpop.xlane.xlu0 %7606  ;;  %14446 = vrcp.f32 %v7604_v32 }
 0xf35   :  { %14448 = vrcp.f32 %v7607_v51 }
 0xf37   :  { %v7610_v2 = vpop.xlane.xlu1 %7609 }
 0xf38   :  { %v7613_v45 = vpop.xlane.xlu0 %7612  ;;  %14450 = vrcp.f32 %v7610_v2 }
 0xf39   :  { %14452 = vrcp.f32 %v7613_v45 }
 0xf3a   :  { %v14445_v36 = vpop.eup %14444 }
 0xf3b   :  { %v7623_v17 = vmul.f32 %v14445_v36, %v14429_v4 }
 0xf3c   :  { %v7619_v28 = vpop.xlane.xlu0 %7618  ;;  %v7616_v50 = vpop.xlane.xlu1 %7615 }
 0xf3d   :  { %14454 = vrcp.f32 %v7619_v28  ;;  %13902 = vmatmul.mubr.msk.f32.vlgmr.msra.gmra.mrb[72].mxu0 %vm1808_vm5, %v7623_v17 }
 0xf3e   :  { %v14447_v10 = vpop.eup %14446  ;;  %14456 = vrcp.f32 %v7616_v50  ;;  %13910 = vmatpush3.msk.msra.mxu0 %vm1812_vm3, %v7924_v6  ;;  %13911 = vmatprep.mubr.msk.f32.mxu0 %vm14559_vm1, %v17165_v15 }
 0xf3f   :  { %v14449_v41 = vpop.eup %14448  ;;  %v7625_v4 = vmul.f32 %v14447_v10, %v16172_v34  ;;  %13919 = vmatprep.subr.mxu0 %v17165_v15 }
 0xf40   :  { %v7627_v49 = vmul.f32 %v14449_v41, %v16174_v44  ;;  %v13073_v44 = vld [vmem:[%s17191_s2 + $0x30] sm:$0xff]  ;;  %s17218_s2 = sld [smem:[#allocation23_spill]] }
 0xf41   :  { %13907 = vmatmul.mubr.msk.f32.vlgmr.msra.gmra.mrb[82].mxu1 %vm1808_vm5, %v7625_v4 }
 0xf42   :  { %v14451_v34 = vpop.eup %14450  ;;  %13912 = vmatmul.mubr.msk.f32.vlgmr.msra.gmra.mrb[74].mxu0 %vm1808_vm5, %v7627_v49  ;;  %13915 = vmatpush3.msk.msra.mxu1 %vm1812_vm3, %v8015_v31 }
 0xf43   :  { %v14453_v23 = vpop.eup %14452  ;;  %v7629_v47 = vmul.f32 %v14451_v34, %v16180_v16  ;;  %13920 = vmatpush3.msk.msra.mxu0 %vm1812_vm3, %v16124_v13  ;;  %13916 = vmatprep.mubr.msk.f32.mxu1 %vm14559_vm1, %v17165_v15  ;;  %v14250_v16 = vpack.c.bf16 %v13074_v12, %v13073_v44  ;;  %v13083_v13 = vld [vmem:[%s17193_s1 + $0x30] sm:$0xff] }
 0xf44   :  { %v7631_v18 = vmul.f32 %v14453_v23, %v16182_v39  ;;  %13921 = vmatprep.mubr.msk.f32.mxu0 %vm14559_vm1, %v17165_v15  ;;  %13924 = vmatprep.subr.mxu1 %v17165_v15  ;;  %v13084_v39 = vld [vmem:[%s17193_s1 + $0x38] sm:$0xff]  ;;  %s17219_s1 = sld [smem:[#allocation24_spill]] }
 0xf45   :  { %13929 = vmatprep.subr.mxu0 %v17165_v15  ;;  %13917 = vmatmul.mubr.msk.f32.vlgmr.msra.gmra.mrb[84].mxu1 %vm1808_vm5, %v7629_v47  ;;  %v14254_v27 = vpack.c.bf16 %v13084_v39, %v13083_v13 }
 0xf46   :  { %13922 = vmatmul.mubr.msk.f32.vlgmr.msra.gmra.mrb[76].mxu0 %vm1808_vm5, %v7631_v18  ;;  %13925 = vmatpush3.msk.msra.mxu1 %vm1812_vm3, %v16136_v43 }
 0xf47   :  { %v14455_v54 = vpop.eup %14454  ;;  %13930 = vmatpush3.msk.msra.mxu0 %vm1812_vm3, %v8288_v48  ;;  %13926 = vmatprep.mubr.msk.f32.mxu1 %vm14559_vm1, %v17165_v15 }
 0xf48   :  { %v14457_v40 = vpop.eup %14456  ;;  %v7635_v32 = vmul.f32 %v14455_v54, %v16188_v59  ;;  %13931 = vmatprep.mubr.msk.f32.mxu0 %vm14559_vm1, %v17165_v15  ;;  %14247 = vmatprep.subr.bf16.mxu1 %v14246_v21 }
 0xf49   :  { %v7633_v43 = vmul.f32 %v14457_v40, %v16190_v29  ;;  %14251 = vmatprep.subr.bf16.mxu0 %v14250_v16 }
 0xf4a   :  { %13932 = vmatmul.mubr.msk.f32.vlgmr.msra.gmra.mrb[78].mxu0 %vm1808_vm5, %v7635_v32 }
 0xf4b   :  { %13927 = vmatmul.mubr.msk.f32.vlgmr.msra.gmra.mrb[86].mxu1 %vm1808_vm5, %v7633_v43  ;;  %14253 = vmatpush3.bf16.msra.mxu0 %v14250_v16 }
 0xf4c   :  { %14249 = vmatpush3.bf16.msra.mxu1 %v14246_v21  ;;  %13938 = vmatprep.mubr.msk.f32.mxu1 %vm152_vm0, %v15849_v9 }
 0xf4d   :  { %13951 = vmatprep.mubr.msk.f32.mxu0 %vm152_vm0, %v15849_v9  ;;  %14255 = vmatprep.subr.bf16.mxu1 %v14254_v27 }
 0xf4e   :  { %13952 = vmatmul.mubr.msk.f32.vlgmr.msra.gmra.mrb[80].mxu0 %vm152_vm0, %v15852_v11  ;;  %13973 = vmatprep.subr.mxu0 %v17165_v15 }
 0xf4f   :  { %13939 = vmatmul.mubr.msk.f32.vlgmr.msra.gmra.mrb[88].mxu1 %vm152_vm0, %v15852_v11  ;;  %13954 = vmatprep.mubr.msk.f32.mxu0 %vm152_vm0, %v15863_v22 }
 0xf50   :  { %13941 = vmatprep.mubr.msk.f32.mxu1 %vm152_vm0, %v15863_v22  ;;  %14257 = vmatpush3.bf16.msra.mxu1 %v14254_v27 }
 0xf51   :  { %13988 = vmatprep.subr.mxu1 %v17165_v15 }
 0xf52   :  { %13955 = vmatmul.mubr.msk.f32.gmra.mrb[82].mxu0 %vm152_vm0, %v15866_v58 }
 0xf53   :  { %13942 = vmatmul.mubr.msk.f32.gmra.mrb[90].mxu1 %vm152_vm0, %v15866_v58  ;;  %13957 = vmatprep.mubr.msk.f32.mxu0 %vm152_vm0, %v15877_v55 }
 0xf54   :  { %13944 = vmatprep.mubr.msk.f32.mxu1 %vm152_vm0, %v15877_v55 }
 0xf56   :  { %13958 = vmatmul.mubr.msk.f32.gmra.mrb[84].mxu0 %vm152_vm0, %v15879_v3 }
 0xf57   :  { %13945 = vmatmul.mubr.msk.f32.gmra.mrb[92].mxu1 %vm152_vm0, %v15879_v3  ;;  %13975 = vmatprep.mubr.msk.f32.mxu0 %vm14559_vm1, %v17165_v15 }
 0xf58   :  { %13964 = vmatprep.mubr.msk.f32.mxu1 %vm152_vm0, %v15849_v9 }
 0xf5b   :  { %13965 = vmatmul.mubr.msk.f32.vlgmr.msra.gmra.mrb[94].mxu1 %vm152_vm0, %v15852_v11 }
 0xf5c   :  { %13967 = vmatprep.mubr.msk.f32.mxu1 %vm152_vm0, %v15863_v22 }
 0xf5f   :  { %13968 = vmatmul.mubr.msk.f32.gmra.mrb[96].mxu1 %vm152_vm0, %v15866_v58 }
 0xf60   :  { %13970 = vmatprep.mubr.msk.f32.mxu1 %vm152_vm0, %v15877_v55 }
 0xf63   :  { %13971 = vmatmul.mubr.msk.f32.gmra.mrb[98].mxu1 %vm152_vm0, %v15879_v3 }
 0xf64   :  { %13990 = vmatprep.mubr.msk.f32.mxu1 %vm14559_vm1, %v17165_v15 }
 0xff5   :  { %v7723_v59 = vpop.f32.mrb[80].mxu1 }
 0xff6   :  { %v13898_v29 = vpop.f32.mrb[81].mxu1  ;;  %v8379_v14 = vrot.slane %v7723_v59, %v14808_v24  ;;  %v8372_v53 = vcombine.high %v7723_v59, %v7723_v59 }
 0xff8   :  { %v8387_v51 = vcombine.high %v8379_v14, %v8379_v14  ;;  %v8386_v2 = vrot.slane %v8372_v53, %v14808_v24 }
 0xffa   :  { %v11171_v62 = vcombine.low %v8379_v14, %v8387_v51 }
 0xffc   :  { %v11179_v8 = vrot.slane %v11171_v62, %v14808_v24 }
0x1010   :  { %v7814_v37 = vpop.f32.mrb[72].mxu0 }
0x1011   :  { %v8388_v52 = vcombine.high %v7814_v37, %v7814_v37  ;;  %v8395_v56 = vrot.slane %v7814_v37, %v14808_v24  ;;  %v13903_v45 = vpop.f32.mrb[73].mxu0 }
0x1012   :  { %v16354_v45 = vld [vmem:[%s17195_s12 + $0x3] ss:$0 sm:$0xff] }
0x1013   :  { %v8402_v7 = vrot.slane %v8388_v52, %v14808_v24  ;;  %v8403_v42 = vcombine.high %v8395_v56, %v8395_v56  ;;  %v11172_v36 = vcombine.low %v8386_v2, %v8395_v56 }
0x1014   :  { %v7905_v17 = vpop.f32.mrb[82].mxu1 }
0x1015   :  { %v11186_v6 = vrot.slane %v11172_v36, %v14808_v24  ;;  %v8404_v28 = vcombine.high %v7905_v17, %v7905_v17  ;;  %v8411_v50 = vrot.slane %v7905_v17, %v14808_v24  ;;  %v7996_v38 = vpop.f32.mrb[74].mxu0  ;;  %v13908_v61 = vpop.f32.mrb[83].mxu1  ;;  %v11188_v10 = vcombine.low %v8403_v42, %v8402_v7  ;;  %v16359_v7 = vld [vmem:[%s17194_s9 + $0x3] ss:$0 sm:$0xff] }
0x1016   :  { %v8420_v5 = vcombine.high %v7996_v38, %v7996_v38  ;;  %v8427_v41 = vrot.slane %v7996_v38, %v14808_v24  ;;  %v13913_v4 = vpop.f32.mrb[75].mxu0 }
0x1017   :  { %v8418_v31 = vrot.slane %v8404_v28, %v14808_v24  ;;  %v8419_v49 = vcombine.high %v8411_v50, %v8411_v50  ;;  %v16323_v63 = vcombine.low %v11179_v8, %v11186_v6  ;;  %v11196_v21 = vrot.slane %v11188_v10, %v14808_v24 }
0x1018   :  { %v8434_v46 = vrot.slane %v8420_v5, %v14808_v24  ;;  %v8435_v30 = vcombine.high %v8427_v41, %v8427_v41  ;;  %v8087_v57 = vpop.f32.mrb[84].mxu1 }
0x1019   :  { %v11189_v34 = vcombine.low %v8411_v50, %v8419_v49  ;;  %v11205_v44 = vcombine.low %v8418_v31, %v8427_v41  ;;  %v8436_v12 = vcombine.high %v8087_v57, %v8087_v57  ;;  %v8443_v23 = vrot.slane %v8087_v57, %v14808_v24  ;;  %v16327_v47 = vpop.f32.mrb[76].mxu0  ;;  %v13918_v18 = vpop.f32.mrb[85].mxu1 }
0x101a   :  { %v11206_v48 = vcombine.low %v8435_v30, %v8434_v46  ;;  %v16332_v16 = vrot.slane %v16327_v47, %v14808_v24  ;;  %v13923_v13 = vpop.f32.mrb[77].mxu0 }
0x101b   :  { %v11203_v39 = vrot.slane %v11189_v34, %v14808_v24  ;;  %v11213_v54 = vrot.slane %v11205_v44, %v14808_v24  ;;  %v8450_v40 = vrot.slane %v8436_v12, %v14808_v24  ;;  %v8451_v32 = vcombine.high %v8443_v23, %v8443_v23 }
0x101c   :  { %v11220_v43 = vrot.slane %v11206_v48, %v14808_v24 }
0x101d   :  { %v16338_v27 = vcombine.low %v11196_v21, %v11203_v39  ;;  %v11222_v59 = vcombine.low %v8443_v23, %v8451_v32  ;;  %v11223_v29 = vcombine.low %v8450_v40, %v16332_v16  ;;  %v16341_v14 = vpop.f32.mrb[78].mxu0 }
0x101e   :  { %v16343_v53 = vpop.f32.mrb[86].mxu1  ;;  %v13933_v51 = vpop.f32.mrb[79].mxu0  ;;  %v16345_v37 = vcombine.low %v11213_v54, %v11220_v43  ;;  %v16366_v36 = vrot.slane %v16341_v14, %v14808_v24 }
0x101f   :  { %v11230_v2 = vrot.slane %v11222_v59, %v14808_v24  ;;  %v11237_v62 = vrot.slane %v11223_v29, %v14808_v24  ;;  %v8468_v52 = vcombine.high %v16343_v53, %v16343_v53  ;;  %v13928_v56 = vpop.f32.mrb[87].mxu1 }
0x1021   :  { %v16362_v42 = vrot.slane %v8468_v52, %v14808_v24  ;;  %v13953_v17 = vpop.f32.mrb[80].mxu0  ;;  %v16368_v8 = vcombine.low %v11230_v2, %v11237_v62  ;;  %v8452_v62 = vcombine.high %v16327_v47, %v16327_v47 }
0x1022   :  { %v13940_v6 = vpop.f32.mrb[88].mxu1  ;;  %v8691_v28 = vadd.f32 %v13953_v17, %v16354_v45  ;;  %v8685_v50 = vpop.f32.mrb[81].mxu0 }
0x1023   :  { %v8585_v61 = vadd.f32 %v13940_v6, %v16359_v7  ;;  %v8579_v10 = vpop.f32.mrb[89].mxu1  ;;  %v8686_v5 = vadd.f32 %v16354_v45, %v8685_v50 }
0x1024   :  { %v8951_v41 = vcombine.high %v8691_v28, %v8691_v28  ;;  %v8580_v4 = vadd.f32 %v16359_v7, %v8579_v10  ;;  %v16392_v52 = vrot.slane %v8691_v28, %v14808_v24 }
0x1025   :  { %v8843_v31 = vcombine.high %v8585_v61, %v8585_v61  ;;  %v13956_v49 = vpop.f32.mrb[82].mxu0  ;;  %v8934_v12 = vcombine.high %v8686_v5, %v8686_v5  ;;  %v8941_v23 = vrot.slane %v8686_v5, %v14808_v24  ;;  %v16385_v43 = vrot.slane %v8585_v61, %v14808_v24 }
0x1026   :  { %v8826_v46 = vcombine.high %v8580_v4, %v8580_v4  ;;  %v8833_v30 = vrot.slane %v8580_v4, %v14808_v24  ;;  %v13943_v57 = vpop.f32.mrb[90].mxu1  ;;  %v8695_v34 = vpop.f32.mrb[83].mxu0  ;;  %v8965_v21 = vrot.slane %v8951_v41, %v14808_v24 }
0x1027   :  { %v8857_v44 = vrot.slane %v8843_v31, %v14808_v24  ;;  %v8589_v18 = vpop.f32.mrb[91].mxu1  ;;  %v8948_v54 = vrot.slane %v8934_v12, %v14808_v24  ;;  %v8949_v40 = vcombine.high %v8941_v23, %v8941_v23  ;;  %v8595_v12 = vadd.f32 %v13943_v57, %v16359_v7 }
0x1028   :  { %v8840_v48 = vrot.slane %v8826_v46, %v14808_v24  ;;  %v8841_v13 = vcombine.high %v8833_v30, %v8833_v30  ;;  %v8967_v10 = vcombine.high %v8965_v21, %v8965_v21  ;;  %v8590_v47 = vadd.f32 %v16359_v7, %v8589_v18 }
0x1029   :  { %v8859_v39 = vcombine.high %v8857_v44, %v8857_v44  ;;  %v16382_v32 = vpop.f32.mrb[84].mxu0  ;;  %v8950_v56 = vcombine.high %v8948_v54, %v8948_v54  ;;  %v9160_v17 = vcombine.low %v8941_v23, %v8949_v40  ;;  %v9174_v41 = vrot.slane %v8948_v54, %v14808_v24 }
0x102a   :  { %v8842_v59 = vcombine.high %v8840_v48, %v8840_v48  ;;  %v9144_v29 = vcombine.low %v8833_v30, %v8841_v13  ;;  %v13946_v51 = vpop.f32.mrb[92].mxu1  ;;  %v16387_v2 = vpop.f32.mrb[85].mxu0  ;;  %v8466_v46 = vrot.slane %v8452_v62, %v14808_v24  ;;  %v8467_v30 = vcombine.high %v16332_v16, %v16332_v16 }
0x102b   :  { %v8599_v6 = vpop.f32.mrb[93].mxu1  ;;  %v9356_v50 = vcombine.low %v8857_v44, %v8859_v39  ;;  %v9167_v61 = vrot.slane %v9160_v17, %v14808_v24  ;;  %v16400_v4 = vcombine.low %v8950_v56, %v16392_v52  ;;  %v8484_v13 = vcombine.high %v16341_v14, %v16341_v14 }
0x102c   :  { %v16395_v5 = vcombine.low %v8842_v59, %v16385_v43  ;;  %v9151_v28 = vrot.slane %v9144_v29, %v14808_v24  ;;  %v9158_v39 = vrot.slane %v8840_v48, %v14808_v24  ;;  %v8860_v18 = vcombine.high %v8590_v47, %v8590_v47 }
0x102d   :  { %v9175_v44 = vcombine.low %v9167_v61, %v9174_v41  ;;  %v8867_v54 = vrot.slane %v8590_v47, %v14808_v24  ;;  %v9372_v40 = vcombine.low %v8965_v21, %v8967_v10  ;;  %v9363_v59 = vrot.slane %v9356_v50, %v14808_v24 }
0x102e   :  { %v16404_v31 = vpop.f32.mrb[94].mxu1  ;;  %v8696_v29 = vadd.f32 %v16354_v45, %v8695_v34  ;;  %v8475_v16 = vrot.slane %v16343_v53, %v14808_v24  ;;  %v9159_v57 = vcombine.low %v9151_v28, %v9158_v39  ;;  %v8874_v62 = vrot.slane %v8860_v18, %v14808_v24 }
0x102f   :  { %v16410_v23 = vpop.f32.mrb[95].mxu1  ;;  %13974 = vmatpush3.xpose.msk.msra.mxu0 %vm830_vm2, %v9175_v44  ;;  %v8875_v56 = vcombine.high %v8867_v54, %v8867_v54  ;;  %v8877_v48 = vcombine.high %v8595_v12, %v8595_v12  ;;  %v9370_v21 = vrot.slane %v8867_v54, %v14808_v24  ;;  %v16428_v34 = vcombine.low %v8467_v30, %v8466_v46 }
0x1030   :  { %13978 = vmatprep.subr.mxu0 %v17165_v15  ;;  %v8968_v17 = vcombine.high %v8696_v29, %v8696_v29  ;;  %v8498_v10 = vrot.slane %v8484_v13, %v14808_v24  ;;  %v16432_v53 = vadd.f32 %v13956_v49, %v16354_v45  ;;  %v8975_v61 = vrot.slane %v8696_v29, %v14808_v24 }
0x1031   :  { %v8499_v41 = vcombine.high %v16366_v36, %v16366_v36  ;;  %v16438_v47 = vcombine.low %v9363_v59, %v9370_v21  ;;  %v9379_v44 = vrot.slane %v9372_v40, %v14808_v24  ;;  %v8483_v46 = vcombine.high %v8475_v16, %v8475_v16 }
0x1032   :  { %v16422_v14 = vpop.f32.mrb[96].mxu1  ;;  %13976 = vmatmul.mubr.msk.f32.vlgmr.msra.gmra.mrb[86].mxu0 %vm830_vm2, %v9159_v57  ;;  %v8982_v28 = vrot.slane %v8968_v17, %v14808_v24  ;;  %v8876_v30 = vcombine.high %v8874_v62, %v8874_v62  ;;  %v9462_v49 = vcombine.low %v8875_v56, %v8874_v62  ;;  %v8983_v13 = vcombine.high %v8975_v61, %v8975_v61 }
0x1033   :  { %v16426_v50 = vpop.f32.mrb[97].mxu1  ;;  %13980 = vmatprep.mubr.msk.f32.mxu0 %vm14559_vm1, %v17165_v15  ;;  %v16447_v18 = vrot.slane %v8877_v48, %v14808_v24  ;;  %v9386_v59 = vrot.slane %v8975_v61, %v14808_v24  ;;  %v8605_v29 = vadd.f32 %v13946_v51, %v16359_v7  ;;  %v8985_v21 = vcombine.high %v16432_v53, %v16432_v53 }
0x1034   :  { %v8984_v54 = vcombine.high %v8982_v28, %v8982_v28  ;;  %v9478_v62 = vcombine.low %v8983_v13, %v8982_v28  ;;  %v8711_v56 = vadd.f32 %v16382_v32, %v16354_v45  ;;  %v8966_v48 = vcombine.high %v16392_v52, %v16392_v52 }
0x1035   :  { %v16461_v17 = vcombine.low %v9379_v44, %v9386_v59  ;;  %v8600_v51 = vadd.f32 %v16359_v7, %v8599_v6  ;;  %v16465_v38 = vcombine.low %v8499_v41, %v8498_v10  ;;  %v9469_v40 = vrot.slane %v9462_v49, %v14808_v24 }
0x1036   :  { %v16444_v39 = vpop.f32.mrb[98].mxu1  ;;  %v9492_v61 = vrot.slane %v8984_v54, %v14808_v24  ;;  %v9476_v15 = vrot.slane %v8876_v30, %v14808_v24  ;;  %v9485_v28 = vrot.slane %v9478_v62, %v14808_v24  ;;  %v16470_v13 = vcombine.low %v8475_v16, %v8483_v46 }
0x1037   :  { %v16451_v57 = vpop.f32.mrb[99].mxu1  ;;  %v8911_v32 = vcombine.high %v8605_v29, %v8605_v29  ;;  %v8893_v52 = vcombine.high %v16447_v18, %v16447_v18  ;;  %v8894_v44 = vcombine.high %v8600_v51, %v8600_v51  ;;  %v16475_v59 = vrot.slane %v8985_v21, %v14808_v24 }
0x1038   :  { %v9493_v54 = vcombine.low %v9485_v28, %v9492_v61  ;;  %v9019_v7 = vcombine.high %v8711_v56, %v8711_v56  ;;  %v8901_v6 = vrot.slane %v8600_v51, %v14808_v24  ;;  %v16479_v10 = vrot.slane %v8966_v48, %v14808_v24 }
0x1039   :  { %v16482_v41 = vrot.slane %v8595_v12, %v14808_v24  ;;  %v9026_v16 = vrot.slane %v8711_v56, %v14808_v24  ;;  %v8908_v46 = vrot.slane %v8894_v44, %v14808_v24  ;;  %v9273_v30 = vrot.slane %v16400_v4, %v14808_v24  ;;  %v13086_v56 = vld [vmem:[%s17196_s7 + $0x3] ss:$0 sm:$0xff] }
0x103a   :  { %v9477_v49 = vcombine.low %v9469_v40, %v9476_v15  ;;  %v8909_v21 = vcombine.high %v8901_v6, %v8901_v6  ;;  %v9674_v62 = vcombine.low %v8893_v52, %v8901_v6  ;;  %13989 = vmatpush3.xpose.msk.msra.mxu1 %vm830_vm2, %v9493_v54  ;;  %v8918_v61 = vrot.slane %v8605_v29, %v14808_v24 }
0x103b   :  { %v8925_v48 = vrot.slane %v8911_v32, %v14808_v24  ;;  %v8910_v51 = vcombine.high %v8908_v46, %v8908_v46  ;;  %v8706_v12 = vadd.f32 %v16354_v45, %v16387_v2  ;;  %v17207_v28 = vmov 0.0  }
0x103c   :  { %13998 = vmatprep.subr.mxu1 %v17207_v28  ;;  %v9033_v15 = vrot.slane %v9019_v7, %v14808_v24  ;;  %v9681_v4 = vrot.slane %v9674_v62, %v14808_v24  ;;  %v9688_v40 = vrot.slane %v8909_v21, %v14808_v24  ;;  %v9001_v29 = vcombine.high %v16475_v59, %v16475_v59 }
0x103d   :  { %v9034_v32 = vcombine.high %v9026_v16, %v9026_v16  ;;  %v9780_v52 = vcombine.low %v8908_v46, %v8910_v51  ;;  %v9002_v44 = vcombine.high %v8706_v12, %v8706_v12  ;;  %v9009_v45 = vrot.slane %v8706_v12, %v14808_v24  ;;  %13991 = vmatmul.mubr.msk.f32.vlgmr.msra.gmra.mrb[100].mxu1 %vm830_vm2, %v9477_v49 }
0x103e   :  { %v9689_v2 = vcombine.low %v9681_v4, %v9688_v40  ;;  %v8797_v54 = vadd.f32 %v16404_v31, %v13086_v56  ;;  %v8792_v6 = vadd.f32 %v13086_v56, %v16410_v23  ;;  %v16507_v7 = vadd.f32 %v16422_v14, %v13086_v56  ;;  %14000 = vmatprep.mubr.msk.f32.mxu1 %vm14559_vm1, %v17207_v28 }
0x103f   :  { %v9794_v21 = vrot.slane %v8918_v61, %v14808_v24  ;;  %v9787_v46 = vrot.slane %v9780_v52, %v14808_v24  ;;  %v9016_v62 = vrot.slane %v9002_v44, %v14808_v24  ;;  %v9017_v51 = vcombine.high %v9009_v45, %v9009_v45 }
0x1040   :  { %v8926_v12 = vcombine.high %v8918_v61, %v8918_v61  ;;  %v9690_v49 = vcombine.low %v9001_v29, %v9009_v45  ;;  %v9059_v4 = vcombine.high %v8797_v54, %v8797_v54  ;;  %v9042_v40 = vcombine.high %v8792_v6, %v8792_v6 }
0x1041   :  { %v9035_v31 = vcombine.high %v9033_v15, %v9033_v15  ;;  %v16514_v20 = vcombine.low %v9787_v46, %v9794_v21  ;;  %v9018_v23 = vcombine.high %v9016_v62, %v9016_v62  ;;  %v9704_v14 = vrot.slane %v9017_v51, %v14808_v24 }
0x1042   :  { %v9902_v55 = vcombine.low %v9034_v32, %v9033_v15  ;;  %v9697_v3 = vrot.slane %v9690_v49, %v14808_v24  ;;  %v9073_v22 = vrot.slane %v9059_v4, %v14808_v24  ;;  %v16520_v52 = vrot.slane %v9042_v40, %v14808_v24 }
0x1043   :  { %v8992_v61 = vrot.slane %v16432_v53, %v14808_v24  ;;  %v8927_v29 = vcombine.high %v8925_v48, %v8925_v48  ;;  %v9796_v44 = vcombine.low %v9016_v62, %v9018_v23  ;;  %v9093_v45 = vcombine.high %v16507_v7, %v16507_v7 }
0x1044   :  { %v9705_v21 = vcombine.low %v9697_v3, %v9704_v14  ;;  %v9066_v46 = vrot.slane %v8797_v54, %v14808_v24  ;;  %v9075_v51 = vcombine.high %v9073_v22, %v9073_v22  ;;  %v9058_v15 = vcombine.high %v16520_v52, %v16520_v52 }
0x1045   :  { %v9886_v32 = vcombine.low %v8926_v12, %v8925_v48  ;;  %v9810_v49 = vrot.slane %v9026_v16, %v14808_v24  ;;  %v9916_v4 = vrot.slane %v9035_v31, %v14808_v24  ;;  %v9803_v40 = vrot.slane %v9796_v44, %v14808_v24 }
0x1046   :  { %v9909_v53 = vrot.slane %v9902_v55, %v14808_v24  ;;  %v10278_v62 = vcombine.low %v9073_v22, %v9075_v51  ;;  %v10187_v23 = vcombine.low %v9058_v15, %v9066_v46  ;;  %v16534_v58 = vadd.f32 %v13086_v56, %v16426_v50  ;;  %13999 = vmatpush3.xpose.msk.msra.mxu1 %vm830_vm2, %v9705_v21 }
0x1047   :  { %v9000_v3 = vcombine.high %v8992_v61, %v8992_v61  ;;  %v16537_v54 = vcombine.low %v9803_v40, %v9810_v49  ;;  %v16540_v48 = vrot.slane %v9093_v45, %v14808_v24  ;;  %v9281_v16 = vcombine.low %v9273_v30, %v16479_v10  ;;  %14008 = vmatprep.subr.mxu1 %v17207_v28 }
0x1048   :  { %v8858_v55 = vcombine.high %v16385_v43, %v16385_v43  ;;  %v8892_v22 = vcombine.high %v16482_v41, %v16482_v41  ;;  %v9900_v50 = vrot.slane %v8927_v29, %v14808_v24  ;;  %v16551_v12 = vrot.slane %v16534_v58, %v14808_v24 }
0x1049   :  { %v9893_v31 = vrot.slane %v9886_v32, %v14808_v24  ;;  %v10285_v14 = vrot.slane %v10278_v62, %v14808_v24  ;;  %13979 = vmatpush3.xpose.msk.msra.mxu0 %vm830_vm2, %v9281_v16  ;;  %v16557_v10 = vadd.f32 %v16444_v39, %v13086_v56  ;;  %v8812_v43 = vadd.f32 %v13086_v56, %v16451_v57 }
0x104a   :  { %v9257_v30 = vrot.slane %v16395_v5, %v14808_v24  ;;  %v9917_v44 = vcombine.low %v9909_v53, %v9916_v4  ;;  %v9074_v29 = vcombine.high %v9066_v46, %v9066_v46  ;;  %v10292_v45 = vrot.slane %v16551_v12, %v14808_v24  ;;  %13983 = vmatprep.subr.mxu0 %v17207_v28 }
0x104b   :  { %v9584_v21 = vcombine.low %v8992_v61, %v9000_v3  ;;  %v9049_v51 = vrot.slane %v8792_v6, %v14808_v24  ;;  %v9109_v15 = vcombine.high %v16540_v48, %v16540_v48  ;;  %v9110_v39 = vcombine.high %v8812_v43, %v8812_v43  ;;  %14001 = vmatmul.mubr.msk.f32.vlgmr.msra.gmra.mrb[102].mxu1 %vm830_vm2, %v9689_v2 }
0x104c   :  { %v11271_v57 = vrot.slane %v16465_v38, %v14808_v24  ;;  %v9264_v5 = vrot.slane %v8858_v55, %v14808_v24  ;;  %v10194_v56 = vrot.slane %v10187_v23, %v14808_v24  ;;  %v16573_v46 = vcombine.low %v10285_v14, %v10292_v45  ;;  %14009 = vmatpush3.xpose.msk.msra.mxu1 %vm830_vm2, %v9917_v44 }
0x104d   :  { %v11254_v6 = vrot.slane %v16470_v13, %v14808_v24  ;;  %v9568_v61 = vcombine.low %v16482_v41, %v8892_v22  ;;  %v9901_v32 = vcombine.low %v9893_v31, %v9900_v50  ;;  %v9117_v49 = vrot.slane %v8812_v43, %v14808_v24  ;;  %14010 = vmatprep.mubr.msk.f32.mxu1 %vm14559_vm1, %v17207_v28 }
0x104e   :  { %v17208_v38 = vcombine.low %v16362_v42, %v16366_v36  ;;  %v10201_v4 = vrot.slane %v9074_v29, %v14808_v24  ;;  %v9124_v40 = vrot.slane %v9110_v39, %v14808_v24  ;;  %v9265_v53 = vcombine.low %v9257_v30, %v9264_v5  ;;  %14018 = vmatprep.subr.mxu1 %v17207_v28 }
0x104f   :  { %v9591_v13 = vrot.slane %v9584_v21, %v14808_v24  ;;  %v9057_v41 = vcombine.high %v9049_v51, %v9049_v51  ;;  %v9125_v62 = vcombine.high %v9117_v49, %v9117_v49  ;;  %v10551_v23 = vcombine.low %v9109_v15, %v9117_v49  ;;  %14011 = vmatmul.mubr.msk.f32.vlgmr.msra.gmra.mrb[104].mxu1 %vm830_vm2, %v9901_v32 }
0x1050   :  { %v11264_v2 = vrot.slane %v17208_v38, %v14808_v24  ;;  %v16593_v3 = vrot.slane %v16557_v10, %v14808_v24  ;;  %v9126_v42 = vcombine.high %v9124_v40, %v9124_v40  ;;  %13981 = vmatmul.mubr.msk.f32.vlgmr.msra.gmra.mrb[88].mxu0 %vm830_vm2, %v9265_v53  ;;  %v10202_v36 = vcombine.low %v10194_v56, %v10201_v4 }
0x1051   :  { %14020 = vmatprep.mubr.msk.f32.mxu1 %vm14559_vm1, %v17207_v28  ;;  %v9575_v16 = vrot.slane %v9568_v61, %v14808_v24  ;;  %v9598_v55 = vrot.slane %v16475_v59, %v14808_v24  ;;  %v10558_v22 = vrot.slane %v10551_v23, %v14808_v24  ;;  %v10565_v50 = vrot.slane %v9125_v62, %v14808_v24 }
0x1052   :  { %13984 = vmatpush3.xpose.msk.msra.mxu0 %vm830_vm2, %v16461_v17  ;;  %v10642_v31 = vcombine.low %v9124_v40, %v9126_v42  ;;  %13985 = vmatprep.mubr.msk.f32.mxu0 %vm14559_vm1, %v17207_v28  ;;  %v17209_v14 = vrot.slane %v16428_v34, %v14808_v24  ;;  %v16613_v30 = vcombine.low %v11264_v2, %v11271_v57 }
0x1053   :  { %13993 = vmatprep.subr.mxu0 %v17207_v28  ;;  %v9599_v59 = vcombine.low %v9591_v13, %v9598_v55  ;;  %v10096_v44 = vcombine.low %v9049_v51, %v9057_v41  ;;  %v16615_v29 = vcombine.low %v10558_v22, %v10565_v50  ;;  %14019 = vmatpush3.msk.msra.mxu1 %vm1812_vm3, %v10202_v36 }
0x1054   :  { %v16611_v43 = vcombine.low %v17209_v14, %v11254_v6  ;;  %v9582_v17 = vrot.slane %v16447_v18, %v14808_v24  ;;  %v10656_v45 = vrot.slane %v16593_v3, %v14808_v24  ;;  %v10649_v21 = vrot.slane %v10642_v31, %v14808_v24  ;;  %14028 = vmatprep.subr.mxu1 %v17207_v28 }
0x1055   :  { %13986 = vmatmul.mubr.msk.f32.vlgmr.msra.gmra.mrb[90].mxu0 %vm830_vm2, %v16438_v47  ;;  %v10103_v18 = vrot.slane %v10096_v44, %v14808_v24  ;;  %v10110_v15 = vrot.slane %v16520_v52, %v14808_v24 }
0x1056   :  { %13994 = vmatpush3.xpose.msk.msra.mxu0 %vm830_vm2, %v9599_v59  ;;  %13995 = vmatprep.mubr.msk.f32.mxu0 %vm14559_vm1, %v17207_v28  ;;  %v9583_v34 = vcombine.low %v9575_v16, %v9582_v17  ;;  %v16629_v51 = vcombine.low %v10649_v21, %v10656_v45 }
0x1057   :  { %14003 = vmatprep.subr.mxu0 %v17207_v28  ;;  %v10111_v47 = vcombine.low %v10103_v18, %v10110_v15 }
0x1059   :  { %13996 = vmatmul.mubr.msk.f32.vlgmr.msra.gmra.mrb[92].mxu0 %vm830_vm2, %v9583_v34 }
0x105a   :  { %14004 = vmatpush3.xpose.msk.msra.mxu0 %vm830_vm2, %v16537_v54  ;;  %14005 = vmatprep.mubr.msk.f32.mxu0 %vm14559_vm1, %v17207_v28 }
0x105b   :  { %14013 = vmatprep.subr.mxu0 %v17207_v28 }
0x105d   :  { %14006 = vmatmul.mubr.msk.f32.vlgmr.msra.gmra.mrb[94].mxu0 %vm830_vm2, %v16514_v20 }
0x105e   :  { %14014 = vmatpush3.msk.msra.mxu0 %vm1812_vm3, %v10111_v47  ;;  %14015 = vmatprep.mubr.msk.f32.mxu0 %vm14559_vm1, %v17207_v28 }
0x105f   :  { %14023 = vmatprep.subr.mxu0 %v17207_v28 }
0x1105   :  { %v9246_v52 = vpop.f32.mrb[86].mxu0 }
0x1106   :  { %v9992_v39 = vmul.f32 0.35355338, %v9246_v52  ;;  %v13977_v57 = vpop.f32.mrb[87].mxu0 }
0x1108   :  { %v10000_v54 = vadd.f32 %v9992_v39, %v15025_v33 }
0x110a   :  { %v10008_v5 = vsel %vm1703_vm4, %v10000_v54, -inf }
0x110b   :  { %10009 = vmax.xlane.f32.xlu0 %v10008_v5 }
0x1110   :  { %v9564_v56 = vpop.f32.mrb[100].mxu1 }
0x1111   :  { %v13992_v6 = vpop.f32.mrb[101].mxu1  ;;  %v9995_v38 = vmul.f32 0.35355338, %v9564_v56 }
0x1113   :  { %v10003_v41 = vadd.f32 %v9995_v38, %v15035_v0 }
0x1115   :  { %v10017_v55 = vsel %vm1703_vm4, %v10003_v41, -inf }
0x111e   :  { %v9776_v61 = vpop.f32.mrb[102].mxu1 }
0x111f   :  { %v14002_v32 = vpop.f32.mrb[103].mxu1  ;;  %v9997_v33 = vmul.f32 0.35355338, %v9776_v61 }
0x1122   :  { %v9988_v20 = vpop.f32.mrb[104].mxu1 }
0x1123   :  { %v9352_v49 = vpop.f32.mrb[88].mxu0  ;;  %v14012_v2 = vpop.f32.mrb[105].mxu1  ;;  %v9999_v50 = vmul.f32 0.35355338, %v9988_v20 }
0x1124   :  { %v9993_v4 = vmul.f32 0.35355338, %v9352_v49  ;;  %v13982_v40 = vpop.f32.mrb[89].mxu0 }
0x1125   :  { %v10007_v21 = vadd.f32 %v9999_v50, %v15038_v1 }
0x1126   :  { %v10001_v53 = vadd.f32 %v9993_v4, %v15022_v25  ;;  %v10005_v25 = vadd.f32 %v9997_v33, %v15029_v19 }
0x1127   :  { %v10029_v18 = vsel %vm1703_vm4, %v10007_v21, -inf }
0x1128   :  { %v9458_v13 = vpop.f32.mrb[90].mxu0  ;;  %v10011_v42 = vsel %vm1703_vm4, %v10001_v53, -inf  ;;  %v10023_v45 = vsel %vm1703_vm4, %v10005_v25, -inf }
0x1129   :  { %v9994_v62 = vmul.f32 0.35355338, %v9458_v13  ;;  %v13987_v23 = vpop.f32.mrb[91].mxu0  ;;  %10012 = vmax.xlane.f32.xlu1 %v10011_v42 }
0x112b   :  { %v10002_v36 = vadd.f32 %v9994_v62, %v15042_v35 }
0x112c   :  { %v9670_v16 = vpop.f32.mrb[92].mxu0 }
0x112d   :  { %v9996_v22 = vmul.f32 0.35355338, %v9670_v16  ;;  %v13997_v31 = vpop.f32.mrb[93].mxu0  ;;  %v10014_v14 = vsel %vm1703_vm4, %v10002_v36, -inf  ;;  %10018 = vmax.xlane.f32.xlu1 %v10017_v55 }
0x112e   :  { %10015 = vmax.xlane.f32.xlu0 %v10014_v14 }
0x112f   :  { %v10004_v0 = vadd.f32 %v9996_v22, %v15048_v60 }
0x1130   :  { %v9882_v59 = vpop.f32.mrb[94].mxu0 }
0x1131   :  { %v9998_v44 = vmul.f32 0.35355338, %v9882_v59  ;;  %v14007_v17 = vpop.f32.mrb[95].mxu0  ;;  %v10020_v35 = vsel %vm1703_vm4, %v10004_v0, -inf  ;;  %10024 = vmax.xlane.f32.xlu1 %v10023_v45 }
0x1132   :  { %10021 = vmax.xlane.f32.xlu0 %v10020_v35 }
0x1133   :  { %v10006_v34 = vadd.f32 %v9998_v44, %v15056_v26 }
0x1135   :  { %v10026_v19 = vsel %vm1703_vm4, %v10006_v34, -inf  ;;  %10030 = vmax.xlane.f32.xlu1 %v10029_v18  ;;  %v9076_v18 = vcombine.high %v16534_v58, %v16534_v58 }
0x1136   :  { %10027 = vmax.xlane.f32.xlu0 %v10026_v19 }
0x1198   :  { %v10010_v60 = vpop.xlane.xlu0 %10009 }
0x1199   :  { %v10032_v15 = vsub.f32 %v10000_v54, %v10010_v60  ;;  %v9090_v60 = vrot.slane %v9076_v18, %v14808_v24 }
0x119b   :  { %v10040_v47 = vmul.f32 1.442695, %v10032_v15  ;;  %v9091_v15 = vcombine.high %v16551_v12, %v16551_v12 }
0x119d   :  { %14458 = vpow2.f32 %v10040_v47  ;;  %v9100_v47 = vrot.slane %v16507_v7, %v14808_v24  ;;  %v9142_v7 = vcombine.high %v16593_v3, %v16593_v3 }
0x11a7   :  { %v14459_v52 = vpop.eup %14458 }
0x11a8   :  { %v10056_v39 = vsel %vm1703_vm4, %v14459_v52, 0.0 }
0x11a9   :  { %10057 = vadd.xlane.f32.xlu0 %v10056_v39  ;;  %v9092_v39 = vcombine.high %v9090_v60, %v9090_v60 }
0x11ab   :  { %v10383_v12 = vrot.slane %v9092_v39, %v14808_v24 }
0x11b6   :  { %v10013_v57 = vpop.xlane.xlu1 %10012 }
0x11b7   :  { %v10033_v1 = vsub.f32 %v10001_v53, %v10013_v57  ;;  %v10369_v57 = vcombine.low %v9091_v15, %v9090_v60 }
0x11b9   :  { %v10042_v5 = vmul.f32 1.442695, %v10033_v1 }
0x11ba   :  { %v10019_v56 = vpop.xlane.xlu1 %10018 }
0x11bb   :  { %v10016_v6 = vpop.xlane.xlu0 %10015  ;;  %14460 = vpow2.f32 %v10042_v5  ;;  %v10035_v26 = vsub.f32 %v10003_v41, %v10019_v56  ;;  %v9108_v5 = vcombine.high %v9100_v47, %v9100_v47 }
0x11bc   :  { %v10034_v61 = vsub.f32 %v10002_v36, %v10016_v6  ;;  %v10376_v6 = vrot.slane %v10369_v57, %v14808_v24 }
0x11bd   :  { %v10046_v32 = vmul.f32 1.442695, %v10035_v26 }
0x11be   :  { %v10044_v20 = vmul.f32 1.442695, %v10034_v61  ;;  %v10025_v49 = vpop.xlane.xlu1 %10024 }
0x11bf   :  { %v10022_v38 = vpop.xlane.xlu0 %10021  ;;  %14462 = vpow2.f32 %v10046_v32  ;;  %v10037_v54 = vsub.f32 %v10005_v25, %v10025_v49  ;;  %v10384_v49 = vcombine.low %v10376_v6, %v10383_v12 }
0x11c0   :  { %v10036_v2 = vsub.f32 %v10004_v0, %v10022_v38  ;;  %14464 = vpow2.f32 %v10044_v20 }
0x11c1   :  { %v10050_v4 = vmul.f32 1.442695, %v10037_v54 }
0x11c2   :  { %v10048_v40 = vmul.f32 1.442695, %v10036_v2  ;;  %v10031_v13 = vpop.xlane.xlu1 %10030 }
0x11c3   :  { %v10028_v62 = vpop.xlane.xlu0 %10027  ;;  %14466 = vpow2.f32 %v10050_v4  ;;  %v10039_v53 = vsub.f32 %v10007_v21, %v10031_v13  ;;  %v10474_v13 = vrot.slane %v16540_v48, %v14808_v24 }
0x11c4   :  { %v10038_v33 = vsub.f32 %v10006_v34, %v10028_v62  ;;  %14468 = vpow2.f32 %v10048_v40 }
0x11c5   :  { %v14461_v23 = vpop.eup %14460  ;;  %v10054_v42 = vmul.f32 1.442695, %v10039_v53 }
0x11c6   :  { %v10052_v41 = vmul.f32 1.442695, %v10038_v33  ;;  %v10059_v36 = vsel %vm1703_vm4, %v14461_v23, 0.0 }
0x11c7   :  { %14470 = vpow2.f32 %v10054_v42  ;;  %10060 = vadd.xlane.f32.xlu1 %v10059_v36 }
0x11c8   :  { %14472 = vpow2.f32 %v10052_v41 }
0x11c9   :  { %v16665_v16 = vpop.eup %14462 }
0x11ca   :  { %v16667_v55 = vpop.eup %14464  ;;  %v10065_v22 = vsel %vm1703_vm4, %v16665_v16, 0.0 }
0x11cb   :  { %10066 = vadd.xlane.f32.xlu1 %v10065_v22  ;;  %v10062_v50 = vsel %vm1703_vm4, %v16667_v55, 0.0 }
0x11cc   :  { %10063 = vadd.xlane.f32.xlu0 %v10062_v50 }
0x11cd   :  { %v16673_v31 = vpop.eup %14466 }
0x11ce   :  { %v16675_v14 = vpop.eup %14468  ;;  %v10071_v25 = vsel %vm1703_vm4, %v16673_v31, 0.0 }
0x11cf   :  { %10072 = vadd.xlane.f32.xlu1 %v10071_v25  ;;  %v10068_v0 = vsel %vm1703_vm4, %v16675_v14, 0.0 }
0x11d0   :  { %10069 = vadd.xlane.f32.xlu0 %v10068_v0 }
0x11d1   :  { %v16681_v59 = vpop.eup %14470 }
0x11d2   :  { %v16683_v44 = vpop.eup %14472  ;;  %v10077_v17 = vsel %vm1703_vm4, %v16681_v59, 0.0 }
0x11d3   :  { %10078 = vadd.xlane.f32.xlu1 %v10077_v17  ;;  %v10074_v45 = vsel %vm1703_vm4, %v16683_v44, 0.0 }
0x11d4   :  { %10075 = vadd.xlane.f32.xlu0 %v10074_v45 }
0x1236   :  { %v10058_v35 = vpop.xlane.xlu0 %10057 }
0x1237   :  { %14474 = vrcp.f32 %v10058_v35 }
0x1241   :  { %v14475_v21 = vpop.eup %14474 }
0x1242   :  { %v10081_v34 = vmul.f32 %v14475_v21, %v14459_v52 }
0x1244   :  { %14016 = vmatmul.mubr.msk.f32.vlgmr.msra.gmra.mrb[96].mxu0 %vm1808_vm5, %v10081_v34 }
0x1245   :  { %14024 = vmatpush3.msk.msra.mxu0 %vm1812_vm3, %v16573_v46  ;;  %14025 = vmatprep.mubr.msk.f32.mxu0 %vm14559_vm1, %v17207_v28  ;;  %v9127_v46 = vcombine.high %v16557_v10, %v16557_v10  ;;  %v10460_v10 = vcombine.low %v9100_v47, %v9108_v5 }
0x1246   :  { %14033 = vmatprep.subr.mxu0 %v17207_v28 }
0x1247   :  { %v9141_v58 = vrot.slane %v9127_v46, %v14808_v24  ;;  %v10467_v4 = vrot.slane %v10460_v10, %v14808_v24 }
0x1249   :  { %v9143_v38 = vcombine.high %v9141_v58, %v9141_v58  ;;  %v10733_v54 = vcombine.low %v9142_v7, %v9141_v58  ;;  %v10475_v42 = vcombine.low %v10467_v4, %v10474_v13 }
0x124b   :  { %v10740_v53 = vrot.slane %v10733_v54, %v14808_v24  ;;  %v10747_v33 = vrot.slane %v9143_v38, %v14808_v24 }
0x1254   :  { %v10061_v19 = vpop.xlane.xlu1 %10060 }
0x1255   :  { %14476 = vrcp.f32 %v10061_v19 }
0x1258   :  { %v10067_v52 = vpop.xlane.xlu1 %10066 }
0x1259   :  { %14478 = vrcp.f32 %v10067_v52  ;;  %v10064_v1 = vpop.xlane.xlu0 %10063 }
0x125a   :  { %14480 = vrcp.f32 %v10064_v1 }
0x125c   :  { %v10073_v56 = vpop.xlane.xlu1 %10072 }
0x125d   :  { %14482 = vrcp.f32 %v10073_v56  ;;  %v10070_v26 = vpop.xlane.xlu0 %10069 }
0x125e   :  { %14484 = vrcp.f32 %v10070_v26 }
0x125f   :  { %v14477_v61 = vpop.eup %14476 }
0x1260   :  { %v10083_v32 = vmul.f32 %v14477_v61, %v14461_v23  ;;  %v10079_v20 = vpop.xlane.xlu1 %10078 }
0x1261   :  { %14486 = vrcp.f32 %v10079_v20  ;;  %v10076_v2 = vpop.xlane.xlu0 %10075 }
0x1262   :  { %14488 = vrcp.f32 %v10076_v2  ;;  %14021 = vmatmul.mubr.msk.f32.vlgmr.msra.gmra.mrb[106].mxu1 %vm1808_vm5, %v10083_v32 }
0x1263   :  { %v14479_v40 = vpop.eup %14478  ;;  %14029 = vmatpush3.msk.msra.mxu1 %vm1812_vm3, %v10384_v49  ;;  %14030 = vmatprep.mubr.msk.f32.mxu1 %vm14559_vm1, %v17207_v28 }
0x1264   :  { %v14481_v3 = vpop.eup %14480  ;;  %v10087_v62 = vmul.f32 %v14479_v40, %v16665_v16  ;;  %14038 = vmatprep.subr.mxu1 %v17207_v28  ;;  %v10748_v16 = vcombine.low %v10740_v53, %v10747_v33 }
0x1265   :  { %v10085_v23 = vmul.f32 %v14481_v3, %v16667_v55 }
0x1266   :  { %14031 = vmatmul.mubr.msk.f32.vlgmr.msra.gmra.mrb[108].mxu1 %vm1808_vm5, %v10087_v62 }
0x1267   :  { %v14483_v41 = vpop.eup %14482  ;;  %14026 = vmatmul.mubr.msk.f32.vlgmr.msra.gmra.mrb[98].mxu0 %vm1808_vm5, %v10085_v23  ;;  %14039 = vmatpush3.msk.msra.mxu1 %vm1812_vm3, %v16615_v29 }
0x1268   :  { %v14485_v48 = vpop.eup %14484  ;;  %v10091_v36 = vmul.f32 %v14483_v41, %v16673_v31  ;;  %14034 = vmatpush3.msk.msra.mxu0 %vm1812_vm3, %v10475_v42  ;;  %14035 = vmatprep.mubr.msk.f32.mxu0 %vm14559_vm1, %v17207_v28 }
0x1269   :  { %v10089_v55 = vmul.f32 %v14485_v48, %v16675_v14  ;;  %14040 = vmatprep.mubr.msk.f32.mxu1 %vm14559_vm1, %v17207_v28  ;;  %14043 = vmatprep.subr.mxu0 %v17207_v28  ;;  %v13125_v14 = vld [vmem:[%s17199_s30 + $0x18] sm:$0xff] }
0x126a   :  { %14048 = vmatprep.subr.mxu1 %v17207_v28  ;;  %14041 = vmatmul.mubr.msk.f32.vlgmr.msra.gmra.mrb[110].mxu1 %vm1808_vm5, %v10091_v36 }
0x126b   :  { %v14487_v29 = vpop.eup %14486  ;;  %14036 = vmatmul.mubr.msk.f32.vlgmr.msra.gmra.mrb[100].mxu0 %vm1808_vm5, %v10089_v55  ;;  %14049 = vmatpush3.msk.msra.mxu1 %vm1812_vm3, %v10748_v16 }
0x126c   :  { %v14489_v22 = vpop.eup %14488  ;;  %v10095_v50 = vmul.f32 %v14487_v29, %v16681_v59  ;;  %14044 = vmatpush3.msk.msra.mxu0 %vm1812_vm3, %v16629_v51  ;;  %14045 = vmatprep.mubr.msk.f32.mxu0 %vm14559_vm1, %v17207_v28  ;;  %v16753_v51 = vld [vmem:[%s17199_s30 + $0x10] sm:$0xff] }
0x126d   :  { %v10093_v31 = vmul.f32 %v14489_v22, %v16683_v44  ;;  %14050 = vmatprep.mubr.msk.f32.mxu1 %vm14559_vm1, %v17207_v28  ;;  %14053 = vmatprep.subr.mxu0 %v13125_v14 }
0x126e   :  { %14051 = vmatmul.mubr.msk.f32.vlgmr.msra.gmra.mrb[112].mxu1 %vm1808_vm5, %v10095_v50 }
0x126f   :  { %14046 = vmatmul.mubr.msk.f32.vlgmr.msra.gmra.mrb[102].mxu0 %vm1808_vm5, %v10093_v31 }
0x1270   :  { %14054 = vmatpush3.msra.mxu0 %v13125_v14 }
0x1271   :  { %14064 = vmatprep.subr.mxu0 %v16753_v51 }
0x1317   :  { %v10183_v25 = vpop.f32.mrb[96].mxu0 }
0x1318   :  { %v14017_v0 = vpop.f32.mrb[97].mxu0  ;;  %v10839_v59 = vrot.slane %v10183_v25, %v14808_v24  ;;  %v10832_v44 = vcombine.high %v10183_v25, %v10183_v25 }
0x131a   :  { %v10847_v17 = vcombine.high %v10839_v59, %v10839_v59  ;;  %v10846_v35 = vrot.slane %v10832_v44, %v14808_v24 }
0x131c   :  { %v10962_v21 = vcombine.low %v10839_v59, %v10847_v17 }
0x131e   :  { %v10970_v52 = vrot.slane %v10962_v21, %v14808_v24 }
0x1335   :  { %v10274_v45 = vpop.f32.mrb[106].mxu1 }
0x1336   :  { %v10848_v34 = vcombine.high %v10274_v45, %v10274_v45  ;;  %v10855_v18 = vrot.slane %v10274_v45, %v14808_v24  ;;  %v14022_v19 = vpop.f32.mrb[107].mxu1 }
0x1338   :  { %v10862_v60 = vrot.slane %v10848_v34, %v14808_v24  ;;  %v10863_v15 = vcombine.high %v10855_v18, %v10855_v18  ;;  %v10963_v47 = vcombine.low %v10846_v35, %v10855_v18 }
0x1339   :  { %v10456_v46 = vpop.f32.mrb[108].mxu1 }
0x133a   :  { %v10977_v39 = vrot.slane %v10963_v47, %v14808_v24  ;;  %v10365_v57 = vpop.f32.mrb[98].mxu0  ;;  %v10880_v1 = vcombine.high %v10456_v46, %v10456_v46  ;;  %v10887_v5 = vrot.slane %v10456_v46, %v14808_v24  ;;  %v14032_v58 = vpop.f32.mrb[109].mxu1  ;;  %v10979_v7 = vcombine.low %v10863_v15, %v10862_v60 }
0x133b   :  { %v10864_v56 = vcombine.high %v10365_v57, %v10365_v57  ;;  %v10871_v6 = vrot.slane %v10365_v57, %v14808_v24  ;;  %v14027_v12 = vpop.f32.mrb[99].mxu0 }
0x133c   :  { %v10894_v26 = vrot.slane %v10880_v1, %v14808_v24  ;;  %v10895_v10 = vcombine.high %v10887_v5, %v10887_v5  ;;  %v10978_v61 = vcombine.low %v10970_v52, %v10977_v39  ;;  %v10987_v23 = vrot.slane %v10979_v7, %v14808_v24 }
0x133d   :  { %v10878_v32 = vrot.slane %v10864_v56, %v14808_v24  ;;  %v10879_v20 = vcombine.high %v10871_v6, %v10871_v6  ;;  %v10638_v49 = vpop.f32.mrb[110].mxu1 }
0x133e   :  { %v10997_v38 = vcombine.low %v10895_v10, %v10894_v26  ;;  %v10547_v54 = vpop.f32.mrb[100].mxu0  ;;  %v10912_v2 = vcombine.high %v10638_v49, %v10638_v49  ;;  %v10919_v4 = vrot.slane %v10638_v49, %v14808_v24  ;;  %v14042_v40 = vpop.f32.mrb[111].mxu1  ;;  %14055 = vmatprep.mubr.msk.f32.mxu0 %vm830_vm2, %v10978_v61  ;;  %v17211_v49 = vld [vmem:[#allocation4_spill] sm:$0xff] }
0x133f   :  { %v10980_v3 = vcombine.low %v10871_v6, %v10879_v20  ;;  %v10996_v13 = vcombine.low %v10878_v32, %v10887_v5  ;;  %v10896_v62 = vcombine.high %v10547_v54, %v10547_v54  ;;  %v10903_v53 = vrot.slane %v10547_v54, %v14808_v24  ;;  %v14037_v33 = vpop.f32.mrb[101].mxu0  ;;  %v17212_v40 = vld [vmem:[#allocation7_spill] sm:$0xff] }
0x1340   :  { %v11011_v42 = vrot.slane %v10997_v38, %v14808_v24  ;;  %v10926_v29 = vrot.slane %v10912_v2, %v14808_v24  ;;  %v10927_v22 = vcombine.high %v10919_v4, %v10919_v4 }
0x1341   :  { %v10994_v41 = vrot.slane %v10980_v3, %v14808_v24  ;;  %v11004_v48 = vrot.slane %v10996_v13, %v14808_v24  ;;  %v10910_v36 = vrot.slane %v10896_v62, %v14808_v24  ;;  %v10911_v16 = vcombine.high %v10903_v53, %v10903_v53  ;;  %v10820_v55 = vpop.f32.mrb[112].mxu1  ;;  %v17213_v62 = vld [vmem:[#allocation6_spill] sm:$0xff] }
0x1342   :  { %v10729_v50 = vpop.f32.mrb[102].mxu0  ;;  %v10944_v31 = vcombine.high %v10820_v55, %v10820_v55  ;;  %v10951_v14 = vrot.slane %v10820_v55, %v14808_v24  ;;  %v14052_v25 = vpop.f32.mrb[113].mxu1  ;;  %v11030_v47 = vcombine.low %v10927_v22, %v10926_v29 }
0x1343   :  { %v10995_v0 = vcombine.low %v10987_v23, %v10994_v41  ;;  %v11013_v59 = vcombine.low %v10903_v53, %v10911_v16  ;;  %v11014_v44 = vcombine.low %v10910_v36, %v10919_v4  ;;  %v10928_v17 = vcombine.high %v10729_v50, %v10729_v50  ;;  %v14047_v45 = vpop.f32.mrb[103].mxu0 }
0x1344   :  { %v10935_v35 = vrot.slane %v10729_v50, %v14808_v24  ;;  %v10958_v21 = vrot.slane %v10944_v31, %v14808_v24  ;;  %v10959_v34 = vcombine.high %v10951_v14, %v10951_v14  ;;  %v11012_v15 = vcombine.low %v11004_v48, %v11011_v42 }
0x1345   :  { %v11021_v18 = vrot.slane %v11013_v59, %v14808_v24  ;;  %v11028_v19 = vrot.slane %v11014_v44, %v14808_v24  ;;  %v10942_v60 = vrot.slane %v10928_v17, %v14808_v24  ;;  %14056 = vmatmul.mubr.msk.f32.vlgmr.msra.gmra.mrb[104].mxu0 %vm830_vm2, %v10995_v0  ;;  %v11038_v56 = vrot.slane %v11030_v47, %v14808_v24 }
0x1346   :  { %v10943_v46 = vcombine.high %v10935_v35, %v10935_v35  ;;  %v11048_v52 = vcombine.low %v10959_v34, %v10958_v21  ;;  %14065 = vmatpush3.msra.mxu0 %v16753_v51  ;;  %14058 = vmatprep.mubr.msk.f32.mxu0 %vm830_vm2, %v11012_v15 }
0x1347   :  { %v11047_v39 = vcombine.low %v10942_v60, %v10951_v14  ;;  %v11029_v57 = vcombine.low %v11021_v18, %v11028_v19 }
0x1348   :  { %v11031_v1 = vcombine.low %v10935_v35, %v10943_v46  ;;  %v11062_v5 = vrot.slane %v11048_v52, %v14808_v24 }
0x1349   :  { %v11055_v58 = vrot.slane %v11047_v39, %v14808_v24  ;;  %14059 = vmatmul.mubr.msk.f32.gmra.mrb[106].mxu0 %vm830_vm2, %v11029_v57 }
0x134a   :  { %v11045_v6 = vrot.slane %v11031_v1, %v14808_v24 }
0x134b   :  { %v11063_v12 = vcombine.low %v11055_v58, %v11062_v5 }
0x134c   :  { %v11046_v7 = vcombine.low %v11038_v56, %v11045_v6  ;;  %v13144_v6 = vld [vmem:[%s17201_s28 + $0x10] sm:$0xff] }
0x134e   :  { %14061 = vmatprep.mubr.msk.f32.mxu0 %vm830_vm2, %v11046_v7 }
0x134f   :  { %14062 = vmatmul.mubr.msk.f32.gmra.mrb[108].mxu0 %vm830_vm2, %v11063_v12  ;;  %v13145_v12 = vld [vmem:[%s17201_s28 + $0x18] sm:$0xff] }
0x1350   :  { %14066 = vmatprep.mubr.msk.f32.mxu0 %vm830_vm2, %v16323_v63  ;;  %v13139_v63 = vld [vmem:[%s17200_s0 + $0x1] ss:$0 sm:$0xff]  ;;  %v14258_v7 = vpack.c.bf16 %v13145_v12, %v13144_v6 }
0x1352   :  { %14259 = vmatprep.subr.bf16.mxu1 %v14258_v7 }
0x1353   :  { %14067 = vmatmul.mubr.msk.f32.vlgmr.msra.gmra.mrb[104].mxu0 %vm830_vm2, %v16338_v27  ;;  %14261 = vmatpush3.bf16.msra.mxu1 %v14258_v7 }
0x1354   :  { %14069 = vmatprep.mubr.msk.f32.mxu0 %vm830_vm2, %v16345_v37 }
0x1357   :  { %14070 = vmatmul.mubr.msk.f32.gmra.mrb[106].mxu0 %vm830_vm2, %v16368_v8 }
0x1358   :  { %14072 = vmatprep.mubr.msk.f32.mxu0 %vm830_vm2, %v16611_v43  ;;  %v17210_v43 = vld [vmem:[#allocation5_spill] sm:$0xff] }
0x135b   :  { %14073 = vmatmul.mubr.msk.f32.gmra.mrb[108].mxu0 %vm830_vm2, %v16613_v30 }
0x135c   :  { %14109 = vmatprep.mubr.msk.f32.mxu0 %vm14559_vm1, %v17207_v28 }
0x1426   :  { %v14068_v51 = vpop.f32.mrb[104].mxu0 }
0x1427   :  { %v11381_v27 = vadd.f32 %v14068_v51, %v15852_v11  ;;  %v11351_v37 = vpop.f32.mrb[105].mxu0  ;;  %v13154_v51 = vld [vmem:[%s17202_s26 + $0x20] sm:$0xff] }
0x1428   :  { %v11380_v26 = vadd.f32 %v11351_v37, %v15849_v9 }
0x1429   :  { %v11395_v8 = vadd.f32 %v13139_v63, %v11381_v27 }
0x142a   :  { %v14071_v10 = vpop.f32.mrb[106].mxu0  ;;  %v11394_v61 = vadd.f32 %v13139_v63, %v11380_v26 }
0x142b   :  { %v11383_v32 = vadd.f32 %v14071_v10, %v17210_v43  ;;  %v11361_v20 = vpop.f32.mrb[107].mxu0  ;;  %v11403_v30 = vsel %vm152_vm0, %v11395_v8, 0.0 }
0x142c   :  { %v11382_v38 = vadd.f32 %v11361_v20, %v17211_v49  ;;  %11404 = vadd.xlane.f32.xlu1 %v11403_v30  ;;  %v11400_v54 = vsel %vm152_vm0, %v11394_v61, 0.0 }
0x142d   :  { %11401 = vadd.xlane.f32.xlu0 %v11400_v54  ;;  %v11397_v2 = vadd.f32 %v13139_v63, %v11383_v32 }
0x142e   :  { %v14074_v4 = vpop.f32.mrb[108].mxu0  ;;  %v11396_v11 = vadd.f32 %v13139_v63, %v11382_v38 }
0x142f   :  { %v11385_v3 = vadd.f32 %v14074_v4, %v17212_v40  ;;  %v11371_v9 = vpop.f32.mrb[109].mxu0  ;;  %v11409_v13 = vsel %vm152_vm0, %v11397_v2, 0.0 }
0x1430   :  { %v11384_v53 = vadd.f32 %v11371_v9, %v17213_v62  ;;  %11410 = vadd.xlane.f32.xlu1 %v11409_v13  ;;  %v11406_v33 = vsel %vm152_vm0, %v11396_v11, 0.0  ;;  %v13141_v62 = vld [vmem:[%s17135_s10 + $0x1] ss:$0 sm:$0xff]  ;;  %s17215_s10 = sld [smem:[#allocation20_spill]] }
0x1431   :  { %11407 = vadd.xlane.f32.xlu0 %v11406_v33  ;;  %v11399_v23 = vadd.f32 %v13139_v63, %v11385_v3 }
0x1432   :  { %v11398_v42 = vadd.f32 %v13139_v63, %v11384_v53  ;;  %v13155_v63 = vld [vmem:[%s17202_s26 + $0x28] sm:$0xff] }
0x1433   :  { %v11415_v41 = vsel %vm152_vm0, %v11399_v23, 0.0  ;;  %v14262_v27 = vpack.c.bf16 %v13155_v63, %v13154_v51 }
0x1434   :  { %11416 = vadd.xlane.f32.xlu1 %v11415_v41  ;;  %v11412_v48 = vsel %vm152_vm0, %v11398_v42, 0.0 }
0x1435   :  { %11413 = vadd.xlane.f32.xlu0 %v11412_v48  ;;  %14263 = vmatprep.subr.bf16.mxu1 %v14262_v27 }
0x14b9   :  { %v11405_v36 = vpop.xlane.xlu1 %11404 }
0x14ba   :  { %v11419_v16 = vmul.f32 0.0625, %v11405_v36  ;;  %v11402_v55 = vpop.xlane.xlu0 %11401 }
0x14bb   :  { %v11418_v29 = vmul.f32 0.0625, %v11402_v55 }
0x14bc   :  { %v16820_v22 = vsub.f32 %v11395_v8, %v11419_v16 }
0x14bd   :  { %v16822_v50 = vsub.f32 %v11394_v61, %v11418_v29  ;;  %v11411_v31 = vpop.xlane.xlu1 %11410 }
0x14be   :  { %v11421_v14 = vmul.f32 0.0625, %v11411_v31  ;;  %v11408_v25 = vpop.xlane.xlu0 %11407  ;;  %v11431_v0 = vmul.f32 %v16820_v22, %v16820_v22 }
0x14bf   :  { %v11420_v59 = vmul.f32 0.0625, %v11408_v25  ;;  %v11430_v44 = vmul.f32 %v16822_v50, %v16822_v50 }
0x14c0   :  { %v16828_v17 = vsub.f32 %v11397_v2, %v11421_v14  ;;  %v11439_v45 = vsel %vm152_vm0, %v11431_v0, 0.0 }
0x14c1   :  { %v16831_v35 = vsub.f32 %v11396_v11, %v11420_v59  ;;  %11440 = vadd.xlane.f32.xlu1 %v11439_v45  ;;  %v11417_v21 = vpop.xlane.xlu1 %11416  ;;  %v11436_v34 = vsel %vm152_vm0, %v11430_v44, 0.0 }
0x14c2   :  { %v11423_v18 = vmul.f32 0.0625, %v11417_v21  ;;  %11437 = vadd.xlane.f32.xlu0 %v11436_v34  ;;  %v11414_v19 = vpop.xlane.xlu0 %11413  ;;  %v11433_v60 = vmul.f32 %v16828_v17, %v16828_v17 }
0x14c3   :  { %v11422_v15 = vmul.f32 0.0625, %v11414_v19  ;;  %v11432_v47 = vmul.f32 %v16831_v35, %v16831_v35  ;;  %v13156_v19 = vld [vmem:[%s17202_s26 + $0x30] sm:$0xff] }
0x14c4   :  { %v16838_v46 = vsub.f32 %v11399_v23, %v11423_v18  ;;  %v11445_v52 = vsel %vm152_vm0, %v11433_v60, 0.0  ;;  %v13157_v60 = vld [vmem:[%s17202_s26 + $0x38] sm:$0xff] }
0x14c5   :  { %v16841_v39 = vsub.f32 %v11398_v42, %v11422_v15  ;;  %11446 = vadd.xlane.f32.xlu1 %v11445_v52  ;;  %v11442_v57 = vsel %vm152_vm0, %v11432_v47, 0.0  ;;  %v13143_v42 = vld [vmem:[%s17136_s11 + $0x1] ss:$0 sm:$0xff]  ;;  %v14266_v15 = vpack.c.bf16 %v13157_v60, %v13156_v19 }
0x14c6   :  { %11443 = vadd.xlane.f32.xlu0 %v11442_v57  ;;  %v11435_v1 = vmul.f32 %v16838_v46, %v16838_v46  ;;  %v13147_v47 = vld [vmem:[%s17137_s13 + $0x1] ss:$0 sm:$0xff] }
0x14c7   :  { %v11434_v5 = vmul.f32 %v16841_v39, %v16841_v39 }
0x14c8   :  { %v11451_v58 = vsel %vm152_vm0, %v11435_v1, 0.0 }
0x14c9   :  { %11452 = vadd.xlane.f32.xlu1 %v11451_v58  ;;  %v11448_v56 = vsel %vm152_vm0, %v11434_v5, 0.0 }
0x14ca   :  { %11449 = vadd.xlane.f32.xlu0 %v11448_v56 }
0x154e   :  { %v11441_v37 = vpop.xlane.xlu1 %11440 }
0x154f   :  { %v11455_v26 = vmul.f32 0.0625, %v11441_v37  ;;  %v11438_v8 = vpop.xlane.xlu0 %11437 }
0x1550   :  { %v11454_v10 = vmul.f32 0.0625, %v11438_v8 }
0x1551   :  { %v11461_v61 = vadd.f32 1e-08, %v11455_v26 }
0x1552   :  { %v11460_v43 = vadd.f32 1e-08, %v11454_v10  ;;  %v11447_v32 = vpop.xlane.xlu1 %11446 }
0x1553   :  { %14490 = vrsqrt.f32 %v11461_v61  ;;  %v11457_v20 = vmul.f32 0.0625, %v11447_v32  ;;  %v11444_v30 = vpop.xlane.xlu0 %11443  ;;  %v13159_v61 = vld [vmem:[%s17138_s15 + $0x1] ss:$0 sm:$0xff]  ;;  %s14563_s15 = smov 64  }
0x1554   :  { %14492 = vrsqrt.f32 %v11460_v43  ;;  %v11456_v49 = vmul.f32 0.0625, %v11444_v30 }
0x1555   :  { %v11463_v38 = vadd.f32 1e-08, %v11457_v20 }
0x1556   :  { %v11462_v54 = vadd.f32 1e-08, %v11456_v49  ;;  %v11453_v2 = vpop.xlane.xlu1 %11452 }
0x1557   :  { %14494 = vrsqrt.f32 %v11463_v38  ;;  %v11459_v4 = vmul.f32 0.0625, %v11453_v2  ;;  %v11450_v11 = vpop.xlane.xlu0 %11449 }
0x1558   :  { %14496 = vrsqrt.f32 %v11462_v54  ;;  %v11458_v40 = vmul.f32 0.0625, %v11450_v11 }
0x1559   :  { %v11465_v3 = vadd.f32 1e-08, %v11459_v4 }
0x155a   :  { %v11464_v9 = vadd.f32 1e-08, %v11458_v40 }
0x155b   :  { %14498 = vrsqrt.f32 %v11465_v3 }
0x155c   :  { %14500 = vrsqrt.f32 %v11464_v9 }
0x155d   :  { %v14491_v13 = vpop.eup %14490 }
0x155e   :  { %v14493_v53 = vpop.eup %14492  ;;  %v11473_v33 = vmul.f32 %v14491_v13, %v16820_v22 }
0x155f   :  { %v11472_v23 = vmul.f32 %v14493_v53, %v16822_v50 }
0x1560   :  { %v11487_v41 = vmul.f32 %v13141_v62, %v11473_v33 }
0x1561   :  { %v14495_v48 = vpop.eup %14494  ;;  %v11486_v36 = vmul.f32 %v13141_v62, %v11472_v23 }
0x1562   :  { %v14497_v16 = vpop.eup %14496  ;;  %v11475_v55 = vmul.f32 %v14495_v48, %v16828_v17  ;;  %v11501_v14 = vadd.f32 %v13143_v42, %v11487_v41 }
0x1563   :  { %v11500_v29 = vadd.f32 %v13143_v42, %v11486_v36  ;;  %v11474_v31 = vmul.f32 %v14497_v16, %v16831_v35 }
0x1564   :  { %v11489_v25 = vmul.f32 %v13141_v62, %v11475_v55 }
0x1565   :  { %v14499_v0 = vpop.eup %14498  ;;  %14079 = vmatprep.mubr.msk.f32.mxu1 %vm152_vm0, %v11500_v29  ;;  %v11488_v22 = vmul.f32 %v13141_v62, %v11474_v31 }
0x1566   :  { %v14501_v50 = vpop.eup %14500  ;;  %14080 = vmatmul.mubr.msk.f32.vlgmr.msra.gmra.mrb[114].mxu1 %vm152_vm0, %v11501_v14  ;;  %v11477_v59 = vmul.f32 %v14499_v0, %v16838_v46  ;;  %v11503_v21 = vadd.f32 %v13143_v42, %v11489_v25 }
0x1567   :  { %v11502_v44 = vadd.f32 %v13143_v42, %v11488_v22  ;;  %v11476_v45 = vmul.f32 %v14501_v50, %v16841_v39  ;;  %14265 = vmatpush3.bf16.msra.mxu1 %v14262_v27 }
0x1568   :  { %v11491_v17 = vmul.f32 %v13141_v62, %v11477_v59  ;;  %14267 = vmatprep.subr.bf16.mxu1 %v14266_v15 }
0x1569   :  { %14082 = vmatprep.mubr.msk.f32.mxu1 %vm152_vm0, %v11502_v44  ;;  %v11490_v35 = vmul.f32 %v13141_v62, %v11476_v45 }
0x156a   :  { %14083 = vmatmul.mubr.msk.f32.gmra.mrb[116].mxu1 %vm152_vm0, %v11503_v21  ;;  %v11505_v18 = vadd.f32 %v13143_v42, %v11491_v17 }
0x156b   :  { %v11504_v34 = vadd.f32 %v13143_v42, %v11490_v35  ;;  %14269 = vmatpush3.bf16.msra.mxu1 %v14266_v15 }
0x156d   :  { %14085 = vmatprep.mubr.msk.f32.mxu1 %vm152_vm0, %v11504_v34 }
0x156e   :  { %14086 = vmatmul.mubr.msk.f32.gmra.mrb[118].mxu1 %vm152_vm0, %v11505_v18 }
0x1639   :  { %v14081_v46 = vpop.f32.mrb[114].mxu1 }
0x163a   :  { %v11607_v52 = vadd.f32 %v14081_v46, %v13147_v47  ;;  %v11601_v39 = vpop.f32.mrb[115].mxu1 }
0x163b   :  { %v11602_v57 = vadd.f32 %v13147_v47, %v11601_v39 }
0x163c   :  { %v11631_v58 = vmax.f32 %v11607_v52, 0.0 }
0x163d   :  { %v11630_v1 = vmax.f32 %v11602_v57, 0.0  ;;  %v14084_v5 = vpop.f32.mrb[116].mxu1 }
0x163e   :  { %v11617_v56 = vadd.f32 %v14084_v5, %v13147_v47  ;;  %v11611_v6 = vpop.f32.mrb[117].mxu1 }
0x163f   :  { %v11612_v12 = vadd.f32 %v13147_v47, %v11611_v6  ;;  %14096 = vmatprep.mubr.msk.f32.mxu1 %vm5800_vm6, %v11630_v1 }
0x1640   :  { %14097 = vmatmul.mubr.msk.f32.vlgmr.msra.gmra.mrb[120].mxu1 %vm5800_vm6, %v11631_v58  ;;  %v11633_v63 = vmax.f32 %v11617_v56, 0.0 }
0x1641   :  { %v11632_v7 = vmax.f32 %v11612_v12, 0.0  ;;  %v14087_v51 = vpop.f32.mrb[118].mxu1 }
0x1642   :  { %v11627_v27 = vadd.f32 %v14087_v51, %v13147_v47  ;;  %v11621_v37 = vpop.f32.mrb[119].mxu1  ;;  %v14562_v51 = vmov 0.0|0.0  }
0x1643   :  { %v11622_v26 = vadd.f32 %v13147_v47, %v11621_v37  ;;  %14099 = vmatprep.mubr.msk.f32.mxu1 %vm5800_vm6, %v11632_v7  ;;  %14270 = vmatprep.subr.bf16.mxu0 %v14562_v51 }
0x1644   :  { %14100 = vmatmul.mubr.msk.f32.gmra.mrb[122].mxu1 %vm5800_vm6, %v11633_v63  ;;  %v11635_v10 = vmax.f32 %v11627_v27, 0.0  ;;  %v11944_v63 = vld [vmem:[%s17141_s18] sm:$0xff]  ;;  %v11945_v27 = vld [vmem:[%s17141_s18 + $0x8] sm:$0xff]  ;;  %14273 = vmatprep.subr.bf16.mxu1 %v14562_v51 }
0x1645   :  { %v11634_v8 = vmax.f32 %v11622_v26, 0.0  ;;  %v14271_v37 = vpack.c.bf16 %v11945_v27, %v11944_v63 }
0x1647   :  { %14102 = vmatprep.mubr.msk.f32.mxu1 %vm5800_vm6, %v11634_v8  ;;  %14272 = vmatpush3.bf16.msra.mxu0 %v14271_v37 }
0x1648   :  { %14103 = vmatmul.mubr.msk.f32.gmra.mrb[124].mxu1 %vm5800_vm6, %v11635_v10  ;;  %14279 = vmatprep.subr.bf16.mxu0 %v14562_v51 }
0x1649   :  { %14120 = vmatprep.mubr.msk.f32.mxu1 %vm14559_vm1, %v17207_v28 }
0x1713   :  { %v14098_v43 = vpop.f32.mrb[120].mxu1 }
0x1714   :  { %v11739_v32 = vadd.f32 %v14098_v43, %v13159_v61  ;;  %v11733_v20 = vpop.f32.mrb[121].mxu1 }
0x1715   :  { %v11734_v30 = vadd.f32 %v13159_v61, %v11733_v20 }
0x1716   :  { %v11763_v49 = vadd.f32 %v11739_v32, %v11501_v14 }
0x1717   :  { %v11762_v38 = vadd.f32 %v11734_v30, %v11500_v29  ;;  %v14101_v54 = vpop.f32.mrb[122].mxu1 }
0x1718   :  { %v11749_v2 = vadd.f32 %v14101_v54, %v13159_v61  ;;  %v11743_v4 = vpop.f32.mrb[123].mxu1  ;;  %v11771_v11 = vsel %vm152_vm0, %v11763_v49, 0.0 }
0x1719   :  { %v11744_v40 = vadd.f32 %v13159_v61, %v11743_v4  ;;  %11772 = vadd.xlane.f32.xlu1 %v11771_v11  ;;  %v11768_v3 = vsel %vm152_vm0, %v11762_v38, 0.0 }
0x171a   :  { %v11765_v9 = vadd.f32 %v11749_v2, %v11503_v21  ;;  %11769 = vadd.xlane.f32.xlu0 %v11768_v3 }
0x171b   :  { %v11764_v13 = vadd.f32 %v11744_v40, %v11502_v44  ;;  %v14104_v62 = vpop.f32.mrb[124].mxu1 }
0x171c   :  { %v11759_v53 = vadd.f32 %v14104_v62, %v13159_v61  ;;  %v11753_v33 = vpop.f32.mrb[125].mxu1  ;;  %v11777_v23 = vsel %vm152_vm0, %v11765_v9, 0.0 }
0x171d   :  { %v11754_v42 = vadd.f32 %v13159_v61, %v11753_v33  ;;  %11778 = vadd.xlane.f32.xlu1 %v11777_v23  ;;  %v11774_v41 = vsel %vm152_vm0, %v11764_v13, 0.0 }
0x171e   :  { %v11767_v48 = vadd.f32 %v11759_v53, %v11505_v18  ;;  %11775 = vadd.xlane.f32.xlu0 %v11774_v41  ;;  %v13167_v53 = vld [vmem:[%s17139_s16 + $0x1] ss:$0 sm:$0xff] }
0x171f   :  { %v11766_v36 = vadd.f32 %v11754_v42, %v11504_v34  ;;  %v13169_v42 = vld [vmem:[%s17140_s17 + $0x1] ss:$0 sm:$0xff] }
0x1720   :  { %v11783_v16 = vsel %vm152_vm0, %v11767_v48, 0.0 }
0x1721   :  { %11784 = vadd.xlane.f32.xlu1 %v11783_v16  ;;  %v11780_v55 = vsel %vm152_vm0, %v11766_v36, 0.0 }
0x1722   :  { %11781 = vadd.xlane.f32.xlu0 %v11780_v55 }
0x17a6   :  { %v11773_v29 = vpop.xlane.xlu1 %11772 }
0x17a7   :  { %v11787_v31 = vmul.f32 0.0625, %v11773_v29  ;;  %v11770_v14 = vpop.xlane.xlu0 %11769 }
0x17a8   :  { %v11786_v25 = vmul.f32 0.0625, %v11770_v14 }
0x17a9   :  { %v16906_v0 = vsub.f32 %v11763_v49, %v11787_v31 }
0x17aa   :  { %v16908_v22 = vsub.f32 %v11762_v38, %v11786_v25  ;;  %v11779_v50 = vpop.xlane.xlu1 %11778 }
0x17ab   :  { %v11789_v59 = vmul.f32 0.0625, %v11779_v50  ;;  %v11776_v44 = vpop.xlane.xlu0 %11775  ;;  %v11799_v45 = vmul.f32 %v16906_v0, %v16906_v0 }
0x17ac   :  { %v11788_v21 = vmul.f32 0.0625, %v11776_v44  ;;  %v11798_v17 = vmul.f32 %v16908_v22, %v16908_v22 }
0x17ad   :  { %v16914_v35 = vsub.f32 %v11765_v9, %v11789_v59  ;;  %v11807_v34 = vsel %vm152_vm0, %v11799_v45, 0.0 }
0x17ae   :  { %v16917_v18 = vsub.f32 %v11764_v13, %v11788_v21  ;;  %11808 = vadd.xlane.f32.xlu1 %v11807_v34  ;;  %v11785_v19 = vpop.xlane.xlu1 %11784  ;;  %v11804_v60 = vsel %vm152_vm0, %v11798_v17, 0.0 }
0x17af   :  { %v11791_v15 = vmul.f32 0.0625, %v11785_v19  ;;  %11805 = vadd.xlane.f32.xlu0 %v11804_v60  ;;  %v11782_v47 = vpop.xlane.xlu0 %11781  ;;  %v11801_v46 = vmul.f32 %v16914_v35, %v16914_v35 }
0x17b0   :  { %v11790_v52 = vmul.f32 0.0625, %v11782_v47  ;;  %v11800_v39 = vmul.f32 %v16917_v18, %v16917_v18 }
0x17b1   :  { %v16924_v57 = vsub.f32 %v11767_v48, %v11791_v15  ;;  %v11813_v1 = vsel %vm152_vm0, %v11801_v46, 0.0 }
0x17b2   :  { %v16927_v5 = vsub.f32 %v11766_v36, %v11790_v52  ;;  %11814 = vadd.xlane.f32.xlu1 %v11813_v1  ;;  %v11810_v58 = vsel %vm152_vm0, %v11800_v39, 0.0 }
0x17b3   :  { %11811 = vadd.xlane.f32.xlu0 %v11810_v58  ;;  %v11803_v56 = vmul.f32 %v16924_v57, %v16924_v57 }
0x17b4   :  { %v11802_v6 = vmul.f32 %v16927_v5, %v16927_v5 }
0x17b5   :  { %v11819_v12 = vsel %vm152_vm0, %v11803_v56, 0.0  ;;  %v17214_v56 = vld [vmem:[#allocation3_spill] sm:$0xff] }
0x17b6   :  { %11820 = vadd.xlane.f32.xlu1 %v11819_v12  ;;  %v11816_v7 = vsel %vm152_vm0, %v11802_v6, 0.0 }
0x17b7   :  { %11817 = vadd.xlane.f32.xlu0 %v11816_v7 }
0x183b   :  { %v11809_v26 = vpop.xlane.xlu1 %11808 }
0x183c   :  { %v11823_v8 = vmul.f32 0.0625, %v11809_v26  ;;  %v11806_v10 = vpop.xlane.xlu0 %11805 }
0x183d   :  { %v11822_v61 = vmul.f32 0.0625, %v11806_v10 }
0x183e   :  { %v11829_v43 = vadd.f32 1e-08, %v11823_v8 }
0x183f   :  { %v11828_v32 = vadd.f32 1e-08, %v11822_v61  ;;  %v11815_v20 = vpop.xlane.xlu1 %11814 }
0x1840   :  { %14502 = vrsqrt.f32 %v11829_v43  ;;  %v11825_v30 = vmul.f32 0.0625, %v11815_v20  ;;  %v11812_v49 = vpop.xlane.xlu0 %11811 }
0x1841   :  { %14504 = vrsqrt.f32 %v11828_v32  ;;  %v11824_v38 = vmul.f32 0.0625, %v11812_v49 }
0x1842   :  { %v11831_v54 = vadd.f32 1e-08, %v11825_v30 }
0x1843   :  { %v11830_v2 = vadd.f32 1e-08, %v11824_v38  ;;  %v11821_v4 = vpop.xlane.xlu1 %11820 }
0x1844   :  { %14506 = vrsqrt.f32 %v11831_v54  ;;  %v11827_v11 = vmul.f32 0.0625, %v11821_v4  ;;  %v11818_v40 = vpop.xlane.xlu0 %11817 }
0x1845   :  { %14508 = vrsqrt.f32 %v11830_v2  ;;  %v11826_v3 = vmul.f32 0.0625, %v11818_v40 }
0x1846   :  { %v11833_v9 = vadd.f32 1e-08, %v11827_v11 }
0x1847   :  { %v11832_v13 = vadd.f32 1e-08, %v11826_v3  ;;  %v12074_v3 = vld [vmem:[%s17142_s20 + $0x8] sm:$0xff] }
0x1848   :  { %14510 = vrsqrt.f32 %v11833_v9  ;;  %v12157_v9 = vld [vmem:[%s17143_s21] sm:$0xff] }
0x1849   :  { %14512 = vrsqrt.f32 %v11832_v13 }
0x184a   :  { %v14503_v62 = vpop.eup %14502 }
0x184b   :  { %v14505_v33 = vpop.eup %14504  ;;  %v11841_v23 = vmul.f32 %v14503_v62, %v16906_v0  ;;  %v12158_v62 = vld [vmem:[%s17143_s21 + $0x8] sm:$0xff] }
0x184c   :  { %v11840_v41 = vmul.f32 %v14505_v33, %v16908_v22  ;;  %v12076_v33 = vld [vmem:[%s17142_s20 + $0x18] sm:$0xff] }
0x184d   :  { %v11855_v48 = vmul.f32 %v13167_v53, %v11841_v23  ;;  %v14280_v23 = vpack.c.bf16 %v12158_v62, %v12157_v9 }
0x184e   :  { %v14507_v36 = vpop.eup %14506  ;;  %v11854_v16 = vmul.f32 %v13167_v53, %v11840_v41  ;;  %v12160_v41 = vld [vmem:[%s17143_s21 + $0x18] sm:$0xff] }
0x184f   :  { %v14509_v55 = vpop.eup %14508  ;;  %v11869_v29 = vadd.f32 %v13169_v42, %v11855_v48  ;;  %v11843_v31 = vmul.f32 %v14507_v36, %v16914_v35 }
0x1850   :  { %v11868_v14 = vadd.f32 %v13169_v42, %v11854_v16  ;;  %v11842_v25 = vmul.f32 %v14509_v55, %v16917_v18  ;;  %v13170_v16 = vld [vmem:[%s17144_s19] ss:$0 sm:$0xff] }
0x1851   :  { %v11896_v50 = vcombine.high %v11869_v29, %v11869_v29  ;;  %v11857_v59 = vmul.f32 %v13167_v53, %v11843_v31 }
0x1852   :  { %v14511_v44 = vpop.eup %14510  ;;  %v11880_v0 = vcombine.high %v11868_v14, %v11868_v14  ;;  %v11856_v45 = vmul.f32 %v13167_v53, %v11842_v25  ;;  %v11887_v22 = vrot.slane %v11868_v14, %v14808_v24 }
0x1853   :  { %v14513_v21 = vpop.eup %14512  ;;  %v11871_v17 = vadd.f32 %v13169_v42, %v11857_v59  ;;  %v11845_v34 = vmul.f32 %v14511_v44, %v16924_v57  ;;  %v11903_v35 = vrot.slane %v11896_v50, %v14808_v24  ;;  %v13172_v59 = vld [vmem:[%s17145_s22] ss:$0 sm:$0xff] }
0x1854   :  { %v11894_v19 = vrot.slane %v11880_v0, %v14808_v24  ;;  %v11870_v60 = vadd.f32 %v13169_v42, %v11856_v45  ;;  %v11844_v15 = vmul.f32 %v14513_v21, %v16927_v5  ;;  %v11956_v6 = vrot.slane %v11887_v22, %v17214_v56 }
0x1855   :  { %v11912_v47 = vcombine.high %v11871_v17, %v11871_v17  ;;  %v11859_v18 = vmul.f32 %v13167_v53, %v11845_v34  ;;  %v11919_v1 = vrot.slane %v11871_v17, %v14808_v24  ;;  %v11964_v63 = vrot.slane %v11903_v35, %v17214_v56 }
0x1856   :  { %v11895_v46 = vcombine.high %v11894_v19, %v11894_v19  ;;  %v11910_v52 = vrot.slane %v11870_v60, %v14808_v24  ;;  %v11858_v39 = vmul.f32 %v13167_v53, %v11844_v15  ;;  %v12075_v53 = vld [vmem:[%s17142_s20 + $0x10] sm:$0xff] }
0x1857   :  { %v11873_v57 = vadd.f32 %v13169_v42, %v11859_v18  ;;  %v11926_v58 = vrot.slane %v11912_v47, %v14808_v24  ;;  %v11972_v43 = vrot.slane %v11919_v1, %v17214_v56  ;;  %v14277_v48 = vpack.c.bf16 %v12076_v33, %v12075_v53 }
0x1858   :  { %v11960_v5 = vrot.slane %v11895_v46, %v17214_v56  ;;  %v11911_v12 = vcombine.high %v11910_v52, %v11910_v52  ;;  %v11872_v7 = vadd.f32 %v13169_v42, %v11858_v39  ;;  %v12159_v42 = vld [vmem:[%s17143_s21 + $0x10] sm:$0xff] }
0x1859   :  { %v11927_v27 = vcombine.high %v11926_v58, %v11926_v58  ;;  %v11942_v37 = vrot.slane %v11873_v57, %v14808_v24  ;;  %v14283_v36 = vpack.c.bf16 %v12160_v41, %v12159_v42 }
0x185a   :  { %v11968_v26 = vrot.slane %v11911_v12, %v17214_v56  ;;  %v11928_v8 = vcombine.high %v11872_v7, %v11872_v7  ;;  %v11986_v10 = vsel %vm11985_vm7, %v11960_v5, %v11956_v6 }
0x185b   :  { %v11943_v61 = vcombine.high %v11942_v37, %v11942_v37  ;;  %v11976_v32 = vrot.slane %v11927_v27, %v17214_v56  ;;  %v11988_v20 = vsel %vm11987_vm8, %v11964_v63, %v11986_v10 }
0x185c   :  { %v11935_v30 = vrot.slane %v11928_v8, %v14808_v24  ;;  %v11990_v49 = vsel %vm11989_vm9, %v11968_v26, %v11988_v20  ;;  %v12073_v24 = vld [vmem:[%s17142_s20] sm:$0xff] }
0x185d   :  { %v11992_v38 = vsel %vm11991_vm10, %v11972_v43, %v11990_v49  ;;  %v11984_v4 = vrot.slane %v11943_v61, %v17214_v56  ;;  %v14274_v13 = vpack.c.bf16 %v12074_v3, %v12073_v24  ;;  %v13178_v49 = vld [vmem:[%s17142_s20 + $0x28] sm:$0xff]  ;;  %v13186_v24 = vld [vmem:[%s17143_s21 + $0x30] sm:$0xff]  ;;  %v13187_v3 = vld [vmem:[%s17143_s21 + $0x38] sm:$0xff] }
0x185e   :  { %v11980_v54 = vrot.slane %v11935_v30, %v17214_v56  ;;  %v11994_v2 = vsel %vm11993_vm11, %v11976_v32, %v11992_v38  ;;  %v13177_v30 = vld [vmem:[%s17142_s20 + $0x20] sm:$0xff] }
0x185f   :  { %14275 = vmatpush3.bf16.msra.mxu1 %v14274_v13  ;;  %v13184_v38 = vld [vmem:[%s17143_s21 + $0x20] sm:$0xff]  ;;  %v14301_v13 = vpack.c.bf16 %v13187_v3, %v13186_v24 }
0x1860   :  { %v11996_v11 = vsel %vm11995_vm12, %v11980_v54, %v11994_v2  ;;  %14276 = vmatprep.subr.bf16.mxu1 %v14562_v51  ;;  %v14292_v54 = vpack.c.bf16 %v13178_v49, %v13177_v30  ;;  %v13185_v2 = vld [vmem:[%s17143_s21 + $0x28] sm:$0xff]  ;;  %v13193_v3 = vld [vmem:[%s17218_s2] ss:$0 sm:$0xff] }
0x1861   :  { %v11998_v40 = vsel %vm11997_vm13, %v11984_v4, %v11996_v11  ;;  %v13179_v4 = vld [vmem:[%s17142_s20 + $0x30] sm:$0xff]  ;;  %v13180_v11 = vld [vmem:[%s17142_s20 + $0x38] sm:$0xff] }
0x1862   :  { %14110 = vmatmul.mubr.msk.f32.vlgmr.msra.gmra.mrb[110].mxu0 %vm152_vm0, %v11998_v40  ;;  %v14298_v40 = vpack.c.bf16 %v13185_v2, %v13184_v38  ;;  %v14295_v9 = vpack.c.bf16 %v13180_v11, %v13179_v4  ;;  %v13191_v2 = vld [vmem:[%s17217_s8] ss:$0 sm:$0xff]  ;;  %vm12770_vm0 = vcmask 195584  }
0x1863   :  { %14131 = vmatprep.mubr.msk.f32.mxu0 %vm14559_vm1, %v17207_v28  ;;  %14281 = vmatpush3.bf16.msra.mxu0 %v14280_v23 }
0x1864   :  { %14282 = vmatprep.subr.bf16.mxu0 %v14562_v51  ;;  %14278 = vmatpush3.bf16.msra.mxu1 %v14277_v48  ;;  %v13182_v48 = vld [vmem:[%s17145_s22 + $0x1] ss:$0 sm:$0xff] }
0x1865   :  { %14285 = vmatprep.subr.bf16.mxu1 %v14562_v51 }
0x1867   :  { %14284 = vmatpush3.bf16.msra.mxu0 %v14283_v36 }
0x1868   :  { %14291 = vmatprep.subr.bf16.mxu0 %v14562_v51 }
0x186a   :  { %14132 = vmatmul.mubr.f32.vlgmr.msra.gmra.mrb[112].mxu0 %v17207_v28 }
0x186b   :  { %14153 = vmatprep.mubr.msk.f32.mxu0 %vm14559_vm1, %v17207_v28  ;;  %14293 = vmatpush3.bf16.msra.mxu0 %v14292_v54 }
0x186c   :  { %14294 = vmatprep.subr.bf16.mxu0 %v14562_v51 }
0x186f   :  { %14296 = vmatpush3.bf16.msra.mxu0 %v14295_v9 }
0x1870   :  { %14303 = vmatprep.subr.bf16.mxu0 %v14562_v51 }
0x1935   :  { %v12067_v55 = vpop.f32.mrb[110].mxu0 }
0x1936   :  { %v12068_v29 = vadd.f32 %v13170_v16, %v12067_v55  ;;  %v14111_v31 = vpop.f32.mrb[111].mxu0 }
0x1938   :  { %12071 = vst.msk [vmem:[#allocation2] sm:$0xff] %vm5800_vm6, %v12068_v29 }
0x193d   :  { %v12230_v25 = vpop.f32.mrb[112].mxu0 }
0x193e   :  { %v14133_v50 = vpop.f32.mrb[113].mxu0 }
0x193f   :  { %v12072_v14 = vld [vmem:[#allocation2] sm:$0xff] }
0x1940   :  { %14121 = vmatmul.mubr.msk.f32.vlgmr.msra.gmra.mrb[126].mxu1 %vm5800_vm6, %v12072_v14 }
0x1941   :  { %14287 = vmatpush3.bf16.msra.mxu1 %v14280_v23  ;;  %14142 = vmatprep.mubr.msk.f32.mxu1 %vm14559_vm1, %v17207_v28 }
0x1942   :  { %14288 = vmatprep.subr.bf16.mxu1 %v14562_v51 }
0x1945   :  { %14290 = vmatpush3.bf16.msra.mxu1 %v14283_v36 }
0x1946   :  { %14297 = vmatprep.subr.bf16.mxu1 %v14562_v51 }
0x1a13   :  { %v12153_v44 = vpop.f32.mrb[126].mxu1 }
0x1a14   :  { %v12154_v0 = vadd.f32 %v13172_v59, %v12153_v44  ;;  %v14122_v45 = vpop.f32.mrb[127].mxu1 }
0x1a16   :  { %v12234_v21 = vadd.f32 %v12230_v25, %v12154_v0 }
0x1a18   :  { %14514 = vtanh.f32 %v12234_v21  ;;  %v13174_v34 = vmul.f32 -1.442695, %v12234_v21 }
0x1a1a   :  { %14516 = vpow2.f32 %v13174_v34 }
0x1a22   :  { %v14515_v17 = vpop.eup %14514 }
0x1a23   :  { %12244 = vrot.lane.b32.xlu0 %v14515_v17, %s14563_s15 }
0x1a24   :  { %v14517_v22 = vpop.eup %14516 }
0x1a25   :  { %v12238_v19 = vadd.f32 1.0, %v14517_v22 }
0x1a27   :  { %14518 = vrcp.f32 %v12238_v19 }
0x1a31   :  { %v14519_v60 = vpop.eup %14518 }
0x1a32   :  { %v12242_v47 = vmul.f32 0.0, %v14519_v60 }
0x1a95   :  { %v12245_v15 = vpop.permute.xlu0 %12244 }
0x1a96   :  { %v12247_v35 = vmul.f32 %v14519_v60, %v12245_v15 }
0x1a98   :  { %12249 = vrot.lane.b32.xlu1 %v12247_v35, %s14564_s14 }
0x1b0a   :  { %v12250_v18 = vpop.permute.xlu1 %12249 }
0x1b0b   :  { %v12252_v46 = vadd.f32 %v12250_v18, %v12242_v47 }
0x1b0d   :  { %14520 = vtanh.f32 %v12252_v46  ;;  %v12349_v10 = vrot.slane %v12252_v46, 4 }
0x1b17   :  { %v14521_v52 = vpop.eup %14520 }
0x1b18   :  { %12255 = vrot.lane.b32.xlu1 %v14521_v52, %s14563_s15 }
0x1b8a   :  { %v12256_v39 = vpop.permute.xlu1 %12255 }
0x1b8b   :  { %v12258_v1 = vmul.f32 %v14519_v60, %v12256_v39 }
0x1b8d   :  { %12260 = vrot.lane.b32.xlu1 %v12258_v1, %s14564_s14 }
0x1bff   :  { %v12261_v57 = vpop.permute.xlu1 %12260 }
0x1c00   :  { %12264 = vst.msk [vmem:[#allocation2] sm:$0xf] %vm12263_vm14, %v12261_v57  ;;  %14143 = vmatmul.mubr.msk.f32.vlgmr.msra.gmra.mrb[128].mxu1 %vm5800_vm6, %v12261_v57 }
0x1c01   :  { %14164 = vmatprep.mubr.msk.f32.mxu1 %vm14559_vm1, %v17207_v28  ;;  %14299 = vmatpush3.bf16.msra.mxu1 %v14298_v40 }
0x1c02   :  { %14300 = vmatprep.subr.bf16.mxu1 %v14562_v51 }
0x1c05   :  { %14302 = vmatpush3.bf16.msra.mxu1 %v14301_v13 }
0x1c06   :  { %14309 = vmatprep.subr.bf16.mxu1 %v14562_v51 }
0x1c08   :  { %14165 = vmatmul.mubr.f32.vlgmr.msra.gmra.mrb[130].mxu1 %v17207_v28 }
0x1c09   :  { %14186 = vmatprep.mubr.msk.f32.mxu1 %vm14559_vm1, %v17207_v28 }
0x1cd3   :  { %v12333_v58 = vpop.f32.mrb[128].mxu1 }
0x1cd4   :  { %v12338_v56 = vrot.slane %v12333_v58, 4  ;;  %v14144_v6 = vpop.f32.mrb[129].mxu1 }
0x1cd6   :  { %v12340_v5 = vadd.f32 %v12338_v56, %v12154_v0 }
0x1cd8   :  { %14522 = vtanh.f32 %v12340_v5  ;;  %v13176_v7 = vmul.f32 -1.442695, %v12340_v5 }
0x1cda   :  { %14524 = vpow2.f32 %v13176_v7 }
0x1cdb   :  { %v12532_v42 = vpop.f32.mrb[130].mxu1 }
0x1cdc   :  { %v14166_v41 = vpop.f32.mrb[131].mxu1 }
0x1ce2   :  { %v14523_v12 = vpop.eup %14522 }
0x1ce3   :  { %12353 = vrot.lane.b32.xlu0 %v14523_v12, %s14563_s15 }
0x1ce4   :  { %v14525_v63 = vpop.eup %14524 }
0x1ce5   :  { %v12344_v27 = vadd.f32 1.0, %v14525_v63 }
0x1ce7   :  { %14526 = vrcp.f32 %v12344_v27  ;;  %v12675_v27 = vld [vmem:[%s17215_s10] sm:$0xff] }
0x1cf1   :  { %v14527_v37 = vpop.eup %14526 }
0x1cf2   :  { %v12351_v61 = vmul.f32 %v14527_v37, %v12349_v10  ;;  %v12678_v10 = vld [vmem:[%s17215_s10 + $0x18] sm:$0xff] }
0x1d55   :  { %v12354_v26 = vpop.permute.xlu0 %12353 }
0x1d56   :  { %v12356_v8 = vmul.f32 %v14527_v37, %v12354_v26  ;;  %v12677_v26 = vld [vmem:[%s17215_s10 + $0x10] sm:$0xff] }
0x1d58   :  { %12358 = vrot.lane.b32.xlu1 %v12356_v8, %s14564_s14 }
0x1dca   :  { %v12359_v43 = vpop.permute.xlu1 %12358 }
0x1dcb   :  { %v12361_v32 = vadd.f32 %v12359_v43, %v12351_v61  ;;  %v14313_v61 = vpack.c.bf16 %v12678_v10, %v12677_v26 }
0x1dcd   :  { %14528 = vtanh.f32 %v12361_v32 }
0x1dd7   :  { %v14529_v20 = vpop.eup %14528 }
0x1dd8   :  { %12364 = vrot.lane.b32.xlu0 %v14529_v20, %s14563_s15 }
0x1e4a   :  { %v12365_v62 = vpop.permute.xlu0 %12364 }
0x1e4b   :  { %v12367_v53 = vmul.f32 %v14527_v37, %v12365_v62  ;;  %v12676_v37 = vld [vmem:[%s17215_s10 + $0x8] sm:$0xff] }
0x1e4c   :  { %v14310_v8 = vpack.c.bf16 %v12676_v37, %v12675_v27 }
0x1e4d   :  { %12369 = vrot.lane.b32.xlu1 %v12367_v53, %s14564_s14 }
0x1e4e   :  { %14311 = vmatpush3.bf16.msra.mxu1 %v14310_v8 }
0x1e4f   :  { %14312 = vmatprep.subr.bf16.mxu1 %v14562_v51 }
0x1e52   :  { %14314 = vmatpush3.bf16.msra.mxu1 %v14313_v61 }
0x1ebf   :  { %v12370_v33 = vpop.permute.xlu1 %12369 }
0x1ec0   :  { %12373 = vst.msk [vmem:[#allocation2] sm:$0xf0] %vm12372_vm15, %v12370_v33 }
0x1ec7   :  { %v12374_v23 = vld [vmem:[#allocation2] sm:$0xff] }
0x1ec8   :  { %14154 = vmatmul.mubr.msk.f32.vlgmr.msra.gmra.mrb[114].mxu0 %vm5800_vm6, %v12374_v23 }
0x1ec9   :  { %14305 = vmatpush3.bf16.msra.mxu0 %v14298_v40  ;;  %14175 = vmatprep.mubr.msk.f32.mxu0 %vm14559_vm1, %v17207_v28 }
0x1eca   :  { %14306 = vmatprep.subr.bf16.mxu0 %v14562_v51 }
0x1ecd   :  { %14308 = vmatpush3.bf16.msra.mxu0 %v14301_v13 }
0x1ece   :  { %14315 = vmatprep.subr.bf16.mxu0 %v14562_v51 }
0x1f9b   :  { %v12457_v36 = vpop.f32.mrb[114].mxu0 }
0x1f9c   :  { %v12458_v16 = vadd.f32 %v13182_v48, %v12457_v36  ;;  %v14155_v55 = vpop.f32.mrb[115].mxu0 }
0x1f9e   :  { %v12536_v29 = vadd.f32 %v12532_v42, %v12458_v16 }
0x1fa0   :  { %14530 = vtanh.f32 %v12536_v29  ;;  %v13188_v14 = vmul.f32 -1.442695, %v12536_v29 }
0x1fa2   :  { %14532 = vpow2.f32 %v13188_v14 }
0x1faa   :  { %v14531_v31 = vpop.eup %14530 }
0x1fab   :  { %12546 = vrot.lane.b32.xlu0 %v14531_v31, %s14563_s15 }
0x1fac   :  { %v14533_v25 = vpop.eup %14532 }
0x1fad   :  { %v12540_v50 = vadd.f32 1.0, %v14533_v25 }
0x1faf   :  { %14534 = vrcp.f32 %v12540_v50 }
0x1fb9   :  { %v14535_v59 = vpop.eup %14534 }
0x1fba   :  { %v12544_v45 = vmul.f32 0.0, %v14535_v59 }
0x201d   :  { %v12547_v44 = vpop.permute.xlu0 %12546 }
0x201e   :  { %v12549_v0 = vmul.f32 %v14535_v59, %v12547_v44 }
0x2020   :  { %12551 = vrot.lane.b32.xlu1 %v12549_v0, %s14564_s14 }
0x2092   :  { %v12552_v21 = vpop.permute.xlu1 %12551 }
0x2093   :  { %v12554_v17 = vadd.f32 %v12552_v21, %v12544_v45 }
0x2095   :  { %14536 = vtanh.f32 %v12554_v17  ;;  %v12650_v6 = vrot.slane %v12554_v17, 4 }
0x209f   :  { %v14537_v34 = vpop.eup %14536 }
0x20a0   :  { %12557 = vrot.lane.b32.xlu0 %v14537_v34, %s14563_s15 }
0x2112   :  { %v12558_v22 = vpop.permute.xlu0 %12557 }
0x2113   :  { %v12560_v19 = vmul.f32 %v14535_v59, %v12558_v22 }
0x2115   :  { %12562 = vrot.lane.b32.xlu1 %v12560_v19, %s14564_s14 }
0x2187   :  { %v12563_v60 = vpop.permute.xlu1 %12562 }
0x2188   :  { %12565 = vst.msk [vmem:[#allocation2] sm:$0xf] %vm12263_vm14, %v12563_v60  ;;  %14176 = vmatmul.mubr.msk.f32.vlgmr.msra.gmra.mrb[116].mxu0 %vm5800_vm6, %v12563_v60 }
0x2189   :  { %14195 = vmatprep.mubr.msk.f32.mxu0 %vm14559_vm1, %v17207_v28 }
0x225b   :  { %v12634_v15 = vpop.f32.mrb[116].mxu0 }
0x225c   :  { %v12639_v35 = vrot.slane %v12634_v15, 4  ;;  %v14177_v47 = vpop.f32.mrb[117].mxu0 }
0x225e   :  { %v12641_v18 = vadd.f32 %v12639_v35, %v12458_v16 }
0x2260   :  { %14538 = vtanh.f32 %v12641_v18  ;;  %v13190_v52 = vmul.f32 -1.442695, %v12641_v18 }
0x2262   :  { %14540 = vpow2.f32 %v13190_v52 }
0x226a   :  { %v14539_v46 = vpop.eup %14538 }
0x226b   :  { %12654 = vrot.lane.b32.xlu0 %v14539_v46, %s14563_s15 }
0x226c   :  { %v14541_v39 = vpop.eup %14540 }
0x226d   :  { %v12645_v1 = vadd.f32 1.0, %v14541_v39 }
0x226f   :  { %14542 = vrcp.f32 %v12645_v1 }
0x2279   :  { %v14543_v57 = vpop.eup %14542 }
0x227a   :  { %v12652_v5 = vmul.f32 %v14543_v57, %v12650_v6 }
0x22dd   :  { %v12655_v58 = vpop.permute.xlu0 %12654 }
0x22de   :  { %v12657_v56 = vmul.f32 %v14543_v57, %v12655_v58 }
0x22e0   :  { %12659 = vrot.lane.b32.xlu1 %v12657_v56, %s14564_s14 }
0x2352   :  { %v12660_v12 = vpop.permute.xlu1 %12659 }
0x2353   :  { %v12662_v7 = vadd.f32 %v12660_v12, %v12652_v5 }
0x2355   :  { %14544 = vtanh.f32 %v12662_v7 }
0x235f   :  { %v14545_v63 = vpop.eup %14544 }
0x2360   :  { %12665 = vrot.lane.b32.xlu0 %v14545_v63, %s14563_s15  ;;  %s17216_s15 = sld [smem:[#allocation21_spill]] }
0x2366   :  { %v12760_v49 = vld [vmem:[%s17216_s15] sm:$0xff]  ;;  %v12761_v38 = vld [vmem:[%s17216_s15 + $0x8] sm:$0xff]  ;;  %v12762_v54 = vld [vmem:[%s17216_s15 + $0x10] sm:$0xff] }
0x2367   :  { %v14316_v51 = vpack.c.bf16 %v12761_v38, %v12760_v49 }
0x2369   :  { %14317 = vmatpush3.bf16.msra.mxu0 %v14316_v51 }
0x236a   :  { %14193 = vmatprep.subr.mxu0 %v17207_v28 }
0x236d   :  { %14194 = vmatpush3.msra.mxu0 %v12762_v54 }
0x23d2   :  { %v12666_v43 = vpop.permute.xlu0 %12665 }
0x23d3   :  { %v12668_v32 = vmul.f32 %v14543_v57, %v12666_v43 }
0x23d5   :  { %12670 = vrot.lane.b32.xlu1 %v12668_v32, %s14564_s14 }
0x2447   :  { %v12671_v20 = vpop.permute.xlu1 %12670 }
0x2448   :  { %12673 = vst.msk [vmem:[#allocation2] sm:$0xf0] %vm12372_vm15, %v12671_v20 }
0x244f   :  { %v12674_v30 = vld [vmem:[#allocation2] sm:$0xff] }
0x2450   :  { %14187 = vmatmul.mubr.msk.f32.vlgmr.msra.gmra.mrb[132].mxu1 %vm5800_vm6, %v12674_v30 }
0x2523   :  { %v12755_v4 = vpop.f32.mrb[132].mxu1 }
0x2524   :  { %v12756_v11 = vadd.f32 %v13191_v2, %v12755_v4  ;;  %v14188_v40 = vpop.f32.mrb[133].mxu1 }
0x2526   :  { %v12759_v24 = vmax.f32 %v12756_v11, 0.0 }
0x2528   :  { %14196 = vmatmul.mubr.msk.f32.vlgmr.msra.gmra.mrb[118].mxu0 %vm12770_vm0, %v12759_v24 }
0x25fb   :  { %v12840_v28 = vpop.f32.mrb[118].mxu0 }
0x25fc   :  { %v12841_v9 = vadd.f32 %v13193_v3, %v12840_v28  ;;  %v14197_v13 = vpop.f32.mrb[119].mxu0 }
0x25fe   :  { %v12845_v62 = vcombine.high %v12841_v9, %v12841_v9  ;;  %12847 = vst [vmem:[%s17219_s1] sm:$0xf] %v12841_v9 }
0x2600   :  { %12848 = vst [vmem:[%s17219_s1 + $0x4] sm:$0xf] %v12845_v62 }

</bundles_post_ra>
